<compile_context>
chip_gen: v7x
topology: tpu7x:2x2x1
jax: 0.10.0
libtpu: 0.0.40
codegen_flags: <defaults>
</compile_context>

<pallas_src>
import math

import jax
import jax.numpy as jnp
from jax.experimental import pallas as pl
from jax.experimental.pallas import tpu as pltpu

# ------------------------- config -------------------------
SEQ = 16
IN_SIZE = 32
CLASSES = 4
TOPK = 4
NUM_HEADS = 2
HEAD_DIM = 16
EMBED_DIM = NUM_HEADS * HEAD_DIM          # 32
MLP_DIM = HEAD_DIM                        # dim_feedforward = head_dim
NUM_LAYERS = 2
LN_EPS = 1e-5
PACK_W = 32                               # packed-slab width (max real col count)
NEG_BIG = -1e30                           # mask value for iterated top-k

NT_DIMS = (((1,), (1,)), ((), ()))        # contract last dims: A @ B^T without .T


def _round8(n):
    return ((n + 7) // 8) * 8


# ---------------- packed parameter slab layout (static Python offsets) -------
# Weights are pre-transposed to (in_dim, out_dim) so matmuls are plain NN,
# except w_ih which stays (classes, in_size) because both of its uses are NT.
_W_ENTRIES = (('w_ih', CLASSES, IN_SIZE),
              ('wqT', IN_SIZE, EMBED_DIM),
              ('wkT', TOPK * IN_SIZE, EMBED_DIM),
              ('wvT', IN_SIZE, EMBED_DIM),
              ('wpT', EMBED_DIM, IN_SIZE),
              ('w1T', IN_SIZE, MLP_DIM),
              ('w2T', MLP_DIM, IN_SIZE))
W_LAYER_ROWS = sum(_round8(r) for _, r, _ in _W_ENTRIES)
W_HEAD_OFF = NUM_LAYERS * W_LAYER_ROWS
W_TOTAL_ROWS = W_HEAD_OFF + _round8(IN_SIZE)          # 592

_V_ENTRIES = (('b_ih', CLASSES), ('bq', EMBED_DIM), ('bk', EMBED_DIM),
              ('bv', EMBED_DIM), ('bp', IN_SIZE), ('b1', MLP_DIM), ('b2', IN_SIZE),
              ('gq', EMBED_DIM), ('betaq', EMBED_DIM),
              ('gk', EMBED_DIM), ('betak', EMBED_DIM),
              ('gv', EMBED_DIM), ('betav', EMBED_DIM),
              ('go', IN_SIZE), ('betao', IN_SIZE),
              ('gblk', IN_SIZE), ('betablk', IN_SIZE),
              ('gmlp', IN_SIZE), ('betamlp', IN_SIZE))
V_LAYER_ROWS = len(_V_ENTRIES)
V_HEAD_OFF = NUM_LAYERS * V_LAYER_ROWS
V_TOTAL_ROWS = V_HEAD_OFF + 1                         # 39


def _w_offsets(layer):
    offs, cur = {}, layer * W_LAYER_ROWS
    for name, rows, _ in _W_ENTRIES:
        offs[name] = cur
        cur += _round8(rows)
    return offs


def _v_offsets(layer):
    base = layer * V_LAYER_ROWS
    return {name: base + i for i, (name, _) in enumerate(_V_ENTRIES)}


def _full_spec(shape):
    nd = len(shape)
    return pl.BlockSpec(shape, lambda i, _nd=nd: (0,) * _nd)


# ------------------------- small helpers (in-kernel) -------------------------
def _ln(z, g, b):
    mu = jnp.mean(z, axis=-1, keepdims=True)
    var = jnp.mean(jnp.square(z - mu), axis=-1, keepdims=True)
    return (z - mu) * jax.lax.rsqrt(var + LN_EPS) * g + b


def _gelu(z):  # exact (erf-based) GELU, matching nn.GELU() default
    return 0.5 * z * (1.0 + jax.lax.erf(z * (1.0 / math.sqrt(2.0))))


# ------------------------- fused forward kernel -------------------------
def _cf_forward_kernel(x_ref, w_ref, vec_ref, out_ref, c_ref, attn_ref,
                       vals_sc, cf_sc):
    def wsub(off, rows, cols):          # static slice of the weight slab
        return w_ref[off:off + rows, 0:cols]

    def vrow(row, cols):                # (1, cols) row of the vector slab
        return vec_ref[row:row + 1, 0:cols]

    def lin(z, w, b):                   # plain NN matmul (weights pre-transposed)
        return jnp.dot(z, w, preferred_element_type=jnp.float32) + b

    x = x_ref[...]                                                   # (S, F)
    scale = 1.0 / math.sqrt(HEAD_DIM)
    col_ids = jax.lax.broadcasted_iota(
        jnp.int32, (CLASSES, SEQ), 1).astype(jnp.float32)            # (C, S)

    for l in range(NUM_LAYERS):
        wo, vo = _w_offsets(l), _v_offsets(l)
        w_ih = wsub(wo['w_ih'], CLASSES, IN_SIZE)                    # (C, F)

        # instance-head scores in (classes, seq) orientation; the per-class
        # bias does not change the within-class argmax so it is omitted here.
        scores = jax.lax.dot_general(w_ih, x, NT_DIMS,
                                     preferred_element_type=jnp.float32)   # (C, S)

        # c = instance_head(x) of the LAST block is a module output (with bias)
        if l == NUM_LAYERS - 1:
            c_ref[...] = (jax.lax.dot_general(x, w_ih, NT_DIMS,
                                              preferred_element_type=jnp.float32)
                          + vrow(vo['b_ih'], CLASSES))               # (S, C)

        # ---- in-kernel iterated top-k: gather critical rows + scatter matrix
        scat_cs = None                                               # (C, S)
        for t in range(TOPK):
            mx = jnp.max(scores, axis=1, keepdims=True)              # (C, 1)
            idx = jnp.min(jnp.where(scores == mx, col_ids, float(SEQ)),
                          axis=1, keepdims=True)                     # (C, 1)
            onehot = (col_ids == idx).astype(jnp.float32)            # (C, S)
            scat_cs = onehot if scat_cs is None else scat_cs + onehot
            # critical features: row c = x[topk_idx[t, c]]  (NN matmul gather)
            cf_sc[:, t * IN_SIZE:(t + 1) * IN_SIZE] = jnp.dot(
                onehot, x, preferred_element_type=jnp.float32)       # (C, F)
            scores = jnp.where(onehot > 0.5, NEG_BIG, scores)

        # ---- q / k / v projections + LayerNorm -----------------------------
        q = _ln(lin(x, wsub(wo['wqT'], IN_SIZE, EMBED_DIM), vrow(vo['bq'], EMBED_DIM)),
                vrow(vo['gq'], EMBED_DIM), vrow(vo['betaq'], EMBED_DIM))      # (S, E)
        v = _ln(lin(x, wsub(wo['wvT'], IN_SIZE, EMBED_DIM), vrow(vo['bv'], EMBED_DIM)),
                vrow(vo['gv'], EMBED_DIM), vrow(vo['betav'], EMBED_DIM))      # (S, E)
        k = _ln(lin(cf_sc[...], wsub(wo['wkT'], TOPK * IN_SIZE, EMBED_DIM),
                    vrow(vo['bk'], EMBED_DIM)),
                vrow(vo['gk'], EMBED_DIM), vrow(vo['betak'], EMBED_DIM))      # (C, E)

        # ---- per-head scaled-dot-product attention, (classes, seq) layout --
        for h in range(NUM_HEADS):
            lo = h * HEAD_DIM
            qh = q[:, lo:lo + HEAD_DIM]                              # (S, D)
            kh = k[:, lo:lo + HEAD_DIM]                              # (C, D)
            vh = v[:, lo:lo + HEAD_DIM]                              # (S, D)
            logits = jax.lax.dot_general(
                kh, qh, NT_DIMS, preferred_element_type=jnp.float32) * scale  # (C, S)
            m = jnp.max(logits, axis=0, keepdims=True)               # softmax over classes
            e = jnp.exp(logits - m)
            attn_t = e * pl.reciprocal(jnp.sum(e, axis=0, keepdims=True),
                                       approx=True)                  # (C, S)
            attn_ref[l, h * CLASSES:(h + 1) * CLASSES, :] = attn_t
            vals_sc[:, lo:lo + HEAD_DIM] = jnp.dot(
                attn_t, vh, preferred_element_type=jnp.float32)      # (C, D)

        # ---- output projection + LN, scatter residual, block LN, MLP + LN --
        o = _ln(lin(vals_sc[...], wsub(wo['wpT'], EMBED_DIM, IN_SIZE),
                    vrow(vo['bp'], IN_SIZE)),
                vrow(vo['go'], IN_SIZE), vrow(vo['betao'], IN_SIZE))          # (C, F)
        # topk repeated index_add == scatter-matrix matmul (duplicates accumulate)
        x1 = x + jnp.dot(scat_cs.T, o, preferred_element_type=jnp.float32)
        x1 = _ln(x1, vrow(vo['gblk'], IN_SIZE), vrow(vo['betablk'], IN_SIZE))
        h1 = _gelu(lin(x1, wsub(wo['w1T'], IN_SIZE, MLP_DIM), vrow(vo['b1'], MLP_DIM)))
        x = _ln(x1 + lin(h1, wsub(wo['w2T'], MLP_DIM, IN_SIZE), vrow(vo['b2'], IN_SIZE)),
                vrow(vo['gmlp'], IN_SIZE), vrow(vo['betamlp'], IN_SIZE))

    # final classifier head + classification='mean' over the sequence
    y = lin(x, wsub(W_HEAD_OFF, IN_SIZE, CLASSES), vrow(V_HEAD_OFF, CLASSES))  # (S, C)
    out_ref[...] = jnp.mean(y, axis=0, keepdims=True)                          # (1, C)


# ------------------------- pallas_call wrapper -------------------------
@jax.jit
def cf_transformer_forward(x, wslab, vslab):
    out, c, attn_raw = pl.pallas_call(
        _cf_forward_kernel,
        out_shape=(jax.ShapeDtypeStruct((1, CLASSES), jnp.float32),
                   jax.ShapeDtypeStruct((SEQ, CLASSES), jnp.float32),
                   jax.ShapeDtypeStruct((NUM_LAYERS, NUM_HEADS * CLASSES, SEQ),
                                        jnp.float32)),
        grid=(1,),
        in_specs=[_full_spec((SEQ, IN_SIZE)),
                  _full_spec((W_TOTAL_ROWS, PACK_W)),
                  _full_spec((V_TOTAL_ROWS, PACK_W))],
        out_specs=(_full_spec((1, CLASSES)),
                   _full_spec((SEQ, CLASSES)),
                   _full_spec((NUM_LAYERS, NUM_HEADS * CLASSES, SEQ))),
        scratch_shapes=[pltpu.VMEM((CLASSES, EMBED_DIM), jnp.float32),
                        pltpu.VMEM((CLASSES, TOPK * IN_SIZE), jnp.float32)],
    )(x, wslab, vslab)
    output = out[0]                                                  # (C,)
    attention = attn_raw.reshape(NUM_LAYERS, NUM_HEADS, CLASSES, SEQ)
    attention = jnp.transpose(attention, (0, 1, 3, 2))               # (L, H, S, C)
    return output, c, attention


# ------------------------- parameter init (deterministic) -------------------------
def kaiming(key, out_dim, in_dim):
    # nn.init.kaiming_normal_ default: fan_in, gain sqrt(2)
    return jax.random.normal(key, (out_dim, in_dim), jnp.float32) * math.sqrt(2.0 / in_dim)


def init_block_params(key):
    keys = jax.random.split(key, 8)
    ones = lambda d: jnp.ones((1, d), jnp.float32)
    zeros = lambda d: jnp.zeros((1, d), jnp.float32)
    p = {}
    p['w_ih'] = kaiming(keys[0], CLASSES, IN_SIZE)
    p['b_ih'] = jnp.zeros((CLASSES,), jnp.float32)
    p['wq'] = kaiming(keys[1], EMBED_DIM, IN_SIZE);        p['bq'] = zeros(EMBED_DIM)
    p['wk'] = kaiming(keys[2], EMBED_DIM, TOPK * IN_SIZE); p['bk'] = zeros(EMBED_DIM)
    p['wv'] = kaiming(keys[3], EMBED_DIM, IN_SIZE);        p['bv'] = zeros(EMBED_DIM)
    p['wp'] = kaiming(keys[4], IN_SIZE, EMBED_DIM);        p['bp'] = zeros(IN_SIZE)
    p['w1'] = kaiming(keys[5], MLP_DIM, IN_SIZE);          p['b1'] = zeros(MLP_DIM)
    p['w2'] = kaiming(keys[6], IN_SIZE, MLP_DIM);          p['b2'] = zeros(IN_SIZE)
    p['gq'], p['betaq'] = ones(EMBED_DIM), zeros(EMBED_DIM)
    p['gk'], p['betak'] = ones(EMBED_DIM), zeros(EMBED_DIM)
    p['gv'], p['betav'] = ones(EMBED_DIM), zeros(EMBED_DIM)
    p['go'], p['betao'] = ones(IN_SIZE), zeros(IN_SIZE)
    p['gblk'], p['betablk'] = ones(IN_SIZE), zeros(IN_SIZE)
    p['gmlp'], p['betamlp'] = ones(IN_SIZE), zeros(IN_SIZE)
    return p


def pack_params(block_params, head_w, head_b):
    """Pack all per-layer weights/vectors into two slabs (done once)."""
    wslab = jnp.zeros((W_TOTAL_ROWS, PACK_W), jnp.float32)
    vslab = jnp.zeros((V_TOTAL_ROWS, PACK_W), jnp.float32)
    for l, p in enumerate(block_params):
        wo, vo = _w_offsets(l), _v_offsets(l)
        mats = {'w_ih': p['w_ih'],          # kept (classes, in) — used via NT
                'wqT': p['wq'].T, 'wkT': p['wk'].T, 'wvT': p['wv'].T,
                'wpT': p['wp'].T, 'w1T': p['w1'].T, 'w2T': p['w2'].T}
        for name, rows, cols in _W_ENTRIES:
            wslab = wslab.at[wo[name]:wo[name] + rows, 0:cols].set(mats[name])
        for name, d in _V_ENTRIES:
            vslab = vslab.at[vo[name], 0:d].set(jnp.reshape(p[name], (-1,)))
    wslab = wslab.at[W_HEAD_OFF:W_HEAD_OFF + IN_SIZE, 0:CLASSES].set(head_w.T)
    vslab = vslab.at[V_HEAD_OFF, 0:CLASSES].set(jnp.reshape(head_b, (-1,)))
    return wslab, vslab


# ------------------------- main -------------------------
if __name__ == "__main__":
    root = jax.random.PRNGKey(0)
    k_x, k_params, k_head = jax.random.split(root, 3)
    x = jax.random.normal(k_x, (SEQ, IN_SIZE), jnp.float32)
    block_keys = jax.random.split(k_params, NUM_LAYERS)
    block_params = [init_block_params(k) for k in block_keys]
    head_w = kaiming(k_head, CLASSES, IN_SIZE)
    head_b = jnp.zeros((CLASSES,), jnp.float32)

    wslab, vslab = pack_params(block_params, head_w, head_b)
    output, c, attention = cf_transformer_forward(x, wslab, vslab)
    jax.block_until_ready((output, c, attention))
    assert output.shape == (CLASSES,)
    assert c.shape == (SEQ, CLASSES)
    assert attention.shape == (NUM_LAYERS, NUM_HEADS, SEQ, CLASSES)
    print("KERNEL_OK")
</pallas_src>

<mosaic_0001>
module attributes {stable_mosaic.version = 11 : i64} {
  func.func @_cf_forward_kernel(%arg0: i32, %arg1: memref<16x32xf32, #tpu.memory_space<vmem>>, %arg2: memref<592x32xf32, #tpu.memory_space<vmem>>, %arg3: memref<39x32xf32, #tpu.memory_space<vmem>>, %arg4: memref<1x4xf32, #tpu.memory_space<vmem>>, %arg5: memref<16x4xf32, #tpu.memory_space<vmem>>, %arg6: memref<2x8x16xf32, #tpu.memory_space<vmem>>, %arg7: memref<4x32xf32, #tpu.memory_space<vmem>>, %arg8: memref<4x128xf32, #tpu.memory_space<vmem>>) attributes {dimension_semantics = [#tpu.dimension_semantics<arbitrary>], iteration_bounds = array<i64: 1>, scalar_prefetch = 0 : i64, scratch_operands = 2 : i64, tpu.core_type = #tpu.core_type<tc>, window_params = [{pipeline_mode = #tpu.pipeline_mode<synchronous>, transform_indices = @transform_0, window_bounds = array<i64: 16, 32>}, {pipeline_mode = #tpu.pipeline_mode<synchronous>, transform_indices = @transform_1, window_bounds = array<i64: 592, 32>}, {pipeline_mode = #tpu.pipeline_mode<synchronous>, transform_indices = @transform_2, window_bounds = array<i64: 39, 32>}, {pipeline_mode = #tpu.pipeline_mode<synchronous>, transform_indices = @transform_3, window_bounds = array<i64: 1, 4>}, {pipeline_mode = #tpu.pipeline_mode<synchronous>, transform_indices = @transform_4, window_bounds = array<i64: 16, 4>}, {pipeline_mode = #tpu.pipeline_mode<synchronous>, transform_indices = @transform_5, window_bounds = array<i64: 2, 8, 16>}]} {
    %c0 = arith.constant 0 : index
    %c0_0 = arith.constant 0 : index
    %0 = vector.load %arg1[%c0, %c0_0] : memref<16x32xf32, #tpu.memory_space<vmem>>, vector<16x32xf32>
    %1 = tpu.iota {dimensions = array<i32: 1>} : vector<4x16xi32>
    %2 = arith.sitofp %1 : vector<4x16xi32> to vector<4x16xf32>
    %c0_1 = arith.constant 0 : index
    %c0_2 = arith.constant 0 : index
    %3 = vector.load %arg2[%c0_1, %c0_2] : memref<592x32xf32, #tpu.memory_space<vmem>>, vector<4x32xf32>
    %cst = arith.constant dense<0.000000e+00> : vector<4x16xf32>
    %4 = tpu.matmul %3, %0, %cst {dimension_numbers = #tpu.dot_dimension_numbers<[1], [1], [0], [0], [0, 0, 1, 0], [], []>} : vector<4x32xf32>, vector<16x32xf32>, vector<4x16xf32> -> vector<4x16xf32>
    %cst_3 = arith.constant dense<0xFF800000> : vector<4xf32>
    %5 = vector.multi_reduction <maximumf>, %4, %cst_3 [1] : vector<4x16xf32> to vector<4xf32>
    %6 = vector.shape_cast %5 : vector<4xf32> to vector<4x1xf32>
    %7 = vector.broadcast %6 : vector<4x1xf32> to vector<4x16xf32>
    %8 = arith.cmpf oeq, %4, %7 : vector<4x16xf32>
    %cst_4 = arith.constant 1.600000e+01 : f32
    %9 = vector.broadcast %cst_4 : f32 to vector<4x16xf32>
    %10 = arith.select %8, %2, %9 : vector<4x16xi1>, vector<4x16xf32>
    %cst_5 = arith.constant dense<0x7F800000> : vector<4xf32>
    %11 = vector.multi_reduction <minimumf>, %10, %cst_5 [1] : vector<4x16xf32> to vector<4xf32>
    %12 = vector.shape_cast %11 : vector<4xf32> to vector<4x1xf32>
    %13 = vector.broadcast %12 : vector<4x1xf32> to vector<4x16xf32>
    %14 = arith.cmpf oeq, %2, %13 : vector<4x16xf32>
    %15 = arith.extui %14 : vector<4x16xi1> to vector<4x16xi32>
    %16 = arith.sitofp %15 : vector<4x16xi32> to vector<4x16xf32>
    %cst_6 = arith.constant dense<0.000000e+00> : vector<4x32xf32>
    %17 = tpu.matmul %16, %0, %cst_6 {dimension_numbers = #tpu.dot_dimension_numbers<[1], [0], [0], [1], [0, 0, 1, 1], [], []>} : vector<4x16xf32>, vector<16x32xf32>, vector<4x32xf32> -> vector<4x32xf32>
    %c0_7 = arith.constant 0 : index
    %c0_8 = arith.constant 0 : index
    %18 = vector.load %arg8[%c0_7, %c0_8] : memref<4x128xf32, #tpu.memory_space<vmem>>, vector<4x32xf32>
    tpu.vector_store %arg8[%c0_7, %c0_8], %17 {strides = array<i32>} : memref<4x128xf32, #tpu.memory_space<vmem>>, vector<4x32xf32>,
    %cst_9 = arith.constant 5.000000e-01 : f32
    %19 = vector.broadcast %cst_9 : f32 to vector<4x16xf32>
    %20 = arith.cmpf ogt, %16, %19 : vector<4x16xf32>
    %cst_10 = arith.constant -1.000000e+30 : f32
    %21 = vector.broadcast %cst_10 : f32 to vector<4x16xf32>
    %22 = arith.select %20, %21, %4 : vector<4x16xi1>, vector<4x16xf32>
    %cst_11 = arith.constant dense<0xFF800000> : vector<4xf32>
    %23 = vector.multi_reduction <maximumf>, %22, %cst_11 [1] : vector<4x16xf32> to vector<4xf32>
    %24 = vector.shape_cast %23 : vector<4xf32> to vector<4x1xf32>
    %25 = vector.broadcast %24 : vector<4x1xf32> to vector<4x16xf32>
    %26 = arith.cmpf oeq, %22, %25 : vector<4x16xf32>
    %cst_12 = arith.constant 1.600000e+01 : f32
    %27 = vector.broadcast %cst_12 : f32 to vector<4x16xf32>
    %28 = arith.select %26, %2, %27 : vector<4x16xi1>, vector<4x16xf32>
    %cst_13 = arith.constant dense<0x7F800000> : vector<4xf32>
    %29 = vector.multi_reduction <minimumf>, %28, %cst_13 [1] : vector<4x16xf32> to vector<4xf32>
    %30 = vector.shape_cast %29 : vector<4xf32> to vector<4x1xf32>
    %31 = vector.broadcast %30 : vector<4x1xf32> to vector<4x16xf32>
    %32 = arith.cmpf oeq, %2, %31 : vector<4x16xf32>
    %33 = arith.extui %32 : vector<4x16xi1> to vector<4x16xi32>
    %34 = arith.sitofp %33 : vector<4x16xi32> to vector<4x16xf32>
    %35 = arith.addf %16, %34 : vector<4x16xf32>
    %cst_14 = arith.constant dense<0.000000e+00> : vector<4x32xf32>
    %36 = tpu.matmul %34, %0, %cst_14 {dimension_numbers = #tpu.dot_dimension_numbers<[1], [0], [0], [1], [0, 0, 1, 1], [], []>} : vector<4x16xf32>, vector<16x32xf32>, vector<4x32xf32> -> vector<4x32xf32>
    %c0_15 = arith.constant 0 : index
    %c32 = arith.constant 32 : index
    %37 = vector.load %arg8[%c0_15, %c32] : memref<4x128xf32, #tpu.memory_space<vmem>>, vector<4x32xf32>
    tpu.vector_store %arg8[%c0_15, %c32], %36 {strides = array<i32>} : memref<4x128xf32, #tpu.memory_space<vmem>>, vector<4x32xf32>,
    %cst_16 = arith.constant 5.000000e-01 : f32
    %38 = vector.broadcast %cst_16 : f32 to vector<4x16xf32>
    %39 = arith.cmpf ogt, %34, %38 : vector<4x16xf32>
    %cst_17 = arith.constant -1.000000e+30 : f32
    %40 = vector.broadcast %cst_17 : f32 to vector<4x16xf32>
    %41 = arith.select %39, %40, %22 : vector<4x16xi1>, vector<4x16xf32>
    %cst_18 = arith.constant dense<0xFF800000> : vector<4xf32>
    %42 = vector.multi_reduction <maximumf>, %41, %cst_18 [1] : vector<4x16xf32> to vector<4xf32>
    %43 = vector.shape_cast %42 : vector<4xf32> to vector<4x1xf32>
    %44 = vector.broadcast %43 : vector<4x1xf32> to vector<4x16xf32>
    %45 = arith.cmpf oeq, %41, %44 : vector<4x16xf32>
    %cst_19 = arith.constant 1.600000e+01 : f32
    %46 = vector.broadcast %cst_19 : f32 to vector<4x16xf32>
    %47 = arith.select %45, %2, %46 : vector<4x16xi1>, vector<4x16xf32>
    %cst_20 = arith.constant dense<0x7F800000> : vector<4xf32>
    %48 = vector.multi_reduction <minimumf>, %47, %cst_20 [1] : vector<4x16xf32> to vector<4xf32>
    %49 = vector.shape_cast %48 : vector<4xf32> to vector<4x1xf32>
    %50 = vector.broadcast %49 : vector<4x1xf32> to vector<4x16xf32>
    %51 = arith.cmpf oeq, %2, %50 : vector<4x16xf32>
    %52 = arith.extui %51 : vector<4x16xi1> to vector<4x16xi32>
    %53 = arith.sitofp %52 : vector<4x16xi32> to vector<4x16xf32>
    %54 = arith.addf %35, %53 : vector<4x16xf32>
    %cst_21 = arith.constant dense<0.000000e+00> : vector<4x32xf32>
    %55 = tpu.matmul %53, %0, %cst_21 {dimension_numbers = #tpu.dot_dimension_numbers<[1], [0], [0], [1], [0, 0, 1, 1], [], []>} : vector<4x16xf32>, vector<16x32xf32>, vector<4x32xf32> -> vector<4x32xf32>
    %c0_22 = arith.constant 0 : index
    %c64 = arith.constant 64 : index
    %56 = vector.load %arg8[%c0_22, %c64] : memref<4x128xf32, #tpu.memory_space<vmem>>, vector<4x32xf32>
    tpu.vector_store %arg8[%c0_22, %c64], %55 {strides = array<i32>} : memref<4x128xf32, #tpu.memory_space<vmem>>, vector<4x32xf32>,
    %cst_23 = arith.constant 5.000000e-01 : f32
    %57 = vector.broadcast %cst_23 : f32 to vector<4x16xf32>
    %58 = arith.cmpf ogt, %53, %57 : vector<4x16xf32>
    %cst_24 = arith.constant -1.000000e+30 : f32
    %59 = vector.broadcast %cst_24 : f32 to vector<4x16xf32>
    %60 = arith.select %58, %59, %41 : vector<4x16xi1>, vector<4x16xf32>
    %cst_25 = arith.constant dense<0xFF800000> : vector<4xf32>
    %61 = vector.multi_reduction <maximumf>, %60, %cst_25 [1] : vector<4x16xf32> to vector<4xf32>
    %62 = vector.shape_cast %61 : vector<4xf32> to vector<4x1xf32>
    %63 = vector.broadcast %62 : vector<4x1xf32> to vector<4x16xf32>
    %64 = arith.cmpf oeq, %60, %63 : vector<4x16xf32>
    %cst_26 = arith.constant 1.600000e+01 : f32
    %65 = vector.broadcast %cst_26 : f32 to vector<4x16xf32>
    %66 = arith.select %64, %2, %65 : vector<4x16xi1>, vector<4x16xf32>
    %cst_27 = arith.constant dense<0x7F800000> : vector<4xf32>
    %67 = vector.multi_reduction <minimumf>, %66, %cst_27 [1] : vector<4x16xf32> to vector<4xf32>
    %68 = vector.shape_cast %67 : vector<4xf32> to vector<4x1xf32>
    %69 = vector.broadcast %68 : vector<4x1xf32> to vector<4x16xf32>
    %70 = arith.cmpf oeq, %2, %69 : vector<4x16xf32>
    %71 = arith.extui %70 : vector<4x16xi1> to vector<4x16xi32>
    %72 = arith.sitofp %71 : vector<4x16xi32> to vector<4x16xf32>
    %73 = arith.addf %54, %72 : vector<4x16xf32>
    %cst_28 = arith.constant dense<0.000000e+00> : vector<4x32xf32>
    %74 = tpu.matmul %72, %0, %cst_28 {dimension_numbers = #tpu.dot_dimension_numbers<[1], [0], [0], [1], [0, 0, 1, 1], [], []>} : vector<4x16xf32>, vector<16x32xf32>, vector<4x32xf32> -> vector<4x32xf32>
    %c0_29 = arith.constant 0 : index
    %c96 = arith.constant 96 : index
    %75 = vector.load %arg8[%c0_29, %c96] : memref<4x128xf32, #tpu.memory_space<vmem>>, vector<4x32xf32>
    tpu.vector_store %arg8[%c0_29, %c96], %74 {strides = array<i32>} : memref<4x128xf32, #tpu.memory_space<vmem>>, vector<4x32xf32>,
    %c8 = arith.constant 8 : index
    %c0_30 = arith.constant 0 : index
    %76 = vector.load %arg2[%c8, %c0_30] : memref<592x32xf32, #tpu.memory_space<vmem>>, vector<32x32xf32>
    %c1 = arith.constant 1 : index
    %c0_31 = arith.constant 0 : index
    %77 = vector.load %arg3[%c1, %c0_31] : memref<39x32xf32, #tpu.memory_space<vmem>>, vector<1x32xf32>
    %cst_32 = arith.constant dense<0.000000e+00> : vector<16x32xf32>
    %78 = tpu.matmul %0, %76, %cst_32 {dimension_numbers = #tpu.dot_dimension_numbers<[1], [0], [0], [1], [0, 0, 1, 1], [], []>} : vector<16x32xf32>, vector<32x32xf32>, vector<16x32xf32> -> vector<16x32xf32>
    %79 = vector.broadcast %77 : vector<1x32xf32> to vector<16x32xf32>
    %80 = arith.addf %78, %79 : vector<16x32xf32>
    %c7 = arith.constant 7 : index
    %c0_33 = arith.constant 0 : index
    %81 = vector.load %arg3[%c7, %c0_33] : memref<39x32xf32, #tpu.memory_space<vmem>>, vector<1x32xf32>
    %c8_34 = arith.constant 8 : index
    %c0_35 = arith.constant 0 : index
    %82 = vector.load %arg3[%c8_34, %c0_35] : memref<39x32xf32, #tpu.memory_space<vmem>>, vector<1x32xf32>
    %cst_36 = arith.constant dense<0.000000e+00> : vector<16xf32>
    %83 = vector.multi_reduction <add>, %80, %cst_36 [1] : vector<16x32xf32> to vector<16xf32>
    %84 = vector.shape_cast %83 : vector<16xf32> to vector<16x1xf32>
    %cst_37 = arith.constant 3.200000e+01 : f32
    %85 = vector.broadcast %cst_37 : f32 to vector<16x1xf32>
    %86 = arith.divf %84, %85 : vector<16x1xf32>
    %87 = vector.broadcast %86 : vector<16x1xf32> to vector<16x32xf32>
    %88 = arith.subf %80, %87 : vector<16x32xf32>
    %89 = arith.mulf %88, %88 : vector<16x32xf32>
    %cst_38 = arith.constant dense<0.000000e+00> : vector<16xf32>
    %90 = vector.multi_reduction <add>, %89, %cst_38 [1] : vector<16x32xf32> to vector<16xf32>
    %91 = vector.shape_cast %90 : vector<16xf32> to vector<16x1xf32>
    %cst_39 = arith.constant 3.200000e+01 : f32
    %92 = vector.broadcast %cst_39 : f32 to vector<16x1xf32>
    %93 = arith.divf %91, %92 : vector<16x1xf32>
    %94 = vector.broadcast %86 : vector<16x1xf32> to vector<16x32xf32>
    %95 = arith.subf %80, %94 : vector<16x32xf32>
    %cst_40 = arith.constant 9.99999974E-6 : f32
    %96 = vector.broadcast %cst_40 : f32 to vector<16x1xf32>
    %97 = arith.addf %93, %96 : vector<16x1xf32>
    %98 = math.rsqrt %97 : vector<16x1xf32>
    %99 = vector.broadcast %98 : vector<16x1xf32> to vector<16x32xf32>
    %100 = arith.mulf %95, %99 : vector<16x32xf32>
    %101 = vector.broadcast %81 : vector<1x32xf32> to vector<16x32xf32>
    %102 = arith.mulf %100, %101 : vector<16x32xf32>
    %103 = vector.broadcast %82 : vector<1x32xf32> to vector<16x32xf32>
    %104 = arith.addf %102, %103 : vector<16x32xf32>
    %c168 = arith.constant 168 : index
    %c0_41 = arith.constant 0 : index
    %105 = vector.load %arg2[%c168, %c0_41] : memref<592x32xf32, #tpu.memory_space<vmem>>, vector<32x32xf32>
    %c3 = arith.constant 3 : index
    %c0_42 = arith.constant 0 : index
    %106 = vector.load %arg3[%c3, %c0_42] : memref<39x32xf32, #tpu.memory_space<vmem>>, vector<1x32xf32>
    %cst_43 = arith.constant dense<0.000000e+00> : vector<16x32xf32>
    %107 = tpu.matmul %0, %105, %cst_43 {dimension_numbers = #tpu.dot_dimension_numbers<[1], [0], [0], [1], [0, 0, 1, 1], [], []>} : vector<16x32xf32>, vector<32x32xf32>, vector<16x32xf32> -> vector<16x32xf32>
    %108 = vector.broadcast %106 : vector<1x32xf32> to vector<16x32xf32>
    %109 = arith.addf %107, %108 : vector<16x32xf32>
    %c11 = arith.constant 11 : index
    %c0_44 = arith.constant 0 : index
    %110 = vector.load %arg3[%c11, %c0_44] : memref<39x32xf32, #tpu.memory_space<vmem>>, vector<1x32xf32>
    %c12 = arith.constant 12 : index
    %c0_45 = arith.constant 0 : index
    %111 = vector.load %arg3[%c12, %c0_45] : memref<39x32xf32, #tpu.memory_space<vmem>>, vector<1x32xf32>
    %cst_46 = arith.constant dense<0.000000e+00> : vector<16xf32>
    %112 = vector.multi_reduction <add>, %109, %cst_46 [1] : vector<16x32xf32> to vector<16xf32>
    %113 = vector.shape_cast %112 : vector<16xf32> to vector<16x1xf32>
    %cst_47 = arith.constant 3.200000e+01 : f32
    %114 = vector.broadcast %cst_47 : f32 to vector<16x1xf32>
    %115 = arith.divf %113, %114 : vector<16x1xf32>
    %116 = vector.broadcast %115 : vector<16x1xf32> to vector<16x32xf32>
    %117 = arith.subf %109, %116 : vector<16x32xf32>
    %118 = arith.mulf %117, %117 : vector<16x32xf32>
    %cst_48 = arith.constant dense<0.000000e+00> : vector<16xf32>
    %119 = vector.multi_reduction <add>, %118, %cst_48 [1] : vector<16x32xf32> to vector<16xf32>
    %120 = vector.shape_cast %119 : vector<16xf32> to vector<16x1xf32>
    %cst_49 = arith.constant 3.200000e+01 : f32
    %121 = vector.broadcast %cst_49 : f32 to vector<16x1xf32>
    %122 = arith.divf %120, %121 : vector<16x1xf32>
    %123 = vector.broadcast %115 : vector<16x1xf32> to vector<16x32xf32>
    %124 = arith.subf %109, %123 : vector<16x32xf32>
    %cst_50 = arith.constant 9.99999974E-6 : f32
    %125 = vector.broadcast %cst_50 : f32 to vector<16x1xf32>
    %126 = arith.addf %122, %125 : vector<16x1xf32>
    %127 = math.rsqrt %126 : vector<16x1xf32>
    %128 = vector.broadcast %127 : vector<16x1xf32> to vector<16x32xf32>
    %129 = arith.mulf %124, %128 : vector<16x32xf32>
    %130 = vector.broadcast %110 : vector<1x32xf32> to vector<16x32xf32>
    %131 = arith.mulf %129, %130 : vector<16x32xf32>
    %132 = vector.broadcast %111 : vector<1x32xf32> to vector<16x32xf32>
    %133 = arith.addf %131, %132 : vector<16x32xf32>
    %c0_51 = arith.constant 0 : index
    %c0_52 = arith.constant 0 : index
    %134 = vector.load %arg8[%c0_51, %c0_52] : memref<4x128xf32, #tpu.memory_space<vmem>>, vector<4x128xf32>
    %c40 = arith.constant 40 : index
    %c0_53 = arith.constant 0 : index
    %135 = vector.load %arg2[%c40, %c0_53] : memref<592x32xf32, #tpu.memory_space<vmem>>, vector<128x32xf32>
    %c2 = arith.constant 2 : index
    %c0_54 = arith.constant 0 : index
    %136 = vector.load %arg3[%c2, %c0_54] : memref<39x32xf32, #tpu.memory_space<vmem>>, vector<1x32xf32>
    %cst_55 = arith.constant dense<0.000000e+00> : vector<4x32xf32>
    %137 = tpu.matmul %134, %135, %cst_55 {dimension_numbers = #tpu.dot_dimension_numbers<[1], [0], [0], [1], [0, 0, 1, 1], [], []>} : vector<4x128xf32>, vector<128x32xf32>, vector<4x32xf32> -> vector<4x32xf32>
    %138 = vector.broadcast %136 : vector<1x32xf32> to vector<4x32xf32>
    %139 = arith.addf %137, %138 : vector<4x32xf32>
    %c9 = arith.constant 9 : index
    %c0_56 = arith.constant 0 : index
    %140 = vector.load %arg3[%c9, %c0_56] : memref<39x32xf32, #tpu.memory_space<vmem>>, vector<1x32xf32>
    %c10 = arith.constant 10 : index
    %c0_57 = arith.constant 0 : index
    %141 = vector.load %arg3[%c10, %c0_57] : memref<39x32xf32, #tpu.memory_space<vmem>>, vector<1x32xf32>
    %cst_58 = arith.constant dense<0.000000e+00> : vector<4xf32>
    %142 = vector.multi_reduction <add>, %139, %cst_58 [1] : vector<4x32xf32> to vector<4xf32>
    %143 = vector.shape_cast %142 : vector<4xf32> to vector<4x1xf32>
    %cst_59 = arith.constant 3.200000e+01 : f32
    %144 = vector.broadcast %cst_59 : f32 to vector<4x1xf32>
    %145 = arith.divf %143, %144 : vector<4x1xf32>
    %146 = vector.broadcast %145 : vector<4x1xf32> to vector<4x32xf32>
    %147 = arith.subf %139, %146 : vector<4x32xf32>
    %148 = arith.mulf %147, %147 : vector<4x32xf32>
    %cst_60 = arith.constant dense<0.000000e+00> : vector<4xf32>
    %149 = vector.multi_reduction <add>, %148, %cst_60 [1] : vector<4x32xf32> to vector<4xf32>
    %150 = vector.shape_cast %149 : vector<4xf32> to vector<4x1xf32>
    %cst_61 = arith.constant 3.200000e+01 : f32
    %151 = vector.broadcast %cst_61 : f32 to vector<4x1xf32>
    %152 = arith.divf %150, %151 : vector<4x1xf32>
    %153 = vector.broadcast %145 : vector<4x1xf32> to vector<4x32xf32>
    %154 = arith.subf %139, %153 : vector<4x32xf32>
    %cst_62 = arith.constant 9.99999974E-6 : f32
    %155 = vector.broadcast %cst_62 : f32 to vector<4x1xf32>
    %156 = arith.addf %152, %155 : vector<4x1xf32>
    %157 = math.rsqrt %156 : vector<4x1xf32>
    %158 = vector.broadcast %157 : vector<4x1xf32> to vector<4x32xf32>
    %159 = arith.mulf %154, %158 : vector<4x32xf32>
    %160 = vector.broadcast %140 : vector<1x32xf32> to vector<4x32xf32>
    %161 = arith.mulf %159, %160 : vector<4x32xf32>
    %162 = vector.broadcast %141 : vector<1x32xf32> to vector<4x32xf32>
    %163 = arith.addf %161, %162 : vector<4x32xf32>
    %164 = vector.extract_strided_slice %104 {offsets = [0, 0], sizes = [16, 16], strides = [1, 1]} : vector<16x32xf32> to vector<16x16xf32>
    %165 = vector.extract_strided_slice %163 {offsets = [0, 0], sizes = [4, 16], strides = [1, 1]} : vector<4x32xf32> to vector<4x16xf32>
    %166 = vector.extract_strided_slice %133 {offsets = [0, 0], sizes = [16, 16], strides = [1, 1]} : vector<16x32xf32> to vector<16x16xf32>
    %cst_63 = arith.constant dense<0.000000e+00> : vector<4x16xf32>
    %167 = tpu.matmul %165, %164, %cst_63 {dimension_numbers = #tpu.dot_dimension_numbers<[1], [1], [0], [0], [0, 0, 1, 0], [], []>} : vector<4x16xf32>, vector<16x16xf32>, vector<4x16xf32> -> vector<4x16xf32>
    %cst_64 = arith.constant 2.500000e-01 : f32
    %168 = vector.broadcast %cst_64 : f32 to vector<4x16xf32>
    %169 = arith.mulf %167, %168 : vector<4x16xf32>
    %cst_65 = arith.constant dense<0xFF800000> : vector<16xf32>
    %170 = vector.multi_reduction <maximumf>, %169, %cst_65 [0] : vector<4x16xf32> to vector<16xf32>
    %171 = vector.shape_cast %170 : vector<16xf32> to vector<1x16xf32>
    %172 = vector.broadcast %171 : vector<1x16xf32> to vector<4x16xf32>
    %173 = arith.subf %169, %172 : vector<4x16xf32>
    %174 = math.exp %173 : vector<4x16xf32>
    %cst_66 = arith.constant dense<0.000000e+00> : vector<16xf32>
    %175 = vector.multi_reduction <add>, %174, %cst_66 [0] : vector<4x16xf32> to vector<16xf32>
    %176 = vector.shape_cast %175 : vector<16xf32> to vector<1x16xf32>
    %177 = tpu.reciprocal %176 {approx = true} : vector<1x16xf32> -> vector<1x16xf32>
    %178 = vector.broadcast %177 : vector<1x16xf32> to vector<4x16xf32>
    %179 = arith.mulf %174, %178 : vector<4x16xf32>
    %c0_67 = arith.constant 0 : index
    %c0_68 = arith.constant 0 : index
    %c0_69 = arith.constant 0 : index
    %180 = vector.load %arg6[%c0_67, %c0_68, %c0_69] : memref<2x8x16xf32, #tpu.memory_space<vmem>>, vector<1x4x16xf32>
    %181 = vector.shape_cast %180 : vector<1x4x16xf32> to vector<4x16xf32>
    %182 = vector.shape_cast %179 : vector<4x16xf32> to vector<1x4x16xf32>
    tpu.vector_store %arg6[%c0_67, %c0_68, %c0_69], %182 {strides = array<i32>} : memref<2x8x16xf32, #tpu.memory_space<vmem>>, vector<1x4x16xf32>,
    %cst_70 = arith.constant dense<0.000000e+00> : vector<4x16xf32>
    %183 = tpu.matmul %179, %166, %cst_70 {dimension_numbers = #tpu.dot_dimension_numbers<[1], [0], [0], [1], [0, 0, 1, 1], [], []>} : vector<4x16xf32>, vector<16x16xf32>, vector<4x16xf32> -> vector<4x16xf32>
    %c0_71 = arith.constant 0 : index
    %c0_72 = arith.constant 0 : index
    %184 = vector.load %arg7[%c0_71, %c0_72] : memref<4x32xf32, #tpu.memory_space<vmem>>, vector<4x16xf32>
    tpu.vector_store %arg7[%c0_71, %c0_72], %183 {strides = array<i32>} : memref<4x32xf32, #tpu.memory_space<vmem>>, vector<4x16xf32>,
    %185 = vector.extract_strided_slice %104 {offsets = [0, 16], sizes = [16, 16], strides = [1, 1]} : vector<16x32xf32> to vector<16x16xf32>
    %186 = vector.extract_strided_slice %163 {offsets = [0, 16], sizes = [4, 16], strides = [1, 1]} : vector<4x32xf32> to vector<4x16xf32>
    %187 = vector.extract_strided_slice %133 {offsets = [0, 16], sizes = [16, 16], strides = [1, 1]} : vector<16x32xf32> to vector<16x16xf32>
    %cst_73 = arith.constant dense<0.000000e+00> : vector<4x16xf32>
    %188 = tpu.matmul %186, %185, %cst_73 {dimension_numbers = #tpu.dot_dimension_numbers<[1], [1], [0], [0], [0, 0, 1, 0], [], []>} : vector<4x16xf32>, vector<16x16xf32>, vector<4x16xf32> -> vector<4x16xf32>
    %cst_74 = arith.constant 2.500000e-01 : f32
    %189 = vector.broadcast %cst_74 : f32 to vector<4x16xf32>
    %190 = arith.mulf %188, %189 : vector<4x16xf32>
    %cst_75 = arith.constant dense<0xFF800000> : vector<16xf32>
    %191 = vector.multi_reduction <maximumf>, %190, %cst_75 [0] : vector<4x16xf32> to vector<16xf32>
    %192 = vector.shape_cast %191 : vector<16xf32> to vector<1x16xf32>
    %193 = vector.broadcast %192 : vector<1x16xf32> to vector<4x16xf32>
    %194 = arith.subf %190, %193 : vector<4x16xf32>
    %195 = math.exp %194 : vector<4x16xf32>
    %cst_76 = arith.constant dense<0.000000e+00> : vector<16xf32>
    %196 = vector.multi_reduction <add>, %195, %cst_76 [0] : vector<4x16xf32> to vector<16xf32>
    %197 = vector.shape_cast %196 : vector<16xf32> to vector<1x16xf32>
    %198 = tpu.reciprocal %197 {approx = true} : vector<1x16xf32> -> vector<1x16xf32>
    %199 = vector.broadcast %198 : vector<1x16xf32> to vector<4x16xf32>
    %200 = arith.mulf %195, %199 : vector<4x16xf32>
    %c0_77 = arith.constant 0 : index
    %c4 = arith.constant 4 : index
    %c0_78 = arith.constant 0 : index
    %201 = vector.load %arg6[%c0_77, %c4, %c0_78] : memref<2x8x16xf32, #tpu.memory_space<vmem>>, vector<1x4x16xf32>
    %202 = vector.shape_cast %201 : vector<1x4x16xf32> to vector<4x16xf32>
    %203 = vector.shape_cast %200 : vector<4x16xf32> to vector<1x4x16xf32>
    tpu.vector_store %arg6[%c0_77, %c4, %c0_78], %203 {strides = array<i32>} : memref<2x8x16xf32, #tpu.memory_space<vmem>>, vector<1x4x16xf32>,
    %cst_79 = arith.constant dense<0.000000e+00> : vector<4x16xf32>
    %204 = tpu.matmul %200, %187, %cst_79 {dimension_numbers = #tpu.dot_dimension_numbers<[1], [0], [0], [1], [0, 0, 1, 1], [], []>} : vector<4x16xf32>, vector<16x16xf32>, vector<4x16xf32> -> vector<4x16xf32>
    %c0_80 = arith.constant 0 : index
    %c16 = arith.constant 16 : index
    %205 = vector.load %arg7[%c0_80, %c16] : memref<4x32xf32, #tpu.memory_space<vmem>>, vector<4x16xf32>
    tpu.vector_store %arg7[%c0_80, %c16], %204 {strides = array<i32>} : memref<4x32xf32, #tpu.memory_space<vmem>>, vector<4x16xf32>,
    %c0_81 = arith.constant 0 : index
    %c0_82 = arith.constant 0 : index
    %206 = vector.load %arg7[%c0_81, %c0_82] : memref<4x32xf32, #tpu.memory_space<vmem>>, vector<4x32xf32>
    %c200 = arith.constant 200 : index
    %c0_83 = arith.constant 0 : index
    %207 = vector.load %arg2[%c200, %c0_83] : memref<592x32xf32, #tpu.memory_space<vmem>>, vector<32x32xf32>
    %c4_84 = arith.constant 4 : index
    %c0_85 = arith.constant 0 : index
    %208 = vector.load %arg3[%c4_84, %c0_85] : memref<39x32xf32, #tpu.memory_space<vmem>>, vector<1x32xf32>
    %cst_86 = arith.constant dense<0.000000e+00> : vector<4x32xf32>
    %209 = tpu.matmul %206, %207, %cst_86 {dimension_numbers = #tpu.dot_dimension_numbers<[1], [0], [0], [1], [0, 0, 1, 1], [], []>} : vector<4x32xf32>, vector<32x32xf32>, vector<4x32xf32> -> vector<4x32xf32>
    %210 = vector.broadcast %208 : vector<1x32xf32> to vector<4x32xf32>
    %211 = arith.addf %209, %210 : vector<4x32xf32>
    %c13 = arith.constant 13 : index
    %c0_87 = arith.constant 0 : index
    %212 = vector.load %arg3[%c13, %c0_87] : memref<39x32xf32, #tpu.memory_space<vmem>>, vector<1x32xf32>
    %c14 = arith.constant 14 : index
    %c0_88 = arith.constant 0 : index
    %213 = vector.load %arg3[%c14, %c0_88] : memref<39x32xf32, #tpu.memory_space<vmem>>, vector<1x32xf32>
    %cst_89 = arith.constant dense<0.000000e+00> : vector<4xf32>
    %214 = vector.multi_reduction <add>, %211, %cst_89 [1] : vector<4x32xf32> to vector<4xf32>
    %215 = vector.shape_cast %214 : vector<4xf32> to vector<4x1xf32>
    %cst_90 = arith.constant 3.200000e+01 : f32
    %216 = vector.broadcast %cst_90 : f32 to vector<4x1xf32>
    %217 = arith.divf %215, %216 : vector<4x1xf32>
    %218 = vector.broadcast %217 : vector<4x1xf32> to vector<4x32xf32>
    %219 = arith.subf %211, %218 : vector<4x32xf32>
    %220 = arith.mulf %219, %219 : vector<4x32xf32>
    %cst_91 = arith.constant dense<0.000000e+00> : vector<4xf32>
    %221 = vector.multi_reduction <add>, %220, %cst_91 [1] : vector<4x32xf32> to vector<4xf32>
    %222 = vector.shape_cast %221 : vector<4xf32> to vector<4x1xf32>
    %cst_92 = arith.constant 3.200000e+01 : f32
    %223 = vector.broadcast %cst_92 : f32 to vector<4x1xf32>
    %224 = arith.divf %222, %223 : vector<4x1xf32>
    %225 = vector.broadcast %217 : vector<4x1xf32> to vector<4x32xf32>
    %226 = arith.subf %211, %225 : vector<4x32xf32>
    %cst_93 = arith.constant 9.99999974E-6 : f32
    %227 = vector.broadcast %cst_93 : f32 to vector<4x1xf32>
    %228 = arith.addf %224, %227 : vector<4x1xf32>
    %229 = math.rsqrt %228 : vector<4x1xf32>
    %230 = vector.broadcast %229 : vector<4x1xf32> to vector<4x32xf32>
    %231 = arith.mulf %226, %230 : vector<4x32xf32>
    %232 = vector.broadcast %212 : vector<1x32xf32> to vector<4x32xf32>
    %233 = arith.mulf %231, %232 : vector<4x32xf32>
    %234 = vector.broadcast %213 : vector<1x32xf32> to vector<4x32xf32>
    %235 = arith.addf %233, %234 : vector<4x32xf32>
    %236 = tpu.transpose %73, [1, 0] : vector<4x16xf32> -> vector<16x4xf32>
    %cst_94 = arith.constant dense<0.000000e+00> : vector<16x32xf32>
    %237 = tpu.matmul %236, %235, %cst_94 {dimension_numbers = #tpu.dot_dimension_numbers<[1], [0], [0], [1], [0, 0, 1, 1], [], []>} : vector<16x4xf32>, vector<4x32xf32>, vector<16x32xf32> -> vector<16x32xf32>
    %238 = arith.addf %0, %237 : vector<16x32xf32>
    %c15 = arith.constant 15 : index
    %c0_95 = arith.constant 0 : index
    %239 = vector.load %arg3[%c15, %c0_95] : memref<39x32xf32, #tpu.memory_space<vmem>>, vector<1x32xf32>
    %c16_96 = arith.constant 16 : index
    %c0_97 = arith.constant 0 : index
    %240 = vector.load %arg3[%c16_96, %c0_97] : memref<39x32xf32, #tpu.memory_space<vmem>>, vector<1x32xf32>
    %cst_98 = arith.constant dense<0.000000e+00> : vector<16xf32>
    %241 = vector.multi_reduction <add>, %238, %cst_98 [1] : vector<16x32xf32> to vector<16xf32>
    %242 = vector.shape_cast %241 : vector<16xf32> to vector<16x1xf32>
    %cst_99 = arith.constant 3.200000e+01 : f32
    %243 = vector.broadcast %cst_99 : f32 to vector<16x1xf32>
    %244 = arith.divf %242, %243 : vector<16x1xf32>
    %245 = vector.broadcast %244 : vector<16x1xf32> to vector<16x32xf32>
    %246 = arith.subf %238, %245 : vector<16x32xf32>
    %247 = arith.mulf %246, %246 : vector<16x32xf32>
    %cst_100 = arith.constant dense<0.000000e+00> : vector<16xf32>
    %248 = vector.multi_reduction <add>, %247, %cst_100 [1] : vector<16x32xf32> to vector<16xf32>
    %249 = vector.shape_cast %248 : vector<16xf32> to vector<16x1xf32>
    %cst_101 = arith.constant 3.200000e+01 : f32
    %250 = vector.broadcast %cst_101 : f32 to vector<16x1xf32>
    %251 = arith.divf %249, %250 : vector<16x1xf32>
    %252 = vector.broadcast %244 : vector<16x1xf32> to vector<16x32xf32>
    %253 = arith.subf %238, %252 : vector<16x32xf32>
    %cst_102 = arith.constant 9.99999974E-6 : f32
    %254 = vector.broadcast %cst_102 : f32 to vector<16x1xf32>
    %255 = arith.addf %251, %254 : vector<16x1xf32>
    %256 = math.rsqrt %255 : vector<16x1xf32>
    %257 = vector.broadcast %256 : vector<16x1xf32> to vector<16x32xf32>
    %258 = arith.mulf %253, %257 : vector<16x32xf32>
    %259 = vector.broadcast %239 : vector<1x32xf32> to vector<16x32xf32>
    %260 = arith.mulf %258, %259 : vector<16x32xf32>
    %261 = vector.broadcast %240 : vector<1x32xf32> to vector<16x32xf32>
    %262 = arith.addf %260, %261 : vector<16x32xf32>
    %c232 = arith.constant 232 : index
    %c0_103 = arith.constant 0 : index
    %263 = vector.load %arg2[%c232, %c0_103] : memref<592x32xf32, #tpu.memory_space<vmem>>, vector<32x16xf32>
    %c5 = arith.constant 5 : index
    %c0_104 = arith.constant 0 : index
    %264 = vector.load %arg3[%c5, %c0_104] : memref<39x32xf32, #tpu.memory_space<vmem>>, vector<1x16xf32>
    %cst_105 = arith.constant dense<0.000000e+00> : vector<16x16xf32>
    %265 = tpu.matmul %262, %263, %cst_105 {dimension_numbers = #tpu.dot_dimension_numbers<[1], [0], [0], [1], [0, 0, 1, 1], [], []>} : vector<16x32xf32>, vector<32x16xf32>, vector<16x16xf32> -> vector<16x16xf32>
    %266 = vector.broadcast %264 : vector<1x16xf32> to vector<16x16xf32>
    %267 = arith.addf %265, %266 : vector<16x16xf32>
    %cst_106 = arith.constant 5.000000e-01 : f32
    %268 = vector.broadcast %cst_106 : f32 to vector<16x16xf32>
    %269 = arith.mulf %268, %267 : vector<16x16xf32>
    %cst_107 = arith.constant 0.707106769 : f32
    %270 = vector.broadcast %cst_107 : f32 to vector<16x16xf32>
    %271 = arith.mulf %267, %270 : vector<16x16xf32>
    %272 = math.erf %271 : vector<16x16xf32>
    %cst_108 = arith.constant 1.000000e+00 : f32
    %273 = vector.broadcast %cst_108 : f32 to vector<16x16xf32>
    %274 = arith.addf %273, %272 : vector<16x16xf32>
    %275 = arith.mulf %269, %274 : vector<16x16xf32>
    %c264 = arith.constant 264 : index
    %c0_109 = arith.constant 0 : index
    %276 = vector.load %arg2[%c264, %c0_109] : memref<592x32xf32, #tpu.memory_space<vmem>>, vector<16x32xf32>
    %c6 = arith.constant 6 : index
    %c0_110 = arith.constant 0 : index
    %277 = vector.load %arg3[%c6, %c0_110] : memref<39x32xf32, #tpu.memory_space<vmem>>, vector<1x32xf32>
    %cst_111 = arith.constant dense<0.000000e+00> : vector<16x32xf32>
    %278 = tpu.matmul %275, %276, %cst_111 {dimension_numbers = #tpu.dot_dimension_numbers<[1], [0], [0], [1], [0, 0, 1, 1], [], []>} : vector<16x16xf32>, vector<16x32xf32>, vector<16x32xf32> -> vector<16x32xf32>
    %279 = vector.broadcast %277 : vector<1x32xf32> to vector<16x32xf32>
    %280 = arith.addf %278, %279 : vector<16x32xf32>
    %281 = arith.addf %262, %280 : vector<16x32xf32>
    %c17 = arith.constant 17 : index
    %c0_112 = arith.constant 0 : index
    %282 = vector.load %arg3[%c17, %c0_112] : memref<39x32xf32, #tpu.memory_space<vmem>>, vector<1x32xf32>
    %c18 = arith.constant 18 : index
    %c0_113 = arith.constant 0 : index
    %283 = vector.load %arg3[%c18, %c0_113] : memref<39x32xf32, #tpu.memory_space<vmem>>, vector<1x32xf32>
    %cst_114 = arith.constant dense<0.000000e+00> : vector<16xf32>
    %284 = vector.multi_reduction <add>, %281, %cst_114 [1] : vector<16x32xf32> to vector<16xf32>
    %285 = vector.shape_cast %284 : vector<16xf32> to vector<16x1xf32>
    %cst_115 = arith.constant 3.200000e+01 : f32
    %286 = vector.broadcast %cst_115 : f32 to vector<16x1xf32>
    %287 = arith.divf %285, %286 : vector<16x1xf32>
    %288 = vector.broadcast %287 : vector<16x1xf32> to vector<16x32xf32>
    %289 = arith.subf %281, %288 : vector<16x32xf32>
    %290 = arith.mulf %289, %289 : vector<16x32xf32>
    %cst_116 = arith.constant dense<0.000000e+00> : vector<16xf32>
    %291 = vector.multi_reduction <add>, %290, %cst_116 [1] : vector<16x32xf32> to vector<16xf32>
    %292 = vector.shape_cast %291 : vector<16xf32> to vector<16x1xf32>
    %cst_117 = arith.constant 3.200000e+01 : f32
    %293 = vector.broadcast %cst_117 : f32 to vector<16x1xf32>
    %294 = arith.divf %292, %293 : vector<16x1xf32>
    %295 = vector.broadcast %287 : vector<16x1xf32> to vector<16x32xf32>
    %296 = arith.subf %281, %295 : vector<16x32xf32>
    %cst_118 = arith.constant 9.99999974E-6 : f32
    %297 = vector.broadcast %cst_118 : f32 to vector<16x1xf32>
    %298 = arith.addf %294, %297 : vector<16x1xf32>
    %299 = math.rsqrt %298 : vector<16x1xf32>
    %300 = vector.broadcast %299 : vector<16x1xf32> to vector<16x32xf32>
    %301 = arith.mulf %296, %300 : vector<16x32xf32>
    %302 = vector.broadcast %282 : vector<1x32xf32> to vector<16x32xf32>
    %303 = arith.mulf %301, %302 : vector<16x32xf32>
    %304 = vector.broadcast %283 : vector<1x32xf32> to vector<16x32xf32>
    %305 = arith.addf %303, %304 : vector<16x32xf32>
    %c280 = arith.constant 280 : index
    %c0_119 = arith.constant 0 : index
    %306 = vector.load %arg2[%c280, %c0_119] : memref<592x32xf32, #tpu.memory_space<vmem>>, vector<4x32xf32>
    %cst_120 = arith.constant dense<0.000000e+00> : vector<4x16xf32>
    %307 = tpu.matmul %306, %305, %cst_120 {dimension_numbers = #tpu.dot_dimension_numbers<[1], [1], [0], [0], [0, 0, 1, 0], [], []>} : vector<4x32xf32>, vector<16x32xf32>, vector<4x16xf32> -> vector<4x16xf32>
    %cst_121 = arith.constant dense<0.000000e+00> : vector<16x4xf32>
    %308 = tpu.matmul %305, %306, %cst_121 {dimension_numbers = #tpu.dot_dimension_numbers<[1], [1], [0], [0], [0, 0, 1, 0], [], []>} : vector<16x32xf32>, vector<4x32xf32>, vector<16x4xf32> -> vector<16x4xf32>
    %c19 = arith.constant 19 : index
    %c0_122 = arith.constant 0 : index
    %309 = vector.load %arg3[%c19, %c0_122] : memref<39x32xf32, #tpu.memory_space<vmem>>, vector<1x4xf32>
    %310 = vector.broadcast %309 : vector<1x4xf32> to vector<16x4xf32>
    %311 = arith.addf %308, %310 : vector<16x4xf32>
    %c0_123 = arith.constant 0 : index
    %c0_124 = arith.constant 0 : index
    %312 = vector.load %arg5[%c0_123, %c0_124] : memref<16x4xf32, #tpu.memory_space<vmem>>, vector<16x4xf32>
    tpu.vector_store %arg5[%c0_123, %c0_124], %311 {strides = array<i32>} : memref<16x4xf32, #tpu.memory_space<vmem>>, vector<16x4xf32>,
    %cst_125 = arith.constant dense<0xFF800000> : vector<4xf32>
    %313 = vector.multi_reduction <maximumf>, %307, %cst_125 [1] : vector<4x16xf32> to vector<4xf32>
    %314 = vector.shape_cast %313 : vector<4xf32> to vector<4x1xf32>
    %315 = vector.broadcast %314 : vector<4x1xf32> to vector<4x16xf32>
    %316 = arith.cmpf oeq, %307, %315 : vector<4x16xf32>
    %cst_126 = arith.constant 1.600000e+01 : f32
    %317 = vector.broadcast %cst_126 : f32 to vector<4x16xf32>
    %318 = arith.select %316, %2, %317 : vector<4x16xi1>, vector<4x16xf32>
    %cst_127 = arith.constant dense<0x7F800000> : vector<4xf32>
    %319 = vector.multi_reduction <minimumf>, %318, %cst_127 [1] : vector<4x16xf32> to vector<4xf32>
    %320 = vector.shape_cast %319 : vector<4xf32> to vector<4x1xf32>
    %321 = vector.broadcast %320 : vector<4x1xf32> to vector<4x16xf32>
    %322 = arith.cmpf oeq, %2, %321 : vector<4x16xf32>
    %323 = arith.extui %322 : vector<4x16xi1> to vector<4x16xi32>
    %324 = arith.sitofp %323 : vector<4x16xi32> to vector<4x16xf32>
    %cst_128 = arith.constant dense<0.000000e+00> : vector<4x32xf32>
    %325 = tpu.matmul %324, %305, %cst_128 {dimension_numbers = #tpu.dot_dimension_numbers<[1], [0], [0], [1], [0, 0, 1, 1], [], []>} : vector<4x16xf32>, vector<16x32xf32>, vector<4x32xf32> -> vector<4x32xf32>
    %c0_129 = arith.constant 0 : index
    %c0_130 = arith.constant 0 : index
    %326 = vector.load %arg8[%c0_129, %c0_130] : memref<4x128xf32, #tpu.memory_space<vmem>>, vector<4x32xf32>
    tpu.vector_store %arg8[%c0_129, %c0_130], %325 {strides = array<i32>} : memref<4x128xf32, #tpu.memory_space<vmem>>, vector<4x32xf32>,
    %cst_131 = arith.constant 5.000000e-01 : f32
    %327 = vector.broadcast %cst_131 : f32 to vector<4x16xf32>
    %328 = arith.cmpf ogt, %324, %327 : vector<4x16xf32>
    %cst_132 = arith.constant -1.000000e+30 : f32
    %329 = vector.broadcast %cst_132 : f32 to vector<4x16xf32>
    %330 = arith.select %328, %329, %307 : vector<4x16xi1>, vector<4x16xf32>
    %cst_133 = arith.constant dense<0xFF800000> : vector<4xf32>
    %331 = vector.multi_reduction <maximumf>, %330, %cst_133 [1] : vector<4x16xf32> to vector<4xf32>
    %332 = vector.shape_cast %331 : vector<4xf32> to vector<4x1xf32>
    %333 = vector.broadcast %332 : vector<4x1xf32> to vector<4x16xf32>
    %334 = arith.cmpf oeq, %330, %333 : vector<4x16xf32>
    %cst_134 = arith.constant 1.600000e+01 : f32
    %335 = vector.broadcast %cst_134 : f32 to vector<4x16xf32>
    %336 = arith.select %334, %2, %335 : vector<4x16xi1>, vector<4x16xf32>
    %cst_135 = arith.constant dense<0x7F800000> : vector<4xf32>
    %337 = vector.multi_reduction <minimumf>, %336, %cst_135 [1] : vector<4x16xf32> to vector<4xf32>
    %338 = vector.shape_cast %337 : vector<4xf32> to vector<4x1xf32>
    %339 = vector.broadcast %338 : vector<4x1xf32> to vector<4x16xf32>
    %340 = arith.cmpf oeq, %2, %339 : vector<4x16xf32>
    %341 = arith.extui %340 : vector<4x16xi1> to vector<4x16xi32>
    %342 = arith.sitofp %341 : vector<4x16xi32> to vector<4x16xf32>
    %343 = arith.addf %324, %342 : vector<4x16xf32>
    %cst_136 = arith.constant dense<0.000000e+00> : vector<4x32xf32>
    %344 = tpu.matmul %342, %305, %cst_136 {dimension_numbers = #tpu.dot_dimension_numbers<[1], [0], [0], [1], [0, 0, 1, 1], [], []>} : vector<4x16xf32>, vector<16x32xf32>, vector<4x32xf32> -> vector<4x32xf32>
    %c0_137 = arith.constant 0 : index
    %c32_138 = arith.constant 32 : index
    %345 = vector.load %arg8[%c0_137, %c32_138] : memref<4x128xf32, #tpu.memory_space<vmem>>, vector<4x32xf32>
    tpu.vector_store %arg8[%c0_137, %c32_138], %344 {strides = array<i32>} : memref<4x128xf32, #tpu.memory_space<vmem>>, vector<4x32xf32>,
    %cst_139 = arith.constant 5.000000e-01 : f32
    %346 = vector.broadcast %cst_139 : f32 to vector<4x16xf32>
    %347 = arith.cmpf ogt, %342, %346 : vector<4x16xf32>
    %cst_140 = arith.constant -1.000000e+30 : f32
    %348 = vector.broadcast %cst_140 : f32 to vector<4x16xf32>
    %349 = arith.select %347, %348, %330 : vector<4x16xi1>, vector<4x16xf32>
    %cst_141 = arith.constant dense<0xFF800000> : vector<4xf32>
    %350 = vector.multi_reduction <maximumf>, %349, %cst_141 [1] : vector<4x16xf32> to vector<4xf32>
    %351 = vector.shape_cast %350 : vector<4xf32> to vector<4x1xf32>
    %352 = vector.broadcast %351 : vector<4x1xf32> to vector<4x16xf32>
    %353 = arith.cmpf oeq, %349, %352 : vector<4x16xf32>
    %cst_142 = arith.constant 1.600000e+01 : f32
    %354 = vector.broadcast %cst_142 : f32 to vector<4x16xf32>
    %355 = arith.select %353, %2, %354 : vector<4x16xi1>, vector<4x16xf32>
    %cst_143 = arith.constant dense<0x7F800000> : vector<4xf32>
    %356 = vector.multi_reduction <minimumf>, %355, %cst_143 [1] : vector<4x16xf32> to vector<4xf32>
    %357 = vector.shape_cast %356 : vector<4xf32> to vector<4x1xf32>
    %358 = vector.broadcast %357 : vector<4x1xf32> to vector<4x16xf32>
    %359 = arith.cmpf oeq, %2, %358 : vector<4x16xf32>
    %360 = arith.extui %359 : vector<4x16xi1> to vector<4x16xi32>
    %361 = arith.sitofp %360 : vector<4x16xi32> to vector<4x16xf32>
    %362 = arith.addf %343, %361 : vector<4x16xf32>
    %cst_144 = arith.constant dense<0.000000e+00> : vector<4x32xf32>
    %363 = tpu.matmul %361, %305, %cst_144 {dimension_numbers = #tpu.dot_dimension_numbers<[1], [0], [0], [1], [0, 0, 1, 1], [], []>} : vector<4x16xf32>, vector<16x32xf32>, vector<4x32xf32> -> vector<4x32xf32>
    %c0_145 = arith.constant 0 : index
    %c64_146 = arith.constant 64 : index
    %364 = vector.load %arg8[%c0_145, %c64_146] : memref<4x128xf32, #tpu.memory_space<vmem>>, vector<4x32xf32>
    tpu.vector_store %arg8[%c0_145, %c64_146], %363 {strides = array<i32>} : memref<4x128xf32, #tpu.memory_space<vmem>>, vector<4x32xf32>,
    %cst_147 = arith.constant 5.000000e-01 : f32
    %365 = vector.broadcast %cst_147 : f32 to vector<4x16xf32>
    %366 = arith.cmpf ogt, %361, %365 : vector<4x16xf32>
    %cst_148 = arith.constant -1.000000e+30 : f32
    %367 = vector.broadcast %cst_148 : f32 to vector<4x16xf32>
    %368 = arith.select %366, %367, %349 : vector<4x16xi1>, vector<4x16xf32>
    %cst_149 = arith.constant dense<0xFF800000> : vector<4xf32>
    %369 = vector.multi_reduction <maximumf>, %368, %cst_149 [1] : vector<4x16xf32> to vector<4xf32>
    %370 = vector.shape_cast %369 : vector<4xf32> to vector<4x1xf32>
    %371 = vector.broadcast %370 : vector<4x1xf32> to vector<4x16xf32>
    %372 = arith.cmpf oeq, %368, %371 : vector<4x16xf32>
    %cst_150 = arith.constant 1.600000e+01 : f32
    %373 = vector.broadcast %cst_150 : f32 to vector<4x16xf32>
    %374 = arith.select %372, %2, %373 : vector<4x16xi1>, vector<4x16xf32>
    %cst_151 = arith.constant dense<0x7F800000> : vector<4xf32>
    %375 = vector.multi_reduction <minimumf>, %374, %cst_151 [1] : vector<4x16xf32> to vector<4xf32>
    %376 = vector.shape_cast %375 : vector<4xf32> to vector<4x1xf32>
    %377 = vector.broadcast %376 : vector<4x1xf32> to vector<4x16xf32>
    %378 = arith.cmpf oeq, %2, %377 : vector<4x16xf32>
    %379 = arith.extui %378 : vector<4x16xi1> to vector<4x16xi32>
    %380 = arith.sitofp %379 : vector<4x16xi32> to vector<4x16xf32>
    %381 = arith.addf %362, %380 : vector<4x16xf32>
    %cst_152 = arith.constant dense<0.000000e+00> : vector<4x32xf32>
    %382 = tpu.matmul %380, %305, %cst_152 {dimension_numbers = #tpu.dot_dimension_numbers<[1], [0], [0], [1], [0, 0, 1, 1], [], []>} : vector<4x16xf32>, vector<16x32xf32>, vector<4x32xf32> -> vector<4x32xf32>
    %c0_153 = arith.constant 0 : index
    %c96_154 = arith.constant 96 : index
    %383 = vector.load %arg8[%c0_153, %c96_154] : memref<4x128xf32, #tpu.memory_space<vmem>>, vector<4x32xf32>
    tpu.vector_store %arg8[%c0_153, %c96_154], %382 {strides = array<i32>} : memref<4x128xf32, #tpu.memory_space<vmem>>, vector<4x32xf32>,
    %c288 = arith.constant 288 : index
    %c0_155 = arith.constant 0 : index
    %384 = vector.load %arg2[%c288, %c0_155] : memref<592x32xf32, #tpu.memory_space<vmem>>, vector<32x32xf32>
    %c20 = arith.constant 20 : index
    %c0_156 = arith.constant 0 : index
    %385 = vector.load %arg3[%c20, %c0_156] : memref<39x32xf32, #tpu.memory_space<vmem>>, vector<1x32xf32>
    %cst_157 = arith.constant dense<0.000000e+00> : vector<16x32xf32>
    %386 = tpu.matmul %305, %384, %cst_157 {dimension_numbers = #tpu.dot_dimension_numbers<[1], [0], [0], [1], [0, 0, 1, 1], [], []>} : vector<16x32xf32>, vector<32x32xf32>, vector<16x32xf32> -> vector<16x32xf32>
    %387 = vector.broadcast %385 : vector<1x32xf32> to vector<16x32xf32>
    %388 = arith.addf %386, %387 : vector<16x32xf32>
    %c26 = arith.constant 26 : index
    %c0_158 = arith.constant 0 : index
    %389 = vector.load %arg3[%c26, %c0_158] : memref<39x32xf32, #tpu.memory_space<vmem>>, vector<1x32xf32>
    %c27 = arith.constant 27 : index
    %c0_159 = arith.constant 0 : index
    %390 = vector.load %arg3[%c27, %c0_159] : memref<39x32xf32, #tpu.memory_space<vmem>>, vector<1x32xf32>
    %cst_160 = arith.constant dense<0.000000e+00> : vector<16xf32>
    %391 = vector.multi_reduction <add>, %388, %cst_160 [1] : vector<16x32xf32> to vector<16xf32>
    %392 = vector.shape_cast %391 : vector<16xf32> to vector<16x1xf32>
    %cst_161 = arith.constant 3.200000e+01 : f32
    %393 = vector.broadcast %cst_161 : f32 to vector<16x1xf32>
    %394 = arith.divf %392, %393 : vector<16x1xf32>
    %395 = vector.broadcast %394 : vector<16x1xf32> to vector<16x32xf32>
    %396 = arith.subf %388, %395 : vector<16x32xf32>
    %397 = arith.mulf %396, %396 : vector<16x32xf32>
    %cst_162 = arith.constant dense<0.000000e+00> : vector<16xf32>
    %398 = vector.multi_reduction <add>, %397, %cst_162 [1] : vector<16x32xf32> to vector<16xf32>
    %399 = vector.shape_cast %398 : vector<16xf32> to vector<16x1xf32>
    %cst_163 = arith.constant 3.200000e+01 : f32
    %400 = vector.broadcast %cst_163 : f32 to vector<16x1xf32>
    %401 = arith.divf %399, %400 : vector<16x1xf32>
    %402 = vector.broadcast %394 : vector<16x1xf32> to vector<16x32xf32>
    %403 = arith.subf %388, %402 : vector<16x32xf32>
    %cst_164 = arith.constant 9.99999974E-6 : f32
    %404 = vector.broadcast %cst_164 : f32 to vector<16x1xf32>
    %405 = arith.addf %401, %404 : vector<16x1xf32>
    %406 = math.rsqrt %405 : vector<16x1xf32>
    %407 = vector.broadcast %406 : vector<16x1xf32> to vector<16x32xf32>
    %408 = arith.mulf %403, %407 : vector<16x32xf32>
    %409 = vector.broadcast %389 : vector<1x32xf32> to vector<16x32xf32>
    %410 = arith.mulf %408, %409 : vector<16x32xf32>
    %411 = vector.broadcast %390 : vector<1x32xf32> to vector<16x32xf32>
    %412 = arith.addf %410, %411 : vector<16x32xf32>
    %c448 = arith.constant 448 : index
    %c0_165 = arith.constant 0 : index
    %413 = vector.load %arg2[%c448, %c0_165] : memref<592x32xf32, #tpu.memory_space<vmem>>, vector<32x32xf32>
    %c22 = arith.constant 22 : index
    %c0_166 = arith.constant 0 : index
    %414 = vector.load %arg3[%c22, %c0_166] : memref<39x32xf32, #tpu.memory_space<vmem>>, vector<1x32xf32>
    %cst_167 = arith.constant dense<0.000000e+00> : vector<16x32xf32>
    %415 = tpu.matmul %305, %413, %cst_167 {dimension_numbers = #tpu.dot_dimension_numbers<[1], [0], [0], [1], [0, 0, 1, 1], [], []>} : vector<16x32xf32>, vector<32x32xf32>, vector<16x32xf32> -> vector<16x32xf32>
    %416 = vector.broadcast %414 : vector<1x32xf32> to vector<16x32xf32>
    %417 = arith.addf %415, %416 : vector<16x32xf32>
    %c30 = arith.constant 30 : index
    %c0_168 = arith.constant 0 : index
    %418 = vector.load %arg3[%c30, %c0_168] : memref<39x32xf32, #tpu.memory_space<vmem>>, vector<1x32xf32>
    %c31 = arith.constant 31 : index
    %c0_169 = arith.constant 0 : index
    %419 = vector.load %arg3[%c31, %c0_169] : memref<39x32xf32, #tpu.memory_space<vmem>>, vector<1x32xf32>
    %cst_170 = arith.constant dense<0.000000e+00> : vector<16xf32>
    %420 = vector.multi_reduction <add>, %417, %cst_170 [1] : vector<16x32xf32> to vector<16xf32>
    %421 = vector.shape_cast %420 : vector<16xf32> to vector<16x1xf32>
    %cst_171 = arith.constant 3.200000e+01 : f32
    %422 = vector.broadcast %cst_171 : f32 to vector<16x1xf32>
    %423 = arith.divf %421, %422 : vector<16x1xf32>
    %424 = vector.broadcast %423 : vector<16x1xf32> to vector<16x32xf32>
    %425 = arith.subf %417, %424 : vector<16x32xf32>
    %426 = arith.mulf %425, %425 : vector<16x32xf32>
    %cst_172 = arith.constant dense<0.000000e+00> : vector<16xf32>
    %427 = vector.multi_reduction <add>, %426, %cst_172 [1] : vector<16x32xf32> to vector<16xf32>
    %428 = vector.shape_cast %427 : vector<16xf32> to vector<16x1xf32>
    %cst_173 = arith.constant 3.200000e+01 : f32
    %429 = vector.broadcast %cst_173 : f32 to vector<16x1xf32>
    %430 = arith.divf %428, %429 : vector<16x1xf32>
    %431 = vector.broadcast %423 : vector<16x1xf32> to vector<16x32xf32>
    %432 = arith.subf %417, %431 : vector<16x32xf32>
    %cst_174 = arith.constant 9.99999974E-6 : f32
    %433 = vector.broadcast %cst_174 : f32 to vector<16x1xf32>
    %434 = arith.addf %430, %433 : vector<16x1xf32>
    %435 = math.rsqrt %434 : vector<16x1xf32>
    %436 = vector.broadcast %435 : vector<16x1xf32> to vector<16x32xf32>
    %437 = arith.mulf %432, %436 : vector<16x32xf32>
    %438 = vector.broadcast %418 : vector<1x32xf32> to vector<16x32xf32>
    %439 = arith.mulf %437, %438 : vector<16x32xf32>
    %440 = vector.broadcast %419 : vector<1x32xf32> to vector<16x32xf32>
    %441 = arith.addf %439, %440 : vector<16x32xf32>
    %c0_175 = arith.constant 0 : index
    %c0_176 = arith.constant 0 : index
    %442 = vector.load %arg8[%c0_175, %c0_176] : memref<4x128xf32, #tpu.memory_space<vmem>>, vector<4x128xf32>
    %c320 = arith.constant 320 : index
    %c0_177 = arith.constant 0 : index
    %443 = vector.load %arg2[%c320, %c0_177] : memref<592x32xf32, #tpu.memory_space<vmem>>, vector<128x32xf32>
    %c21 = arith.constant 21 : index
    %c0_178 = arith.constant 0 : index
    %444 = vector.load %arg3[%c21, %c0_178] : memref<39x32xf32, #tpu.memory_space<vmem>>, vector<1x32xf32>
    %cst_179 = arith.constant dense<0.000000e+00> : vector<4x32xf32>
    %445 = tpu.matmul %442, %443, %cst_179 {dimension_numbers = #tpu.dot_dimension_numbers<[1], [0], [0], [1], [0, 0, 1, 1], [], []>} : vector<4x128xf32>, vector<128x32xf32>, vector<4x32xf32> -> vector<4x32xf32>
    %446 = vector.broadcast %444 : vector<1x32xf32> to vector<4x32xf32>
    %447 = arith.addf %445, %446 : vector<4x32xf32>
    %c28 = arith.constant 28 : index
    %c0_180 = arith.constant 0 : index
    %448 = vector.load %arg3[%c28, %c0_180] : memref<39x32xf32, #tpu.memory_space<vmem>>, vector<1x32xf32>
    %c29 = arith.constant 29 : index
    %c0_181 = arith.constant 0 : index
    %449 = vector.load %arg3[%c29, %c0_181] : memref<39x32xf32, #tpu.memory_space<vmem>>, vector<1x32xf32>
    %cst_182 = arith.constant dense<0.000000e+00> : vector<4xf32>
    %450 = vector.multi_reduction <add>, %447, %cst_182 [1] : vector<4x32xf32> to vector<4xf32>
    %451 = vector.shape_cast %450 : vector<4xf32> to vector<4x1xf32>
    %cst_183 = arith.constant 3.200000e+01 : f32
    %452 = vector.broadcast %cst_183 : f32 to vector<4x1xf32>
    %453 = arith.divf %451, %452 : vector<4x1xf32>
    %454 = vector.broadcast %453 : vector<4x1xf32> to vector<4x32xf32>
    %455 = arith.subf %447, %454 : vector<4x32xf32>
    %456 = arith.mulf %455, %455 : vector<4x32xf32>
    %cst_184 = arith.constant dense<0.000000e+00> : vector<4xf32>
    %457 = vector.multi_reduction <add>, %456, %cst_184 [1] : vector<4x32xf32> to vector<4xf32>
    %458 = vector.shape_cast %457 : vector<4xf32> to vector<4x1xf32>
    %cst_185 = arith.constant 3.200000e+01 : f32
    %459 = vector.broadcast %cst_185 : f32 to vector<4x1xf32>
    %460 = arith.divf %458, %459 : vector<4x1xf32>
    %461 = vector.broadcast %453 : vector<4x1xf32> to vector<4x32xf32>
    %462 = arith.subf %447, %461 : vector<4x32xf32>
    %cst_186 = arith.constant 9.99999974E-6 : f32
    %463 = vector.broadcast %cst_186 : f32 to vector<4x1xf32>
    %464 = arith.addf %460, %463 : vector<4x1xf32>
    %465 = math.rsqrt %464 : vector<4x1xf32>
    %466 = vector.broadcast %465 : vector<4x1xf32> to vector<4x32xf32>
    %467 = arith.mulf %462, %466 : vector<4x32xf32>
    %468 = vector.broadcast %448 : vector<1x32xf32> to vector<4x32xf32>
    %469 = arith.mulf %467, %468 : vector<4x32xf32>
    %470 = vector.broadcast %449 : vector<1x32xf32> to vector<4x32xf32>
    %471 = arith.addf %469, %470 : vector<4x32xf32>
    %472 = vector.extract_strided_slice %412 {offsets = [0, 0], sizes = [16, 16], strides = [1, 1]} : vector<16x32xf32> to vector<16x16xf32>
    %473 = vector.extract_strided_slice %471 {offsets = [0, 0], sizes = [4, 16], strides = [1, 1]} : vector<4x32xf32> to vector<4x16xf32>
    %474 = vector.extract_strided_slice %441 {offsets = [0, 0], sizes = [16, 16], strides = [1, 1]} : vector<16x32xf32> to vector<16x16xf32>
    %cst_187 = arith.constant dense<0.000000e+00> : vector<4x16xf32>
    %475 = tpu.matmul %473, %472, %cst_187 {dimension_numbers = #tpu.dot_dimension_numbers<[1], [1], [0], [0], [0, 0, 1, 0], [], []>} : vector<4x16xf32>, vector<16x16xf32>, vector<4x16xf32> -> vector<4x16xf32>
    %cst_188 = arith.constant 2.500000e-01 : f32
    %476 = vector.broadcast %cst_188 : f32 to vector<4x16xf32>
    %477 = arith.mulf %475, %476 : vector<4x16xf32>
    %cst_189 = arith.constant dense<0xFF800000> : vector<16xf32>
    %478 = vector.multi_reduction <maximumf>, %477, %cst_189 [0] : vector<4x16xf32> to vector<16xf32>
    %479 = vector.shape_cast %478 : vector<16xf32> to vector<1x16xf32>
    %480 = vector.broadcast %479 : vector<1x16xf32> to vector<4x16xf32>
    %481 = arith.subf %477, %480 : vector<4x16xf32>
    %482 = math.exp %481 : vector<4x16xf32>
    %cst_190 = arith.constant dense<0.000000e+00> : vector<16xf32>
    %483 = vector.multi_reduction <add>, %482, %cst_190 [0] : vector<4x16xf32> to vector<16xf32>
    %484 = vector.shape_cast %483 : vector<16xf32> to vector<1x16xf32>
    %485 = tpu.reciprocal %484 {approx = true} : vector<1x16xf32> -> vector<1x16xf32>
    %486 = vector.broadcast %485 : vector<1x16xf32> to vector<4x16xf32>
    %487 = arith.mulf %482, %486 : vector<4x16xf32>
    %c1_191 = arith.constant 1 : index
    %c0_192 = arith.constant 0 : index
    %c0_193 = arith.constant 0 : index
    %488 = vector.load %arg6[%c1_191, %c0_192, %c0_193] : memref<2x8x16xf32, #tpu.memory_space<vmem>>, vector<1x4x16xf32>
    %489 = vector.shape_cast %488 : vector<1x4x16xf32> to vector<4x16xf32>
    %490 = vector.shape_cast %487 : vector<4x16xf32> to vector<1x4x16xf32>
    tpu.vector_store %arg6[%c1_191, %c0_192, %c0_193], %490 {strides = array<i32>} : memref<2x8x16xf32, #tpu.memory_space<vmem>>, vector<1x4x16xf32>,
    %cst_194 = arith.constant dense<0.000000e+00> : vector<4x16xf32>
    %491 = tpu.matmul %487, %474, %cst_194 {dimension_numbers = #tpu.dot_dimension_numbers<[1], [0], [0], [1], [0, 0, 1, 1], [], []>} : vector<4x16xf32>, vector<16x16xf32>, vector<4x16xf32> -> vector<4x16xf32>
    %c0_195 = arith.constant 0 : index
    %c0_196 = arith.constant 0 : index
    %492 = vector.load %arg7[%c0_195, %c0_196] : memref<4x32xf32, #tpu.memory_space<vmem>>, vector<4x16xf32>
    tpu.vector_store %arg7[%c0_195, %c0_196], %491 {strides = array<i32>} : memref<4x32xf32, #tpu.memory_space<vmem>>, vector<4x16xf32>,
    %493 = vector.extract_strided_slice %412 {offsets = [0, 16], sizes = [16, 16], strides = [1, 1]} : vector<16x32xf32> to vector<16x16xf32>
    %494 = vector.extract_strided_slice %471 {offsets = [0, 16], sizes = [4, 16], strides = [1, 1]} : vector<4x32xf32> to vector<4x16xf32>
    %495 = vector.extract_strided_slice %441 {offsets = [0, 16], sizes = [16, 16], strides = [1, 1]} : vector<16x32xf32> to vector<16x16xf32>
    %cst_197 = arith.constant dense<0.000000e+00> : vector<4x16xf32>
    %496 = tpu.matmul %494, %493, %cst_197 {dimension_numbers = #tpu.dot_dimension_numbers<[1], [1], [0], [0], [0, 0, 1, 0], [], []>} : vector<4x16xf32>, vector<16x16xf32>, vector<4x16xf32> -> vector<4x16xf32>
    %cst_198 = arith.constant 2.500000e-01 : f32
    %497 = vector.broadcast %cst_198 : f32 to vector<4x16xf32>
    %498 = arith.mulf %496, %497 : vector<4x16xf32>
    %cst_199 = arith.constant dense<0xFF800000> : vector<16xf32>
    %499 = vector.multi_reduction <maximumf>, %498, %cst_199 [0] : vector<4x16xf32> to vector<16xf32>
    %500 = vector.shape_cast %499 : vector<16xf32> to vector<1x16xf32>
    %501 = vector.broadcast %500 : vector<1x16xf32> to vector<4x16xf32>
    %502 = arith.subf %498, %501 : vector<4x16xf32>
    %503 = math.exp %502 : vector<4x16xf32>
    %cst_200 = arith.constant dense<0.000000e+00> : vector<16xf32>
    %504 = vector.multi_reduction <add>, %503, %cst_200 [0] : vector<4x16xf32> to vector<16xf32>
    %505 = vector.shape_cast %504 : vector<16xf32> to vector<1x16xf32>
    %506 = tpu.reciprocal %505 {approx = true} : vector<1x16xf32> -> vector<1x16xf32>
    %507 = vector.broadcast %506 : vector<1x16xf32> to vector<4x16xf32>
    %508 = arith.mulf %503, %507 : vector<4x16xf32>
    %c1_201 = arith.constant 1 : index
    %c4_202 = arith.constant 4 : index
    %c0_203 = arith.constant 0 : index
    %509 = vector.load %arg6[%c1_201, %c4_202, %c0_203] : memref<2x8x16xf32, #tpu.memory_space<vmem>>, vector<1x4x16xf32>
    %510 = vector.shape_cast %509 : vector<1x4x16xf32> to vector<4x16xf32>
    %511 = vector.shape_cast %508 : vector<4x16xf32> to vector<1x4x16xf32>
    tpu.vector_store %arg6[%c1_201, %c4_202, %c0_203], %511 {strides = array<i32>} : memref<2x8x16xf32, #tpu.memory_space<vmem>>, vector<1x4x16xf32>,
    %cst_204 = arith.constant dense<0.000000e+00> : vector<4x16xf32>
    %512 = tpu.matmul %508, %495, %cst_204 {dimension_numbers = #tpu.dot_dimension_numbers<[1], [0], [0], [1], [0, 0, 1, 1], [], []>} : vector<4x16xf32>, vector<16x16xf32>, vector<4x16xf32> -> vector<4x16xf32>
    %c0_205 = arith.constant 0 : index
    %c16_206 = arith.constant 16 : index
    %513 = vector.load %arg7[%c0_205, %c16_206] : memref<4x32xf32, #tpu.memory_space<vmem>>, vector<4x16xf32>
    tpu.vector_store %arg7[%c0_205, %c16_206], %512 {strides = array<i32>} : memref<4x32xf32, #tpu.memory_space<vmem>>, vector<4x16xf32>,
    %c0_207 = arith.constant 0 : index
    %c0_208 = arith.constant 0 : index
    %514 = vector.load %arg7[%c0_207, %c0_208] : memref<4x32xf32, #tpu.memory_space<vmem>>, vector<4x32xf32>
    %c480 = arith.constant 480 : index
    %c0_209 = arith.constant 0 : index
    %515 = vector.load %arg2[%c480, %c0_209] : memref<592x32xf32, #tpu.memory_space<vmem>>, vector<32x32xf32>
    %c23 = arith.constant 23 : index
    %c0_210 = arith.constant 0 : index
    %516 = vector.load %arg3[%c23, %c0_210] : memref<39x32xf32, #tpu.memory_space<vmem>>, vector<1x32xf32>
    %cst_211 = arith.constant dense<0.000000e+00> : vector<4x32xf32>
    %517 = tpu.matmul %514, %515, %cst_211 {dimension_numbers = #tpu.dot_dimension_numbers<[1], [0], [0], [1], [0, 0, 1, 1], [], []>} : vector<4x32xf32>, vector<32x32xf32>, vector<4x32xf32> -> vector<4x32xf32>
    %518 = vector.broadcast %516 : vector<1x32xf32> to vector<4x32xf32>
    %519 = arith.addf %517, %518 : vector<4x32xf32>
    %c32_212 = arith.constant 32 : index
    %c0_213 = arith.constant 0 : index
    %520 = vector.load %arg3[%c32_212, %c0_213] : memref<39x32xf32, #tpu.memory_space<vmem>>, vector<1x32xf32>
    %c33 = arith.constant 33 : index
    %c0_214 = arith.constant 0 : index
    %521 = vector.load %arg3[%c33, %c0_214] : memref<39x32xf32, #tpu.memory_space<vmem>>, vector<1x32xf32>
    %cst_215 = arith.constant dense<0.000000e+00> : vector<4xf32>
    %522 = vector.multi_reduction <add>, %519, %cst_215 [1] : vector<4x32xf32> to vector<4xf32>
    %523 = vector.shape_cast %522 : vector<4xf32> to vector<4x1xf32>
    %cst_216 = arith.constant 3.200000e+01 : f32
    %524 = vector.broadcast %cst_216 : f32 to vector<4x1xf32>
    %525 = arith.divf %523, %524 : vector<4x1xf32>
    %526 = vector.broadcast %525 : vector<4x1xf32> to vector<4x32xf32>
    %527 = arith.subf %519, %526 : vector<4x32xf32>
    %528 = arith.mulf %527, %527 : vector<4x32xf32>
    %cst_217 = arith.constant dense<0.000000e+00> : vector<4xf32>
    %529 = vector.multi_reduction <add>, %528, %cst_217 [1] : vector<4x32xf32> to vector<4xf32>
    %530 = vector.shape_cast %529 : vector<4xf32> to vector<4x1xf32>
    %cst_218 = arith.constant 3.200000e+01 : f32
    %531 = vector.broadcast %cst_218 : f32 to vector<4x1xf32>
    %532 = arith.divf %530, %531 : vector<4x1xf32>
    %533 = vector.broadcast %525 : vector<4x1xf32> to vector<4x32xf32>
    %534 = arith.subf %519, %533 : vector<4x32xf32>
    %cst_219 = arith.constant 9.99999974E-6 : f32
    %535 = vector.broadcast %cst_219 : f32 to vector<4x1xf32>
    %536 = arith.addf %532, %535 : vector<4x1xf32>
    %537 = math.rsqrt %536 : vector<4x1xf32>
    %538 = vector.broadcast %537 : vector<4x1xf32> to vector<4x32xf32>
    %539 = arith.mulf %534, %538 : vector<4x32xf32>
    %540 = vector.broadcast %520 : vector<1x32xf32> to vector<4x32xf32>
    %541 = arith.mulf %539, %540 : vector<4x32xf32>
    %542 = vector.broadcast %521 : vector<1x32xf32> to vector<4x32xf32>
    %543 = arith.addf %541, %542 : vector<4x32xf32>
    %544 = tpu.transpose %381, [1, 0] : vector<4x16xf32> -> vector<16x4xf32>
    %cst_220 = arith.constant dense<0.000000e+00> : vector<16x32xf32>
    %545 = tpu.matmul %544, %543, %cst_220 {dimension_numbers = #tpu.dot_dimension_numbers<[1], [0], [0], [1], [0, 0, 1, 1], [], []>} : vector<16x4xf32>, vector<4x32xf32>, vector<16x32xf32> -> vector<16x32xf32>
    %546 = arith.addf %305, %545 : vector<16x32xf32>
    %c34 = arith.constant 34 : index
    %c0_221 = arith.constant 0 : index
    %547 = vector.load %arg3[%c34, %c0_221] : memref<39x32xf32, #tpu.memory_space<vmem>>, vector<1x32xf32>
    %c35 = arith.constant 35 : index
    %c0_222 = arith.constant 0 : index
    %548 = vector.load %arg3[%c35, %c0_222] : memref<39x32xf32, #tpu.memory_space<vmem>>, vector<1x32xf32>
    %cst_223 = arith.constant dense<0.000000e+00> : vector<16xf32>
    %549 = vector.multi_reduction <add>, %546, %cst_223 [1] : vector<16x32xf32> to vector<16xf32>
    %550 = vector.shape_cast %549 : vector<16xf32> to vector<16x1xf32>
    %cst_224 = arith.constant 3.200000e+01 : f32
    %551 = vector.broadcast %cst_224 : f32 to vector<16x1xf32>
    %552 = arith.divf %550, %551 : vector<16x1xf32>
    %553 = vector.broadcast %552 : vector<16x1xf32> to vector<16x32xf32>
    %554 = arith.subf %546, %553 : vector<16x32xf32>
    %555 = arith.mulf %554, %554 : vector<16x32xf32>
    %cst_225 = arith.constant dense<0.000000e+00> : vector<16xf32>
    %556 = vector.multi_reduction <add>, %555, %cst_225 [1] : vector<16x32xf32> to vector<16xf32>
    %557 = vector.shape_cast %556 : vector<16xf32> to vector<16x1xf32>
    %cst_226 = arith.constant 3.200000e+01 : f32
    %558 = vector.broadcast %cst_226 : f32 to vector<16x1xf32>
    %559 = arith.divf %557, %558 : vector<16x1xf32>
    %560 = vector.broadcast %552 : vector<16x1xf32> to vector<16x32xf32>
    %561 = arith.subf %546, %560 : vector<16x32xf32>
    %cst_227 = arith.constant 9.99999974E-6 : f32
    %562 = vector.broadcast %cst_227 : f32 to vector<16x1xf32>
    %563 = arith.addf %559, %562 : vector<16x1xf32>
    %564 = math.rsqrt %563 : vector<16x1xf32>
    %565 = vector.broadcast %564 : vector<16x1xf32> to vector<16x32xf32>
    %566 = arith.mulf %561, %565 : vector<16x32xf32>
    %567 = vector.broadcast %547 : vector<1x32xf32> to vector<16x32xf32>
    %568 = arith.mulf %566, %567 : vector<16x32xf32>
    %569 = vector.broadcast %548 : vector<1x32xf32> to vector<16x32xf32>
    %570 = arith.addf %568, %569 : vector<16x32xf32>
    %c512 = arith.constant 512 : index
    %c0_228 = arith.constant 0 : index
    %571 = vector.load %arg2[%c512, %c0_228] : memref<592x32xf32, #tpu.memory_space<vmem>>, vector<32x16xf32>
    %c24 = arith.constant 24 : index
    %c0_229 = arith.constant 0 : index
    %572 = vector.load %arg3[%c24, %c0_229] : memref<39x32xf32, #tpu.memory_space<vmem>>, vector<1x16xf32>
    %cst_230 = arith.constant dense<0.000000e+00> : vector<16x16xf32>
    %573 = tpu.matmul %570, %571, %cst_230 {dimension_numbers = #tpu.dot_dimension_numbers<[1], [0], [0], [1], [0, 0, 1, 1], [], []>} : vector<16x32xf32>, vector<32x16xf32>, vector<16x16xf32> -> vector<16x16xf32>
    %574 = vector.broadcast %572 : vector<1x16xf32> to vector<16x16xf32>
    %575 = arith.addf %573, %574 : vector<16x16xf32>
    %cst_231 = arith.constant 5.000000e-01 : f32
    %576 = vector.broadcast %cst_231 : f32 to vector<16x16xf32>
    %577 = arith.mulf %576, %575 : vector<16x16xf32>
    %cst_232 = arith.constant 0.707106769 : f32
    %578 = vector.broadcast %cst_232 : f32 to vector<16x16xf32>
    %579 = arith.mulf %575, %578 : vector<16x16xf32>
    %580 = math.erf %579 : vector<16x16xf32>
    %cst_233 = arith.constant 1.000000e+00 : f32
    %581 = vector.broadcast %cst_233 : f32 to vector<16x16xf32>
    %582 = arith.addf %581, %580 : vector<16x16xf32>
    %583 = arith.mulf %577, %582 : vector<16x16xf32>
    %c544 = arith.constant 544 : index
    %c0_234 = arith.constant 0 : index
    %584 = vector.load %arg2[%c544, %c0_234] : memref<592x32xf32, #tpu.memory_space<vmem>>, vector<16x32xf32>
    %c25 = arith.constant 25 : index
    %c0_235 = arith.constant 0 : index
    %585 = vector.load %arg3[%c25, %c0_235] : memref<39x32xf32, #tpu.memory_space<vmem>>, vector<1x32xf32>
    %cst_236 = arith.constant dense<0.000000e+00> : vector<16x32xf32>
    %586 = tpu.matmul %583, %584, %cst_236 {dimension_numbers = #tpu.dot_dimension_numbers<[1], [0], [0], [1], [0, 0, 1, 1], [], []>} : vector<16x16xf32>, vector<16x32xf32>, vector<16x32xf32> -> vector<16x32xf32>
    %587 = vector.broadcast %585 : vector<1x32xf32> to vector<16x32xf32>
    %588 = arith.addf %586, %587 : vector<16x32xf32>
    %589 = arith.addf %570, %588 : vector<16x32xf32>
    %c36 = arith.constant 36 : index
    %c0_237 = arith.constant 0 : index
    %590 = vector.load %arg3[%c36, %c0_237] : memref<39x32xf32, #tpu.memory_space<vmem>>, vector<1x32xf32>
    %c37 = arith.constant 37 : index
    %c0_238 = arith.constant 0 : index
    %591 = vector.load %arg3[%c37, %c0_238] : memref<39x32xf32, #tpu.memory_space<vmem>>, vector<1x32xf32>
    %cst_239 = arith.constant dense<0.000000e+00> : vector<16xf32>
    %592 = vector.multi_reduction <add>, %589, %cst_239 [1] : vector<16x32xf32> to vector<16xf32>
    %593 = vector.shape_cast %592 : vector<16xf32> to vector<16x1xf32>
    %cst_240 = arith.constant 3.200000e+01 : f32
    %594 = vector.broadcast %cst_240 : f32 to vector<16x1xf32>
    %595 = arith.divf %593, %594 : vector<16x1xf32>
    %596 = vector.broadcast %595 : vector<16x1xf32> to vector<16x32xf32>
    %597 = arith.subf %589, %596 : vector<16x32xf32>
    %598 = arith.mulf %597, %597 : vector<16x32xf32>
    %cst_241 = arith.constant dense<0.000000e+00> : vector<16xf32>
    %599 = vector.multi_reduction <add>, %598, %cst_241 [1] : vector<16x32xf32> to vector<16xf32>
    %600 = vector.shape_cast %599 : vector<16xf32> to vector<16x1xf32>
    %cst_242 = arith.constant 3.200000e+01 : f32
    %601 = vector.broadcast %cst_242 : f32 to vector<16x1xf32>
    %602 = arith.divf %600, %601 : vector<16x1xf32>
    %603 = vector.broadcast %595 : vector<16x1xf32> to vector<16x32xf32>
    %604 = arith.subf %589, %603 : vector<16x32xf32>
    %cst_243 = arith.constant 9.99999974E-6 : f32
    %605 = vector.broadcast %cst_243 : f32 to vector<16x1xf32>
    %606 = arith.addf %602, %605 : vector<16x1xf32>
    %607 = math.rsqrt %606 : vector<16x1xf32>
    %608 = vector.broadcast %607 : vector<16x1xf32> to vector<16x32xf32>
    %609 = arith.mulf %604, %608 : vector<16x32xf32>
    %610 = vector.broadcast %590 : vector<1x32xf32> to vector<16x32xf32>
    %611 = arith.mulf %609, %610 : vector<16x32xf32>
    %612 = vector.broadcast %591 : vector<1x32xf32> to vector<16x32xf32>
    %613 = arith.addf %611, %612 : vector<16x32xf32>
    %c560 = arith.constant 560 : index
    %c0_244 = arith.constant 0 : index
    %614 = vector.load %arg2[%c560, %c0_244] : memref<592x32xf32, #tpu.memory_space<vmem>>, vector<32x4xf32>
    %c38 = arith.constant 38 : index
    %c0_245 = arith.constant 0 : index
    %615 = vector.load %arg3[%c38, %c0_245] : memref<39x32xf32, #tpu.memory_space<vmem>>, vector<1x4xf32>
    %cst_246 = arith.constant dense<0.000000e+00> : vector<16x4xf32>
    %616 = tpu.matmul %613, %614, %cst_246 {dimension_numbers = #tpu.dot_dimension_numbers<[1], [0], [0], [1], [0, 0, 1, 1], [], []>} : vector<16x32xf32>, vector<32x4xf32>, vector<16x4xf32> -> vector<16x4xf32>
    %617 = vector.broadcast %615 : vector<1x4xf32> to vector<16x4xf32>
    %618 = arith.addf %616, %617 : vector<16x4xf32>
    %cst_247 = arith.constant dense<0.000000e+00> : vector<4xf32>
    %619 = vector.multi_reduction <add>, %618, %cst_247 [0] : vector<16x4xf32> to vector<4xf32>
    %620 = vector.shape_cast %619 : vector<4xf32> to vector<1x4xf32>
    %cst_248 = arith.constant 1.600000e+01 : f32
    %621 = vector.broadcast %cst_248 : f32 to vector<1x4xf32>
    %622 = arith.divf %620, %621 : vector<1x4xf32>
    %c0_249 = arith.constant 0 : index
    %c0_250 = arith.constant 0 : index
    %623 = vector.load %arg4[%c0_249, %c0_250] : memref<1x4xf32, #tpu.memory_space<vmem>>, vector<1x4xf32>
    tpu.vector_store %arg4[%c0_249, %c0_250], %622 {strides = array<i32>} : memref<1x4xf32, #tpu.memory_space<vmem>>, vector<1x4xf32>,
    return
  }
  func.func @transform_0(%arg0: i32) -> (i32, i32) {
    %c0_i32 = arith.constant 0 : i32
    %c0_i32_0 = arith.constant 0 : i32
    %c0_i32_1 = arith.constant 0 : i32
    return %c0_i32, %c0_i32_0 : i32, i32
  }
  func.func @transform_1(%arg0: i32) -> (i32, i32) {
    %c0_i32 = arith.constant 0 : i32
    %c0_i32_0 = arith.constant 0 : i32
    %c0_i32_1 = arith.constant 0 : i32
    return %c0_i32, %c0_i32_0 : i32, i32
  }
  func.func @transform_2(%arg0: i32) -> (i32, i32) {
    %c0_i32 = arith.constant 0 : i32
    %c0_i32_0 = arith.constant 0 : i32
    %c0_i32_1 = arith.constant 0 : i32
    return %c0_i32, %c0_i32_0 : i32, i32
  }
  func.func @transform_3(%arg0: i32) -> (i32, i32) {
    %c0_i32 = arith.constant 0 : i32
    %c0_i32_0 = arith.constant 0 : i32
    %c0_i32_1 = arith.constant 0 : i32
    return %c0_i32, %c0_i32_0 : i32, i32
  }
  func.func @transform_4(%arg0: i32) -> (i32, i32) {
    %c0_i32 = arith.constant 0 : i32
    %c0_i32_0 = arith.constant 0 : i32
    %c0_i32_1 = arith.constant 0 : i32
    return %c0_i32, %c0_i32_0 : i32, i32
  }
  func.func @transform_5(%arg0: i32) -> (i32, i32, i32) {
    %c0_i32 = arith.constant 0 : i32
    %c0_i32_0 = arith.constant 0 : i32
    %c0_i32_1 = arith.constant 0 : i32
    %c0_i32_2 = arith.constant 0 : i32
    return %c0_i32, %c0_i32_0, %c0_i32_1 : i32, i32, i32
  }
}

</mosaic_0001>

<bundles_post_ra>
// kernel: cf_transformer_forward.1
= control target key start
LH: loop header
LB: loop body
LE: loop exit
PB: predicated region body
PF: predicated region fallthrough
CT: control target
= control target key end

     0   :  { %11 = vsyncpa [#allocation5], 0  ;;  %vm25_vm0 = vcmask 261120   ;;  %v4499_v2 = vmov 0.0|0.0   ;;  %vm4500_vm2 = vmmov 0   ;;  %v4501_v5 = vmov 0.0   ;;  %s5246_s0 = inlined_call_operand.vmem [shape: f32[16,32], index: 0, kind: input, shape index: {}]   ;;  %s5247_s1 = inlined_call_operand.vmem [shape: f32[592,32], index: 1, kind: input, shape index: {}]   ;;  %s5248_s2 = inlined_call_operand.vmem [shape: f32[39,32], index: 2, kind: input, shape index: {}]   ;;  %s5249_s3 = inlined_call_operand.hbm [shape: f32[1,4], index: 3, kind: output, shape index: {0}]   ;;  %s5250_s4 = inlined_call_operand.vmem [shape: f32[16,4], index: 4, kind: output, shape index: {1}]   ;;  %s5251_s5 = inlined_call_operand.hbm [shape: f32[2,8,16], index: 5, kind: output, shape index: {2}]  }
   0x1   :  { %v4544_v0 = vld [vmem:[%s5246_s0] sm:$0xff]  ;;  %v4549_v1 = vld [vmem:[%s5246_s0 + $0x8] sm:$0xff]  ;;  %4171 = vmatprep.subr.bf16.mxu0 %v4499_v2  ;;  %vm4556_vm1 = vmpackc.low %vm25_vm0, %vm25_vm0  ;;  %3851 = vmatprep.mubr.msk.f32.mxu0 %vm4500_vm2, %v4501_v5 }
   0x2   :  { %v4172_v3 = vpack.c.bf16 %v4549_v1, %v4544_v0  ;;  %4175 = vmatprep.subr.bf16.mxu1 %v4499_v2  ;;  %3858 = vmatprep.mubr.msk.f32.mxu1 %vm4500_vm2, %v4501_v5 }
   0x3   :  { %12 = vsyncpa [#allocation7], 0  ;;  %v24_v6 = vld [vmem:[%s5247_s1] sm:$0xf]  ;;  %vm105_vm3 = vcmask 125952   ;;  %v21_v10 = vlaneseq  ;;  %vm117_vm5 = vcmask 130048  }
   0x4   :  { %4174 = vmatpush3.bf16.xpose.msk.msra.mxu0 %vm4556_vm1, %v4172_v3  ;;  %4177 = vmatpush3.bf16.msra.mxu1 %v4172_v3  ;;  %vm191_vm9 = vcmask 257024   ;;  %s4502_s23 = smov 32   ;;  %v472_v40 = vld [vmem:[%s5247_s1 + $0x8] sm:$0xff]  ;;  %v473_v41 = vld [vmem:[%s5247_s1 + $0x10] sm:$0xff]  ;;  %v474_v42 = vld [vmem:[%s5247_s1 + $0x18] sm:$0xff]  ;;  %s4503_s7 = smov 64  }
   0x5   :  { %4178 = vmatprep.subr.bf16.mxu1 %v4499_v2  ;;  %4181 = vmatprep.subr.bf16.mxu0 %v4499_v2  ;;  %v22_v11 = vand.u32 127, %v21_v10  ;;  %v4187_v43 = vpack.c.bf16 %v473_v41, %v472_v40  ;;  %v475_v44 = vld [vmem:[%s5247_s1 + $0x20] sm:$0xff]  ;;  %v597_v60 = vld [vmem:[%s5247_s1 + $0xa8] sm:$0xff]  ;;  %v598_v61 = vld [vmem:[%s5247_s1 + $0xb0] sm:$0xff]  ;;  %s4504_s26 = smov 96   ;;  %s4505_s11 = smov 112  }
   0x6   :  { %v4191_v45 = vpack.c.bf16 %v475_v44, %v474_v42  ;;  %v4637_v57 = vld [vmem:[%s5248_s2 + $0x1] ss:$0 sm:$0xff]  ;;  %v599_v62 = vld [vmem:[%s5247_s1 + $0xb8] sm:$0xff]  ;;  %v4195_v63 = vpack.c.bf16 %v598_v61, %v597_v60  ;;  %v3601_v42 = vld [vmem:[%s5248_s2 + $0x3] ss:$0 sm:$0xff]  ;;  %s4506_s29 = smov 16  }
   0x7   :  { %v4576_v12 = vcvt.s32.f32 %v22_v11  ;;  %v724_v10 = vld [vmem:[%s5247_s1 + $0x38] sm:$0xff]  ;;  %v725_v11 = vld [vmem:[%s5247_s1 + $0x40] sm:$0xff] }
   0xb   :  { %3852 = vmatmul.mubr.msk.f32.vlgmr.msra.gmra.mrb[0].mxu0 %vm25_vm0, %v24_v6  ;;  %v722_v6 = vld [vmem:[%s5247_s1 + $0x28] sm:$0xff] }
   0xc   :  { %4183 = vmatpush3.bf16.msra.mxu0 %v4172_v3  ;;  %3872 = vmatprep.mubr.msk.f32.mxu0 %vm4500_vm2, %v4501_v5 }
   0xd   :  { %4188 = vmatprep.subr.bf16.mxu0 %v4187_v43 }
  0xde   :  { %v101_v7 = vpop.f32.mrb[0].mxu0 }
  0xdf   :  { %v3853_v8 = vpop.f32.mrb[1].mxu0  ;;  %v106_v9 = vsel %vm105_vm3, %v101_v7, -inf }
  0xe0   :  { %107 = vmax.xlane.f32.xlu0 %v106_v9 }
 0x16d   :  { %v108_v13 = vpop.xlane.xlu0 %107 }
 0x16e   :  { %vm109_vm4 = vcmp.eq.f32.partialorder %v101_v7, %v108_v13  ;;  %v4207_v13 = vpack.c.bf16 %v725_v11, %v724_v10 }
 0x16f   :  { %v110_v14 = vsel %vm109_vm4, %v4576_v12, 16.0  ;;  %vm284_vm4 = vcmask 519424  }
 0x170   :  { %v111_v15 = vsel %vm105_vm3, %v110_v14, inf  ;;  %v726_v14 = vld [vmem:[%s5247_s1 + $0x48] sm:$0xff] }
 0x171   :  { %112 = vmin.xlane.f32.xlu0 %v111_v15  ;;  %v727_v15 = vld [vmem:[%s5247_s1 + $0x50] sm:$0xff] }
 0x1fe   :  { %v113_v16 = vpop.xlane.xlu0 %112 }
 0x1ff   :  { %vm114_vm6 = vcmp.eq.f32.partialorder %v4576_v12, %v113_v16  ;;  %v4210_v16 = vpack.c.bf16 %v727_v15, %v726_v14 }
 0x200   :  { %v3588_v17 = vsel %vm114_vm6, 1.0, %v4501_v5 }
 0x201   :  { %3859 = vmatmul.mubr.msk.f32.vlgmr.msra.gmra.mrb[0].mxu1 %vm117_vm5, %v3588_v17  ;;  %vm193_vm7 = vcmp.gt.f32.partialorder %v3588_v17, 0.5 }
 0x202   :  { %v194_v18 = vsel %vm193_vm7, -1e+30, %v101_v7  ;;  %4180 = vmatpush3.bf16.msra.mxu1 %v4172_v3  ;;  %3865 = vmatprep.mubr.msk.f32.mxu1 %vm4500_vm2, %v4501_v5  ;;  %vm377_vm7 = vcmask 781824   ;;  %v723_v7 = vld [vmem:[%s5247_s1 + $0x30] sm:$0xff] }
 0x203   :  { %v195_v19 = vsel %vm105_vm3, %v194_v18, -inf  ;;  %4184 = vmatprep.subr.bf16.mxu1 %v4499_v2  ;;  %v4204_v9 = vpack.c.bf16 %v723_v7, %v722_v6 }
 0x204   :  { %196 = vmax.xlane.f32.xlu1 %v195_v19 }
 0x291   :  { %v197_v20 = vpop.xlane.xlu1 %196 }
 0x292   :  { %vm198_vm8 = vcmp.eq.f32.partialorder %v194_v18, %v197_v20  ;;  %v730_v20 = vld [vmem:[%s5247_s1 + $0x68] sm:$0xff] }
 0x293   :  { %v199_v21 = vsel %vm198_vm8, %v4576_v12, 16.0  ;;  %vm470_vm8 = vcmask 1044224  }
 0x294   :  { %v200_v22 = vsel %vm105_vm3, %v199_v21, inf  ;;  %v731_v21 = vld [vmem:[%s5247_s1 + $0x70] sm:$0xff] }
 0x295   :  { %201 = vmin.xlane.f32.xlu1 %v200_v22  ;;  %v4216_v22 = vpack.c.bf16 %v731_v21, %v730_v20 }
 0x2d4   :  { %v187_v23 = vpop.f32.mrb[0].mxu1 }
 0x2d5   :  { %192 = vst.msk [vmem:[#allocation3] sm:$0xf] %vm191_vm9, %v187_v23  ;;  %v3860_v24 = vpop.f32.mrb[1].mxu1  ;;  %v732_v23 = vld [vmem:[%s5247_s1 + $0x78] sm:$0xff] }
 0x2d6   :  { %v733_v24 = vld [vmem:[%s5247_s1 + $0x80] sm:$0xff] }
 0x322   :  { %v202_v25 = vpop.xlane.xlu1 %201 }
 0x323   :  { %vm203_vm10 = vcmp.eq.f32.partialorder %v4576_v12, %v202_v25  ;;  %v4219_v25 = vpack.c.bf16 %v733_v24, %v732_v23 }
 0x324   :  { %v3590_v26 = vsel %vm203_vm10, 1.0, %v4501_v5  ;;  %vm4745_vm10 = vmpackc.low %vm117_vm5, %vm117_vm5 }
 0x325   :  { %3866 = vmatmul.mubr.msk.f32.vlgmr.msra.gmra.mrb[2].mxu1 %vm117_vm5, %v3590_v26  ;;  %vm286_vm11 = vcmp.gt.f32.partialorder %v3590_v26, 0.5  ;;  %v206_v35 = vadd.f32 %v3590_v26, %v3588_v17  ;;  %v728_v17 = vld [vmem:[%s5247_s1 + $0x58] sm:$0xff]  ;;  %v734_v26 = vld [vmem:[%s5247_s1 + $0x88] sm:$0xff] }
 0x326   :  { %v287_v27 = vsel %vm286_vm11, -1e+30, %v194_v18  ;;  %4186 = vmatpush3.bf16.msra.mxu1 %v4172_v3  ;;  %3879 = vmatprep.mubr.msk.f32.mxu1 %vm4500_vm2, %v4501_v5  ;;  %v600_v3 = vld [vmem:[%s5247_s1 + $0xc0] sm:$0xff]  ;;  %vm1200_vm11 = vcmask 257152  }
 0x327   :  { %v288_v28 = vsel %vm105_vm3, %v287_v27, -inf  ;;  %v4199_v8 = vpack.c.bf16 %v600_v3, %v599_v62  ;;  %4196 = vmatprep.subr.bf16.mxu1 %v4195_v63  ;;  %v729_v18 = vld [vmem:[%s5247_s1 + $0x60] sm:$0xff] }
 0x328   :  { %289 = vmax.xlane.f32.xlu0 %v288_v28  ;;  %v4213_v19 = vpack.c.bf16 %v729_v18, %v728_v17 }
 0x3b5   :  { %v290_v29 = vpop.xlane.xlu0 %289 }
 0x3b6   :  { %vm291_vm12 = vcmp.eq.f32.partialorder %v287_v27, %v290_v29  ;;  %v736_v29 = vld [vmem:[%s5247_s1 + $0x98] sm:$0xff] }
 0x3b7   :  { %v292_v30 = vsel %vm291_vm12, %v4576_v12, 16.0  ;;  %vm1349_vm12 = vcmask 1043456  }
 0x3b8   :  { %v293_v31 = vsel %vm105_vm3, %v292_v30, inf  ;;  %v737_v30 = vld [vmem:[%s5247_s1 + $0xa0] sm:$0xff] }
 0x3b9   :  { %294 = vmin.xlane.f32.xlu1 %v293_v31  ;;  %v4225_v31 = vpack.c.bf16 %v737_v30, %v736_v29 }
 0x3f8   :  { %v276_v32 = vpop.f32.mrb[2].mxu1 }
 0x3f9   :  { %v3867_v33 = vpop.f32.mrb[3].mxu1 }
 0x446   :  { %v295_v34 = vpop.xlane.xlu1 %294 }
 0x447   :  { %vm296_vm13 = vcmp.eq.f32.partialorder %v4576_v12, %v295_v34 }
 0x448   :  { %v3592_v36 = vsel %vm296_vm13, 1.0, %v4501_v5  ;;  %vm1342_vm13 = vcmask 31744  }
 0x449   :  { %3873 = vmatmul.mubr.msk.f32.vlgmr.msra.gmra.mrb[2].mxu0 %vm117_vm5, %v3592_v36  ;;  %vm379_vm14 = vcmp.gt.f32.partialorder %v3592_v36, 0.5  ;;  %v299_v37 = vadd.f32 %v3592_v36, %v206_v35 }
 0x44a   :  { %v380_v38 = vsel %vm379_vm14, -1e+30, %v287_v27  ;;  %3890 = vmatprep.mubr.msk.f32.mxu0 %vm25_vm0, %v4544_v0  ;;  %4190 = vmatpush3.bf16.msra.mxu0 %v4187_v43  ;;  %v735_v27 = vld [vmem:[%s5247_s1 + $0x90] sm:$0xff] }
 0x44b   :  { %v381_v39 = vsel %vm105_vm3, %v380_v38, -inf  ;;  %4192 = vmatprep.subr.bf16.mxu0 %v4191_v45  ;;  %v4222_v28 = vpack.c.bf16 %v735_v27, %v734_v26  ;;  %v3600_v26 = vld [vmem:[%s5248_s2 + $0x8] ss:$0 sm:$0xff] }
 0x44c   :  { %382 = vmax.xlane.f32.xlu0 %v381_v39 }
 0x44e   :  { %4194 = vmatpush3.bf16.msra.mxu0 %v4191_v45 }
 0x44f   :  { %4203 = vmatprep.subr.bf16.mxu0 %v4499_v2 }
 0x451   :  { %3891 = vmatmul.mubr.msk.f32.vlgmr.msra.gmra.mrb[4].mxu0 %vm25_vm0, %v4549_v1 }
 0x452   :  { %3936 = vmatprep.mubr.msk.f32.mxu0 %vm4500_vm2, %v4501_v5  ;;  %4205 = vmatpush3.bf16.msra.mxu0 %v4204_v9 }
 0x453   :  { %4206 = vmatprep.subr.bf16.mxu0 %v4499_v2 }
 0x456   :  { %4208 = vmatpush3.bf16.msra.mxu0 %v4207_v13 }
 0x457   :  { %4209 = vmatprep.subr.bf16.mxu0 %v4499_v2 }
 0x45a   :  { %4211 = vmatpush3.bf16.msra.mxu0 %v4210_v16 }
 0x45b   :  { %4212 = vmatprep.subr.bf16.mxu0 %v4499_v2 }
 0x45e   :  { %4214 = vmatpush3.bf16.msra.mxu0 %v4213_v19 }
 0x45f   :  { %4215 = vmatprep.subr.bf16.mxu0 %v4499_v2 }
 0x462   :  { %281 = vrot.lane.b32.xlu0 %v276_v32, %s4502_s23  ;;  %4217 = vmatpush3.bf16.msra.mxu0 %v4216_v22  ;;  %v3599_v22 = vld [vmem:[%s5248_s2 + $0x7] ss:$0 sm:$0xff] }
 0x463   :  { %4218 = vmatprep.subr.bf16.mxu0 %v4499_v2 }
 0x466   :  { %4220 = vmatpush3.bf16.msra.mxu0 %v4219_v25 }
 0x467   :  { %4221 = vmatprep.subr.bf16.mxu0 %v4499_v2 }
 0x46a   :  { %4223 = vmatpush3.bf16.msra.mxu0 %v4222_v28 }
 0x46b   :  { %4224 = vmatprep.subr.bf16.mxu0 %v4499_v2 }
 0x46e   :  { %4226 = vmatpush3.bf16.msra.mxu0 %v4225_v31 }
 0x4d9   :  { %v383_v46 = vpop.xlane.xlu0 %382 }
 0x4da   :  { %vm384_vm15 = vcmp.eq.f32.partialorder %v380_v38, %v383_v46 }
 0x4db   :  { %v385_v47 = vsel %vm384_vm15, %v4576_v12, 16.0 }
 0x4dc   :  { %v386_v48 = vsel %vm105_vm3, %v385_v47, inf }
 0x4dd   :  { %387 = vmin.xlane.f32.xlu1 %v386_v48  ;;  %v282_v49 = vpop.permute.xlu0 %281 }
 0x4de   :  { %285 = vst.msk [vmem:[#allocation3] sm:$0xf] %vm284_vm4, %v282_v49 }
 0x51c   :  { %v369_v50 = vpop.f32.mrb[2].mxu0 }
 0x51d   :  { %374 = vrot.lane.b32.xlu1 %v369_v50, %s4503_s7  ;;  %v3874_v51 = vpop.f32.mrb[3].mxu0 }
 0x524   :  { %v3892_v55 = vpop.f32.mrb[4].mxu0 }
 0x525   :  { %v553_v58 = vadd.f32 %v3892_v55, %v4637_v57  ;;  %v547_v32 = vpop.f32.mrb[5].mxu0 }
 0x526   :  { %v548_v38 = vadd.f32 %v4637_v57, %v547_v32 }
 0x527   :  { %v561_v59 = vsel %vm25_vm0, %v553_v58, 0.0 }
 0x528   :  { %562 = vadd.xlane.f32.xlu0 %v561_v59  ;;  %v558_v39 = vsel %vm25_vm0, %v548_v38, 0.0  ;;  %v3606_v59 = vld [vmem:[%s5248_s2 + $0x2] ss:$0 sm:$0xff] }
 0x56a   :  { %v388_v52 = vpop.xlane.xlu1 %387 }
 0x56b   :  { %vm389_vm6 = vcmp.eq.f32.partialorder %v4576_v12, %v388_v52 }
 0x56c   :  { %v3594_v53 = vsel %vm389_vm6, 1.0, %v4501_v5 }
 0x56d   :  { %3880 = vmatmul.mubr.msk.f32.vlgmr.msra.gmra.mrb[4].mxu1 %vm117_vm5, %v3594_v53  ;;  %v4629_v54 = vadd.f32 %v3594_v53, %v299_v37 }
 0x56e   :  { %3901 = vmatprep.mubr.msk.f32.mxu1 %vm25_vm0, %v4544_v0  ;;  %4198 = vmatpush3.bf16.msra.mxu1 %v4195_v63 }
 0x56f   :  { %4200 = vmatprep.subr.bf16.mxu1 %v4199_v8 }
 0x572   :  { %4202 = vmatpush3.bf16.msra.mxu1 %v4199_v8 }
 0x573   :  { %4227 = vmatprep.subr.bf16.mxu1 %v4499_v2 }
 0x575   :  { %3902 = vmatmul.mubr.msk.f32.vlgmr.msra.gmra.mrb[6].mxu1 %vm25_vm0, %v4549_v1 }
 0x576   :  { %3943 = vmatprep.mubr.msk.f32.mxu1 %vm4500_vm2, %v4501_v5 }
 0x58f   :  { %v375_v56 = vpop.permute.xlu1 %374 }
 0x590   :  { %378 = vst.msk [vmem:[#allocation3] sm:$0xf] %vm377_vm7, %v375_v56 }
 0x5b5   :  { %v563_v35 = vpop.xlane.xlu0 %562 }
 0x5b6   :  { %v566_v36 = vmul.f32 0.03125, %v563_v35 }
 0x5b8   :  { %v568_v37 = vsub.f32 %v553_v58, %v566_v36 }
 0x5ba   :  { %v570_v40 = vmul.f32 %v568_v37, %v568_v37 }
 0x5bc   :  { %v574_v41 = vsel %vm25_vm0, %v570_v40, 0.0 }
 0x640   :  { %v462_v33 = vpop.f32.mrb[4].mxu1 }
 0x641   :  { %v3881_v34 = vpop.f32.mrb[5].mxu1  ;;  %467 = vrot.lane.b32.xlu1 %v462_v33, %s4504_s26 }
 0x648   :  { %v3903_v43 = vpop.f32.mrb[6].mxu1 }
 0x649   :  { %v4720_v44 = vadd.f32 %v3903_v43, %v3601_v42  ;;  %v672_v45 = vpop.f32.mrb[7].mxu1 }
 0x64a   :  { %v673_v46 = vadd.f32 %v3601_v42, %v672_v45  ;;  %v3607_v42 = vld [vmem:[%s5248_s2 + $0x9] ss:$0 sm:$0xff]  ;;  %v3608_v45 = vld [vmem:[%s5248_s2 + $0xa] ss:$0 sm:$0xff] }
 0x64b   :  { %v686_v19 = vsel %vm25_vm0, %v4720_v44, 0.0 }
 0x64c   :  { %v683_v47 = vsel %vm25_vm0, %v673_v46, 0.0 }
 0x665   :  { %559 = vadd.xlane.f32.xlu1 %v558_v39 }
 0x669   :  { %575 = vadd.xlane.f32.xlu1 %v574_v41 }
 0x66d   :  { %684 = vadd.xlane.f32.xlu1 %v683_v47 }
 0x6b3   :  { %v468_v48 = vpop.permute.xlu1 %467 }
 0x6b4   :  { %471 = vst.msk [vmem:[#allocation3] sm:$0xf] %vm470_vm8, %v468_v48 }
 0x6bb   :  { %v721_v49 = vld [vmem:[#allocation3] sm:$0xf] }
 0x6bc   :  { %3937 = vmatmul.mubr.f32.vlgmr.msra.gmra.mrb[6].mxu0 %v721_v49 }
 0x6f2   :  { %v560_v50 = vpop.xlane.xlu1 %559 }
 0x6f3   :  { %v565_v58 = vmul.f32 0.03125, %v560_v50 }
 0x6f5   :  { %v567_v60 = vsub.f32 %v548_v38, %v565_v58 }
 0x6f6   :  { %v576_v51 = vpop.xlane.xlu1 %575 }
 0x6f7   :  { %v569_v6 = vmul.f32 %v567_v60, %v567_v60  ;;  %v578_v8 = vmul.f32 0.03125, %v576_v51 }
 0x6f9   :  { %v571_v7 = vsel %vm25_vm0, %v569_v6, 0.0  ;;  %v580_v9 = vadd.f32 1e-05, %v578_v8 }
 0x6fa   :  { %v685_v52 = vpop.xlane.xlu1 %684 }
 0x6fb   :  { %v689_v53 = vmul.f32 0.03125, %v685_v52  ;;  %4387 = vrsqrt.f32 %v580_v9 }
 0x6fd   :  { %v4724_v55 = vsub.f32 %v673_v46, %v689_v53 }
 0x6ff   :  { %v693_v56 = vmul.f32 %v4724_v55, %v4724_v55 }
 0x701   :  { %v695_v57 = vsel %vm25_vm0, %v693_v56, 0.0 }
 0x702   :  { %696 = vadd.xlane.f32.xlu1 %v695_v57  ;;  %v3604_v57 = vld [vmem:[%s5248_s2 + $0xb] ss:$0 sm:$0xff] }
 0x705   :  { %v4388_v20 = vpop.eup %4387 }
 0x706   :  { %v584_v21 = vmul.f32 %v4388_v20, %v568_v37 }
 0x708   :  { %v590_v24 = vmul.f32 %v3599_v22, %v584_v21 }
 0x70a   :  { %v596_v29 = vadd.f32 %v3600_v26, %v590_v24 }
 0x78f   :  { %v809_v61 = vpop.f32.mrb[6].mxu0 }
 0x790   :  { %v810_v62 = vadd.f32 %v3606_v59, %v809_v61  ;;  %v3938_v63 = vpop.f32.mrb[7].mxu0  ;;  %v3605_v61 = vld [vmem:[%s5248_s2 + $0xc] ss:$0 sm:$0xff] }
 0x792   :  { %v815_v3 = vsel %vm191_vm9, %v810_v62, 0.0 }
 0x793   :  { %816 = vadd.xlane.f32.xlu0 %v815_v3 }
 0x797   :  { %572 = vadd.xlane.f32.xlu0 %v571_v7 }
 0x820   :  { %v817_v10 = vpop.xlane.xlu0 %816 }
 0x821   :  { %v818_v11 = vmul.f32 0.03125, %v817_v10 }
 0x823   :  { %v819_v13 = vsub.f32 %v810_v62, %v818_v11 }
 0x824   :  { %v573_v14 = vpop.xlane.xlu0 %572 }
 0x825   :  { %v577_v15 = vmul.f32 0.03125, %v573_v14  ;;  %v820_v16 = vmul.f32 %v819_v13, %v819_v13 }
 0x827   :  { %v579_v17 = vadd.f32 1e-05, %v577_v15  ;;  %v821_v18 = vsel %vm191_vm9, %v820_v16, 0.0 }
 0x828   :  { %822 = vadd.xlane.f32.xlu0 %v821_v18 }
 0x829   :  { %4389 = vrsqrt.f32 %v579_v17 }
 0x82c   :  { %687 = vadd.xlane.f32.xlu0 %v686_v19 }
 0x833   :  { %v4390_v23 = vpop.eup %4389 }
 0x834   :  { %v583_v25 = vmul.f32 %v4390_v23, %v567_v60 }
 0x836   :  { %v589_v27 = vmul.f32 %v3599_v22, %v583_v25 }
 0x838   :  { %v595_v28 = vadd.f32 %v3600_v26, %v589_v27 }
 0x83a   :  { %v4228_v31 = vpack.c.bf16 %v596_v29, %v595_v28  ;;  %v4367_v32 = vpack.i.bf16 %v596_v29, %v595_v28 }
 0x83c   :  { %4230 = vmatpush3.bf16.xpose.msk.msra.mxu1 %vm4745_vm10, %v4228_v31  ;;  %4368 = vrot.lane.b32.xlu1 %v4367_v32, %s4505_s11 }
 0x83d   :  { %4231 = vmatprep.subr.bf16.mxu1 %v4499_v2 }
 0x8b5   :  { %v823_v33 = vpop.xlane.xlu0 %822 }
 0x8b6   :  { %v824_v34 = vmul.f32 0.03125, %v823_v33 }
 0x8b8   :  { %v825_v35 = vadd.f32 1e-05, %v824_v34 }
 0x8b9   :  { %v688_v36 = vpop.xlane.xlu0 %687 }
 0x8ba   :  { %4391 = vrsqrt.f32 %v825_v35  ;;  %v690_v37 = vmul.f32 0.03125, %v688_v36 }
 0x8bc   :  { %v692_v38 = vsub.f32 %v4720_v44, %v690_v37  ;;  %v697_v44 = vpop.xlane.xlu1 %696 }
 0x8bd   :  { %v701_v48 = vmul.f32 0.03125, %v697_v44 }
 0x8be   :  { %v694_v39 = vmul.f32 %v692_v38, %v692_v38 }
 0x8bf   :  { %v703_v49 = vadd.f32 1e-05, %v701_v48 }
 0x8c0   :  { %v698_v40 = vsel %vm25_vm0, %v694_v39, 0.0  ;;  %v4369_v28 = vpop.permute.xlu1 %4368 }
 0x8c1   :  { %699 = vadd.xlane.f32.xlu0 %v698_v40  ;;  %4393 = vrsqrt.f32 %v703_v49  ;;  %v4371_v29 = vunpack.i.h.bf16 %v4369_v28  ;;  %v4370_v31 = vunpack.i.l.bf16 %v4369_v28 }
 0x8c3   :  { %v4235_v34 = vpack.c.bf16 %v4371_v29, %v4370_v31 }
 0x8c4   :  { %v4392_v41 = vpop.eup %4391 }
 0x8c5   :  { %v827_v43 = vmul.f32 %v4392_v41, %v819_v13 }
 0x8c7   :  { %v832_v46 = vmul.f32 %v3607_v42, %v827_v43 }
 0x8c9   :  { %v837_v47 = vadd.f32 %v3608_v45, %v832_v46 }
 0x8cb   :  { %3944 = vmatmul.mubr.msk.f32.vlgmr.msra.gmra.mrb[8].mxu1 %vm117_vm5, %v837_v47  ;;  %v4394_v53 = vpop.eup %4393 }
 0x8cc   :  { %3950 = vmatprep.mubr.msk.f32.mxu1 %vm4500_vm2, %v4501_v5  ;;  %v707_v56 = vmul.f32 %v4394_v53, %v4724_v55 }
 0x8ce   :  { %v713_v60 = vmul.f32 %v3604_v57, %v707_v56 }
 0x8d0   :  { %v719_v63 = vadd.f32 %v3605_v61, %v713_v60 }
 0x8d7   :  { %1012 = vrot.lane.b32.xlu0 %v837_v47, %s4505_s11 }
 0x94e   :  { %v700_v50 = vpop.xlane.xlu0 %699 }
 0x94f   :  { %v702_v51 = vmul.f32 0.03125, %v700_v50 }
 0x951   :  { %v704_v52 = vadd.f32 1e-05, %v702_v51 }
 0x953   :  { %4395 = vrsqrt.f32 %v704_v52 }
 0x95d   :  { %v4396_v58 = vpop.eup %4395 }
 0x95e   :  { %v708_v59 = vmul.f32 %v4396_v58, %v692_v38  ;;  %v1013_v38 = vpop.permute.xlu0 %1012 }
 0x960   :  { %v714_v62 = vmul.f32 %v3604_v57, %v708_v59 }
 0x962   :  { %v720_v3 = vadd.f32 %v3605_v61, %v714_v62 }
 0x964   :  { %v4372_v6 = vpack.i.bf16 %v720_v3, %v719_v63  ;;  %v4232_v7 = vpack.c.bf16 %v720_v3, %v719_v63 }
 0x966   :  { %4373 = vrot.lane.b32.xlu1 %v4372_v6, %s4505_s11  ;;  %4233 = vmatpush3.bf16.msra.mxu1 %v4232_v7  ;;  %v1203_v7 = vld [vmem:[%s5247_s1 + $0xc8] sm:$0xff] }
 0x967   :  { %4234 = vmatprep.subr.bf16.mxu1 %v4499_v2 }
 0x99e   :  { %v913_v55 = vpop.f32.mrb[8].mxu1 }
 0x99f   :  { %v917_v8 = vmul.f32 0.25, %v913_v55  ;;  %v3945_v9 = vpop.f32.mrb[9].mxu1  ;;  %v1204_v55 = vld [vmem:[%s5247_s1 + $0xd0] sm:$0xff] }
 0x9a0   :  { %v1205_v9 = vld [vmem:[%s5247_s1 + $0xd8] sm:$0xff] }
 0x9a1   :  { %v918_v10 = vsel %vm105_vm3, %v917_v8, -inf }
 0x9a2   :  { %v919_v11 = vrot.slane %v918_v10, 4 }
 0x9a4   :  { %v920_v13 = vmax.f32 %v918_v10, %v919_v11  ;;  %v1206_v10 = vld [vmem:[%s5247_s1 + $0xe0] sm:$0xff] }
 0x9a5   :  { %v4245_v11 = vpack.c.bf16 %v1206_v10, %v1205_v9  ;;  %v3625_v9 = vld [vmem:[%s5248_s2 + $0x10] ss:$0 sm:$0xff] }
 0x9a6   :  { %v921_v14 = vrot.slane %v920_v13, 2 }
 0x9a8   :  { %v922_v15 = vmax.f32 %v920_v13, %v921_v14 }
 0x9aa   :  { %v923_v16 = vrot.slane %v922_v15, 1 }
 0x9ac   :  { %v924_v17 = vmax.f32 %v922_v15, %v923_v16 }
 0x9ae   :  { %v925_v18 = vsub.f32 %v917_v8, %v924_v17  ;;  %v4242_v8 = vpack.c.bf16 %v1204_v55, %v1203_v7  ;;  %v3617_v17 = vld [vmem:[%s5248_s2 + $0x4] ss:$0 sm:$0xff]  ;;  %v3624_v55 = vld [vmem:[%s5248_s2 + $0xf] ss:$0 sm:$0xff] }
 0x9b0   :  { %v926_v19 = vmul.f32 1.442695, %v925_v18 }
 0x9b2   :  { %4397 = vpow2.f32 %v926_v19 }
 0x9bc   :  { %v4398_v20 = vpop.eup %4397 }
 0x9bd   :  { %v928_v21 = vsel %vm105_vm3, %v4398_v20, 0.0 }
 0x9be   :  { %v929_v22 = vrot.slane %v928_v21, 4 }
 0x9c0   :  { %v930_v23 = vadd.f32 %v929_v22, %v928_v21 }
 0x9c2   :  { %v931_v24 = vrot.slane %v930_v23, 2 }
 0x9c4   :  { %v932_v25 = vadd.f32 %v931_v24, %v930_v23 }
 0x9c6   :  { %v933_v26 = vrot.slane %v932_v25, 1 }
 0x9c8   :  { %v934_v27 = vadd.f32 %v933_v26, %v932_v25 }
 0x9ca   :  { %4399 = vrcp.f32 %v934_v27 }
 0x9d4   :  { %v4400_v32 = vpop.eup %4399 }
 0x9d5   :  { %v936_v33 = vmul.f32 %v4400_v32, %v4398_v20  ;;  %v3619_v32 = vld [vmem:[%s5248_s2 + $0xd] ss:$0 sm:$0xff] }
 0x9d7   :  { %937 = vst.msk [vmem:[#allocation6] sm:$0xf] %vm105_vm3, %v936_v33  ;;  %3951 = vmatmul.mubr.msk.f32.vlgmr.msra.gmra.mrb[10].mxu1 %vm117_vm5, %v936_v33 }
 0x9d8   :  { %4237 = vmatpush3.bf16.xpose.msk.msra.mxu1 %vm4745_vm10, %v4235_v34  ;;  %v4374_v35 = vpop.permute.xlu1 %4373  ;;  %3957 = vmatprep.mubr.msk.f32.mxu1 %vm4500_vm2, %v4501_v5  ;;  %v3620_v34 = vld [vmem:[%s5248_s2 + $0xe] ss:$0 sm:$0xff] }
 0x9d9   :  { %4238 = vmatprep.subr.bf16.mxu1 %v4499_v2  ;;  %v4376_v36 = vunpack.i.h.bf16 %v4374_v35  ;;  %v4375_v37 = vunpack.i.l.bf16 %v4374_v35 }
 0x9db   :  { %v4239_v39 = vpack.c.bf16 %v4376_v36, %v4375_v37 }
 0x9df   :  { %3958 = vmatmul.mubr.msk.f32.vlgmr.msra.gmra.mrb[12].mxu1 %vm117_vm5, %v1013_v38 }
 0x9e0   :  { %4240 = vmatpush3.bf16.msra.mxu1 %v4239_v39  ;;  %3964 = vmatprep.mubr.msk.f32.mxu1 %vm4500_vm2, %v4501_v5 }
 0x9e1   :  { %4241 = vmatprep.subr.bf16.mxu1 %v4499_v2 }
 0xaaa   :  { %v1007_v40 = vpop.f32.mrb[10].mxu1 }
 0xaab   :  { %1011 = vst.msk [vmem:[#allocation2] sm:$0xf] %vm105_vm3, %v1007_v40  ;;  %v3952_v41 = vpop.f32.mrb[11].mxu1 }
 0xab2   :  { %v1090_v42 = vpop.f32.mrb[12].mxu1 }
 0xab3   :  { %v1094_v43 = vmul.f32 0.25, %v1090_v42  ;;  %v3959_v45 = vpop.f32.mrb[13].mxu1 }
 0xab5   :  { %v1095_v46 = vsel %vm105_vm3, %v1094_v43, -inf }
 0xab6   :  { %v1096_v47 = vrot.slane %v1095_v46, 4 }
 0xab8   :  { %v1097_v44 = vmax.f32 %v1095_v46, %v1096_v47 }
 0xaba   :  { %v1098_v48 = vrot.slane %v1097_v44, 2 }
 0xabc   :  { %v1099_v49 = vmax.f32 %v1097_v44, %v1098_v48 }
 0xabe   :  { %v1100_v50 = vrot.slane %v1099_v49, 1 }
 0xac0   :  { %v1101_v51 = vmax.f32 %v1099_v49, %v1100_v50 }
 0xac2   :  { %v1102_v52 = vsub.f32 %v1094_v43, %v1101_v51 }
 0xac4   :  { %v1103_v53 = vmul.f32 1.442695, %v1102_v52 }
 0xac6   :  { %4401 = vpow2.f32 %v1103_v53  ;;  %v1471_v53 = vld [vmem:[%s5247_s1 + $0xf0] sm:$0xff] }
 0xad0   :  { %v4402_v56 = vpop.eup %4401 }
 0xad1   :  { %v1105_v57 = vsel %vm105_vm3, %v4402_v56, 0.0 }
 0xad2   :  { %v1106_v58 = vrot.slane %v1105_v57, 4 }
 0xad4   :  { %v1107_v59 = vadd.f32 %v1106_v58, %v1105_v57  ;;  %v1472_v57 = vld [vmem:[%s5247_s1 + $0xf8] sm:$0xff]  ;;  %v1473_v58 = vld [vmem:[%s5247_s1 + $0x100] sm:$0xff] }
 0xad6   :  { %v1108_v60 = vrot.slane %v1107_v59, 2 }
 0xad8   :  { %v1109_v61 = vadd.f32 %v1108_v60, %v1107_v59  ;;  %v4251_v59 = vpack.c.bf16 %v1473_v58, %v1472_v57 }
 0xada   :  { %v1110_v62 = vrot.slane %v1109_v61, 1 }
 0xadc   :  { %v1111_v63 = vadd.f32 %v1110_v62, %v1109_v61 }
 0xade   :  { %4403 = vrcp.f32 %v1111_v63 }
 0xae8   :  { %v4404_v3 = vpop.eup %4403 }
 0xae9   :  { %v1113_v6 = vmul.f32 %v4404_v3, %v4402_v56 }
 0xaeb   :  { %1114 = vst.msk [vmem:[#allocation6 + $0x4] sm:$0xf] %vm105_vm3, %v1113_v6  ;;  %3965 = vmatmul.mubr.msk.f32.vlgmr.msra.gmra.mrb[14].mxu1 %vm117_vm5, %v1113_v6 }
 0xaec   :  { %3975 = vmatprep.mubr.msk.f32.mxu1 %vm4500_vm2, %v4501_v5  ;;  %4243 = vmatpush3.bf16.msra.mxu1 %v4242_v8 }
 0xaed   :  { %4244 = vmatprep.subr.bf16.mxu1 %v4499_v2 }
 0xaf0   :  { %4246 = vmatpush3.bf16.msra.mxu1 %v4245_v11 }
 0xbbe   :  { %v1192_v13 = vpop.f32.mrb[14].mxu1 }
 0xbbf   :  { %1197 = vrot.lane.b32.xlu1 %v1192_v13, %s4506_s29  ;;  %v3966_v14 = vpop.f32.mrb[15].mxu1 }
 0xc31   :  { %v1198_v15 = vpop.permute.xlu1 %1197 }
 0xc32   :  { %1201 = vst.msk [vmem:[#allocation2] sm:$0xf] %vm1200_vm11, %v1198_v15 }
 0xc39   :  { %v1202_v16 = vld [vmem:[#allocation2] sm:$0xf] }
 0xc3a   :  { %3976 = vmatmul.mubr.msk.f32.vlgmr.msra.gmra.mrb[16].mxu1 %vm25_vm0, %v1202_v16 }
 0xd0d   :  { %v1281_v18 = vpop.f32.mrb[16].mxu1 }
 0xd0e   :  { %v1282_v19 = vadd.f32 %v3617_v17, %v1281_v18  ;;  %v3977_v20 = vpop.f32.mrb[17].mxu1  ;;  %v1570_v17 = vld [vmem:[%s5247_s1 + $0x108] sm:$0xff]  ;;  %v1571_v18 = vld [vmem:[%s5247_s1 + $0x110] sm:$0xff] }
 0xd0f   :  { %v3626_v20 = vld [vmem:[%s5248_s2 + $0x5] ss:$0 sm:$0xff] }
 0xd10   :  { %v1287_v21 = vsel %vm191_vm9, %v1282_v19, 0.0 }
 0xd11   :  { %1288 = vadd.xlane.f32.xlu1 %v1287_v21 }
 0xd9e   :  { %v1289_v22 = vpop.xlane.xlu1 %1288 }
 0xd9f   :  { %v1290_v23 = vmul.f32 0.03125, %v1289_v22 }
 0xda1   :  { %v1291_v24 = vsub.f32 %v1282_v19, %v1290_v23  ;;  %v4255_v19 = vpack.c.bf16 %v1571_v18, %v1570_v17 }
 0xda3   :  { %v1292_v25 = vmul.f32 %v1291_v24, %v1291_v24 }
 0xda5   :  { %v1293_v26 = vsel %vm191_vm9, %v1292_v25, 0.0 }
 0xda6   :  { %1294 = vadd.xlane.f32.xlu0 %v1293_v26 }
 0xdd3   :  { %1310 = vxpose.xlu0.b32.start.end [1/1] (short) (narrow) %v4629_v54, 16 }
 0xe33   :  { %v1295_v27 = vpop.xlane.xlu0 %1294 }
 0xe34   :  { %v1296_v28 = vmul.f32 0.03125, %v1295_v27 }
 0xe36   :  { %v1297_v29 = vadd.f32 1e-05, %v1296_v28 }
 0xe38   :  { %4405 = vrsqrt.f32 %v1297_v29 }
 0xe42   :  { %v4406_v31 = vpop.eup %4405 }
 0xe43   :  { %v1299_v33 = vmul.f32 %v4406_v31, %v1291_v24 }
 0xe45   :  { %v1304_v35 = vmul.f32 %v3619_v32, %v1299_v33 }
 0xe47   :  { %v1309_v36 = vadd.f32 %v3620_v34, %v1304_v35 }
 0xe49   :  { %3978 = vmatprep.subr.msk.mxu0 %vm1349_vm12, %v1309_v36 }
 0xe4a   :  { %3979 = vmatpush3.msk.msra.mxu0 %vm1349_vm12, %v1309_v36  ;;  %v3629_v36 = vld [vmem:[%s5248_s2 + $0x6] ss:$0 sm:$0xff] }
 0xe4b   :  { %4256 = vmatprep.subr.bf16.mxu0 %v4255_v19 }
 0xe53   :  { %v1326_v54 = vpop.trf.xlu0 }
 0xe54   :  { %3980 = vmatprep.mubr.msk.f32.mxu0 %vm1342_vm13, %v1326_v54 }
 0xe57   :  { %v1327_v37 = vpop.trf.xlu0 }
 0xe58   :  { %3981 = vmatmul.mubr.msk.f32.vlgmr.msra.gmra.mrb[8].mxu0 %vm1342_vm13, %v1327_v37 }
 0xe59   :  { %4258 = vmatpush3.bf16.msra.mxu0 %v4255_v19 }
 0xe5a   :  { %4259 = vmatprep.subr.bf16.mxu0 %v4499_v2 }
 0xf2b   :  { %v3982_v38 = vpop.f32.mrb[8].mxu0 }
 0xf2c   :  { %v1419_v39 = vpop.f32.mrb[9].mxu0  ;;  %v1429_v41 = vadd.f32 %v3982_v38, %v4549_v1  ;;  %v1470_v1 = vld [vmem:[%s5247_s1 + $0xe8] sm:$0xff] }
 0xf2d   :  { %v1428_v40 = vadd.f32 %v1419_v39, %v4544_v0  ;;  %v4247_v56 = vpack.c.bf16 %v1471_v53, %v1470_v1  ;;  %v1700_v1 = vld [vmem:[%s5247_s1 + $0x118] sm:$0xf] }
 0xf2e   :  { %v1435_v43 = vsel %vm25_vm0, %v1429_v41, 0.0 }
 0xf2f   :  { %v1432_v42 = vsel %vm25_vm0, %v1428_v40, 0.0  ;;  %4248 = vmatprep.subr.bf16.mxu1 %v4247_v56 }
 0xf30   :  { %1433 = vadd.xlane.f32.xlu1 %v1432_v42  ;;  %4250 = vmatpush3.bf16.msra.mxu1 %v4247_v56 }
 0xf31   :  { %4252 = vmatprep.subr.bf16.mxu1 %v4251_v59 }
 0xf34   :  { %1436 = vadd.xlane.f32.xlu1 %v1435_v43  ;;  %4254 = vmatpush3.bf16.msra.mxu1 %v4251_v59 }
 0xf35   :  { %4008 = vmatprep.subr.msk.mxu1 %vm25_vm0, %v1700_v1 }
 0xfbd   :  { %v1434_v45 = vpop.xlane.xlu1 %1433 }
 0xfbe   :  { %v1438_v46 = vmul.f32 0.03125, %v1434_v45 }
 0xfc0   :  { %v1440_v47 = vsub.f32 %v1428_v40, %v1438_v46 }
 0xfc1   :  { %v1437_v44 = vpop.xlane.xlu1 %1436 }
 0xfc2   :  { %v1439_v48 = vmul.f32 0.03125, %v1437_v44  ;;  %v1442_v49 = vmul.f32 %v1440_v47, %v1440_v47 }
 0xfc4   :  { %v1441_v50 = vsub.f32 %v1429_v41, %v1439_v48  ;;  %v1444_v51 = vsel %vm25_vm0, %v1442_v49, 0.0 }
 0xfc5   :  { %1445 = vadd.xlane.f32.xlu1 %v1444_v51 }
 0xfc6   :  { %v1443_v52 = vmul.f32 %v1441_v50, %v1441_v50 }
 0xfc8   :  { %v1447_v0 = vsel %vm25_vm0, %v1443_v52, 0.0 }
 0xfc9   :  { %1448 = vadd.xlane.f32.xlu1 %v1447_v0 }
0x1052   :  { %v1446_v60 = vpop.xlane.xlu1 %1445 }
0x1053   :  { %v1450_v61 = vmul.f32 0.03125, %v1446_v60 }
0x1055   :  { %v1452_v62 = vadd.f32 1e-05, %v1450_v61 }
0x1056   :  { %v1449_v63 = vpop.xlane.xlu1 %1448 }
0x1057   :  { %4407 = vrsqrt.f32 %v1452_v62  ;;  %v1451_v3 = vmul.f32 0.03125, %v1449_v63  ;;  %v3632_v62 = vld [vmem:[%s5248_s2 + $0x11] ss:$0 sm:$0xff] }
0x1059   :  { %v1453_v6 = vadd.f32 1e-05, %v1451_v3  ;;  %v3633_v3 = vld [vmem:[%s5248_s2 + $0x12] ss:$0 sm:$0xff] }
0x105b   :  { %4409 = vrsqrt.f32 %v1453_v6 }
0x1061   :  { %v4408_v7 = vpop.eup %4407 }
0x1062   :  { %v1456_v8 = vmul.f32 %v4408_v7, %v1440_v47 }
0x1064   :  { %v1462_v10 = vmul.f32 %v3624_v55, %v1456_v8 }
0x1065   :  { %v4410_v11 = vpop.eup %4409 }
0x1066   :  { %v1457_v13 = vmul.f32 %v4410_v11, %v1441_v50  ;;  %v1468_v14 = vadd.f32 %v3625_v9, %v1462_v10 }
0x1068   :  { %v1463_v15 = vmul.f32 %v3624_v55, %v1457_v13  ;;  %3991 = vmatprep.mubr.msk.f32.mxu1 %vm25_vm0, %v1468_v14  ;;  %v3637_v13 = vld [vmem:[%s5248_s2 + $0x13] ss:$0 sm:$0xff] }
0x106a   :  { %v1469_v16 = vadd.f32 %v3625_v9, %v1463_v15 }
0x106c   :  { %3992 = vmatmul.mubr.msk.f32.vlgmr.msra.gmra.mrb[18].mxu1 %vm25_vm0, %v1469_v16 }
0x106d   :  { %4009 = vmatpush3.xpose.msk.msra.mxu1 %vm25_vm0, %v1700_v1 }
0x106e   :  { %4263 = vmatprep.subr.bf16.mxu1 %v4499_v2 }
0x113f   :  { %v3993_v21 = vpop.f32.mrb[18].mxu1 }
0x1140   :  { %v1557_v22 = vadd.f32 %v3993_v21, %v3626_v20  ;;  %v1551_v23 = vpop.f32.mrb[19].mxu1 }
0x1141   :  { %v1552_v24 = vadd.f32 %v3626_v20, %v1551_v23 }
0x1142   :  { %v1563_v25 = vmul.f32 0.70710677, %v1557_v22  ;;  %v1561_v33 = vmul.f32 0.5, %v1557_v22 }
0x1143   :  { %v1562_v26 = vmul.f32 0.70710677, %v1552_v24  ;;  %v1560_v31 = vmul.f32 0.5, %v1552_v24 }
0x1144   :  { %4411 = verf.f32 %v1563_v25 }
0x1145   :  { %4413 = verf.f32 %v1562_v26 }
0x114e   :  { %v4412_v27 = vpop.eup %4411 }
0x114f   :  { %v4414_v28 = vpop.eup %4413  ;;  %v1567_v29 = vadd.f32 1.0, %v4412_v27 }
0x1150   :  { %v1566_v32 = vadd.f32 1.0, %v4414_v28 }
0x1151   :  { %v1569_v35 = vmul.f32 %v1567_v29, %v1561_v33 }
0x1152   :  { %v1568_v34 = vmul.f32 %v1566_v32, %v1560_v31 }
0x1154   :  { %3998 = vmatprep.mubr.msk.f32.mxu0 %vm117_vm5, %v1568_v34 }
0x1155   :  { %3999 = vmatmul.mubr.msk.f32.vlgmr.msra.gmra.mrb[10].mxu0 %vm117_vm5, %v1569_v35 }
0x1156   :  { %4005 = vmatprep.mubr.msk.f32.mxu0 %vm4500_vm2, %v4501_v5 }
0x1228   :  { %v4000_v54 = vpop.f32.mrb[10].mxu0 }
0x1229   :  { %v1649_v37 = vpop.f32.mrb[11].mxu0  ;;  %v1655_v38 = vadd.f32 %v4000_v54, %v3629_v36 }
0x122a   :  { %v1650_v39 = vadd.f32 %v3629_v36, %v1649_v37 }
0x122b   :  { %v1659_v42 = vadd.f32 %v1655_v38, %v1469_v16 }
0x122c   :  { %v1658_v40 = vadd.f32 %v1650_v39, %v1468_v14  ;;  %v2223_v39 = vld [vmem:[%s5247_s1 + $0x120] sm:$0xff] }
0x122d   :  { %v1665_v43 = vsel %vm25_vm0, %v1659_v42, 0.0 }
0x122e   :  { %v1662_v41 = vsel %vm25_vm0, %v1658_v40, 0.0 }
0x122f   :  { %1663 = vadd.xlane.f32.xlu1 %v1662_v41 }
0x1233   :  { %1666 = vadd.xlane.f32.xlu1 %v1665_v43 }
0x12bc   :  { %v1664_v45 = vpop.xlane.xlu1 %1663 }
0x12bd   :  { %v1668_v46 = vmul.f32 0.03125, %v1664_v45  ;;  %v2225_v45 = vld [vmem:[%s5247_s1 + $0x130] sm:$0xff] }
0x12bf   :  { %v1670_v47 = vsub.f32 %v1658_v40, %v1668_v46  ;;  %v2224_v40 = vld [vmem:[%s5247_s1 + $0x128] sm:$0xff]  ;;  %v2226_v46 = vld [vmem:[%s5247_s1 + $0x138] sm:$0xff] }
0x12c0   :  { %v1667_v44 = vpop.xlane.xlu1 %1666  ;;  %v4275_v41 = vpack.c.bf16 %v2224_v40, %v2223_v39 }
0x12c1   :  { %v1669_v48 = vmul.f32 0.03125, %v1667_v44  ;;  %v1672_v49 = vmul.f32 %v1670_v47, %v1670_v47 }
0x12c3   :  { %v1671_v50 = vsub.f32 %v1659_v42, %v1669_v48  ;;  %v1674_v51 = vsel %vm25_vm0, %v1672_v49, 0.0  ;;  %v4279_v48 = vpack.c.bf16 %v2226_v46, %v2225_v45 }
0x12c4   :  { %1675 = vadd.xlane.f32.xlu1 %v1674_v51 }
0x12c5   :  { %v1673_v52 = vmul.f32 %v1671_v50, %v1671_v50 }
0x12c7   :  { %v1677_v0 = vsel %vm25_vm0, %v1673_v52, 0.0 }
0x12c8   :  { %1678 = vadd.xlane.f32.xlu1 %v1677_v0 }
0x1351   :  { %v1676_v53 = vpop.xlane.xlu1 %1675 }
0x1352   :  { %v1680_v56 = vmul.f32 0.03125, %v1676_v53 }
0x1354   :  { %v1682_v57 = vadd.f32 1e-05, %v1680_v56  ;;  %v2347_v56 = vld [vmem:[%s5247_s1 + $0x1c0] sm:$0xff] }
0x1355   :  { %v1679_v58 = vpop.xlane.xlu1 %1678 }
0x1356   :  { %4415 = vrsqrt.f32 %v1682_v57  ;;  %v1681_v59 = vmul.f32 0.03125, %v1679_v58  ;;  %v2348_v57 = vld [vmem:[%s5247_s1 + $0x1c8] sm:$0xff] }
0x1357   :  { %v4283_v58 = vpack.c.bf16 %v2348_v57, %v2347_v56 }
0x1358   :  { %v1683_v60 = vadd.f32 1e-05, %v1681_v59 }
0x135a   :  { %4417 = vrsqrt.f32 %v1683_v60 }
0x1360   :  { %v4416_v61 = vpop.eup %4415 }
0x1361   :  { %v1686_v63 = vmul.f32 %v4416_v61, %v1670_v47  ;;  %v3649_v61 = vld [vmem:[%s5248_s2 + $0x14] ss:$0 sm:$0xff] }
0x1363   :  { %v1692_v6 = vmul.f32 %v3632_v62, %v1686_v63 }
0x1364   :  { %v4418_v7 = vpop.eup %4417 }
0x1365   :  { %v1687_v55 = vmul.f32 %v4418_v7, %v1671_v50  ;;  %v4885_v8 = vadd.f32 %v3633_v3, %v1692_v6 }
0x1367   :  { %4010 = vmatprep.mubr.msk.f32.mxu1 %vm25_vm0, %v4885_v8  ;;  %v1693_v9 = vmul.f32 %v3632_v62, %v1687_v55  ;;  %v2349_v55 = vld [vmem:[%s5247_s1 + $0x1d0] sm:$0xff] }
0x1369   :  { %v4889_v10 = vadd.f32 %v3633_v3, %v1693_v9  ;;  %v2350_v9 = vld [vmem:[%s5247_s1 + $0x1d8] sm:$0xff] }
0x136b   :  { %4011 = vmatmul.mubr.msk.f32.vlgmr.msra.gmra.mrb[20].mxu1 %vm25_vm0, %v4889_v10  ;;  %v4260_v11 = vpack.c.bf16 %v4889_v10, %v4885_v8 }
0x136c   :  { %4017 = vmatprep.mubr.msk.f32.mxu1 %vm4500_vm2, %v4501_v5 }
0x136d   :  { %4262 = vmatpush3.bf16.xpose.msk.msra.mxu0 %vm4556_vm1, %v4260_v11  ;;  %4265 = vmatpush3.bf16.msra.mxu1 %v4260_v11 }
0x136e   :  { %4266 = vmatprep.subr.bf16.mxu0 %v4499_v2  ;;  %4269 = vmatprep.subr.bf16.mxu1 %v4499_v2 }
0x1374   :  { %4006 = vmatmul.mubr.msk.f32.vlgmr.msra.gmra.mrb[12].mxu0 %vm25_vm0, %v1700_v1 }
0x1375   :  { %4268 = vmatpush3.bf16.msra.mxu0 %v4260_v11  ;;  %4024 = vmatprep.mubr.msk.f32.mxu0 %vm4500_vm2, %v4501_v5 }
0x1376   :  { %4272 = vmatprep.subr.bf16.mxu0 %v4499_v2 }
0x143e   :  { %v4012_v14 = vpop.f32.mrb[20].mxu1 }
0x143f   :  { %v1857_v4 = vadd.f32 %v4012_v14, %v3637_v13  ;;  %v1851_v15 = vpop.f32.mrb[21].mxu1 }
0x1440   :  { %v1852_v16 = vadd.f32 %v3637_v13, %v1851_v15  ;;  %v4287_v13 = vpack.c.bf16 %v2350_v9, %v2349_v55 }
0x1441   :  { %1861 = vst.msk [vmem:[%s5250_s4 + $0x8] sm:$0xff] %vm1342_vm13, %v1857_v4 }
0x1442   :  { %1860 = vst.msk [vmem:[%s5250_s4] sm:$0xff] %vm1342_vm13, %v1852_v16  ;;  %v2472_v16 = vld [vmem:[%s5247_s1 + $0x140] sm:$0xff] }
0x1447   :  { %v1776_v17 = vpop.f32.mrb[12].mxu0 }
0x1448   :  { %v4007_v18 = vpop.f32.mrb[13].mxu0  ;;  %v1862_v19 = vsel %vm105_vm3, %v1776_v17, -inf }
0x1449   :  { %1863 = vmax.xlane.f32.xlu1 %v1862_v19  ;;  %v2474_v18 = vld [vmem:[%s5247_s1 + $0x150] sm:$0xff] }
0x14d6   :  { %v1864_v20 = vpop.xlane.xlu1 %1863 }
0x14d7   :  { %vm1865_vm1 = vcmp.eq.f32.partialorder %v1776_v17, %v1864_v20  ;;  %v2475_v20 = vld [vmem:[%s5247_s1 + $0x158] sm:$0xff] }
0x14d8   :  { %v1866_v21 = vsel %vm1865_vm1, %v4576_v12, 16.0 }
0x14d9   :  { %v1867_v22 = vsel %vm105_vm3, %v1866_v21, inf  ;;  %v4295_v21 = vpack.c.bf16 %v2475_v20, %v2474_v18 }
0x14da   :  { %1868 = vmin.xlane.f32.xlu1 %v1867_v22  ;;  %v2476_v22 = vld [vmem:[%s5247_s1 + $0x160] sm:$0xff] }
0x1567   :  { %v1869_v23 = vpop.xlane.xlu1 %1868 }
0x1568   :  { %vm1870_vm14 = vcmp.eq.f32.partialorder %v4576_v12, %v1869_v23  ;;  %v2477_v23 = vld [vmem:[%s5247_s1 + $0x168] sm:$0xff] }
0x1569   :  { %v3641_v24 = vsel %vm1870_vm14, 1.0, %v4501_v5 }
0x156a   :  { %4018 = vmatmul.mubr.msk.f32.vlgmr.msra.gmra.mrb[22].mxu1 %vm117_vm5, %v3641_v24  ;;  %vm1947_vm15 = vcmp.gt.f32.partialorder %v3641_v24, 0.5 }
0x156b   :  { %4271 = vmatpush3.bf16.msra.mxu1 %v4260_v11  ;;  %v1948_v25 = vsel %vm1947_vm15, -1e+30, %v1776_v17  ;;  %4031 = vmatprep.mubr.msk.f32.mxu1 %vm4500_vm2, %v4501_v5  ;;  %v2473_v17 = vld [vmem:[%s5247_s1 + $0x148] sm:$0xff] }
0x156c   :  { %v1949_v26 = vsel %vm105_vm3, %v1948_v25, -inf  ;;  %4276 = vmatprep.subr.bf16.mxu1 %v4275_v41  ;;  %v4292_v19 = vpack.c.bf16 %v2473_v17, %v2472_v16 }
0x156d   :  { %1950 = vmax.xlane.f32.xlu1 %v1949_v26  ;;  %v2479_v26 = vld [vmem:[%s5247_s1 + $0x178] sm:$0xff] }
0x15fa   :  { %v1951_v27 = vpop.xlane.xlu1 %1950 }
0x15fb   :  { %vm1952_vm6 = vcmp.eq.f32.partialorder %v1948_v25, %v1951_v27 }
0x15fc   :  { %v1953_v28 = vsel %vm1952_vm6, %v4576_v12, 16.0 }
0x15fd   :  { %v1954_v29 = vsel %vm105_vm3, %v1953_v28, inf  ;;  %v2480_v28 = vld [vmem:[%s5247_s1 + $0x180] sm:$0xff] }
0x15fe   :  { %1955 = vmin.xlane.f32.xlu0 %v1954_v29  ;;  %v2481_v29 = vld [vmem:[%s5247_s1 + $0x188] sm:$0xff] }
0x163d   :  { %v1942_v31 = vpop.f32.mrb[22].mxu1 }
0x163e   :  { %1946 = vst.msk [vmem:[#allocation3] sm:$0xf] %vm191_vm9, %v1942_v31  ;;  %v4019_v32 = vpop.f32.mrb[23].mxu1  ;;  %v4304_v31 = vpack.c.bf16 %v2481_v29, %v2480_v28 }
0x163f   :  { %v2482_v32 = vld [vmem:[%s5247_s1 + $0x190] sm:$0xff] }
0x168b   :  { %v1956_v33 = vpop.xlane.xlu0 %1955 }
0x168c   :  { %vm1957_vm1 = vcmp.eq.f32.partialorder %v4576_v12, %v1956_v33  ;;  %v2483_v33 = vld [vmem:[%s5247_s1 + $0x198] sm:$0xff] }
0x168d   :  { %v3643_v34 = vsel %vm1957_vm1, 1.0, %v4501_v5 }
0x168e   :  { %4025 = vmatmul.mubr.msk.f32.vlgmr.msra.gmra.mrb[14].mxu0 %vm117_vm5, %v3643_v34  ;;  %vm2039_vm14 = vcmp.gt.f32.partialorder %v3643_v34, 0.5  ;;  %v1960_v44 = vadd.f32 %v3643_v34, %v3641_v24  ;;  %v4298_v24 = vpack.c.bf16 %v2477_v23, %v2476_v22  ;;  %v4307_v34 = vpack.c.bf16 %v2483_v33, %v2482_v32  ;;  %v3652_v22 = vld [vmem:[%s5248_s2 + $0x1a] ss:$0 sm:$0xff] }
0x168f   :  { %4274 = vmatpush3.bf16.msra.mxu0 %v4260_v11  ;;  %v2040_v35 = vsel %vm2039_vm14, -1e+30, %v1948_v25  ;;  %4038 = vmatprep.mubr.msk.f32.mxu0 %vm4500_vm2, %v4501_v5  ;;  %v2478_v25 = vld [vmem:[%s5247_s1 + $0x170] sm:$0xff] }
0x1690   :  { %v2041_v36 = vsel %vm105_vm3, %v2040_v35, -inf  ;;  %4284 = vmatprep.subr.bf16.mxu0 %v4283_v58  ;;  %v4301_v27 = vpack.c.bf16 %v2479_v26, %v2478_v25  ;;  %v3653_v26 = vld [vmem:[%s5248_s2 + $0x1b] ss:$0 sm:$0xff] }
0x1691   :  { %2042 = vmax.xlane.f32.xlu1 %v2041_v36  ;;  %v2485_v36 = vld [vmem:[%s5247_s1 + $0x1a8] sm:$0xff] }
0x171e   :  { %v2043_v54 = vpop.xlane.xlu1 %2042 }
0x171f   :  { %vm2044_vm15 = vcmp.eq.f32.partialorder %v2040_v35, %v2043_v54 }
0x1720   :  { %v2045_v37 = vsel %vm2044_vm15, %v4576_v12, 16.0 }
0x1721   :  { %v2046_v38 = vsel %vm105_vm3, %v2045_v37, inf  ;;  %v2486_v37 = vld [vmem:[%s5247_s1 + $0x1b0] sm:$0xff] }
0x1722   :  { %2047 = vmin.xlane.f32.xlu1 %v2046_v38  ;;  %v2487_v38 = vld [vmem:[%s5247_s1 + $0x1b8] sm:$0xff] }
0x1723   :  { %v4313_v39 = vpack.c.bf16 %v2487_v38, %v2486_v37 }
0x1761   :  { %v2030_v42 = vpop.f32.mrb[14].mxu0 }
0x1762   :  { %v4026_v43 = vpop.f32.mrb[15].mxu0 }
0x17af   :  { %v2048_v47 = vpop.xlane.xlu1 %2047 }
0x17b0   :  { %vm2049_vm6 = vcmp.eq.f32.partialorder %v4576_v12, %v2048_v47 }
0x17b1   :  { %v3645_v49 = vsel %vm2049_vm6, 1.0, %v4501_v5 }
0x17b2   :  { %v2052_v50 = vadd.f32 %v3645_v49, %v1960_v44  ;;  %4032 = vmatmul.mubr.msk.f32.vlgmr.msra.gmra.mrb[24].mxu1 %vm117_vm5, %v3645_v49  ;;  %vm2131_vm1 = vcmp.gt.f32.partialorder %v3645_v49, 0.5 }
0x17b3   :  { %4278 = vmatpush3.bf16.msra.mxu1 %v4275_v41  ;;  %4049 = vmatprep.mubr.msk.f32.mxu1 %vm25_vm0, %v4885_v8  ;;  %v2132_v51 = vsel %vm2131_vm1, -1e+30, %v2040_v35  ;;  %v2484_v35 = vld [vmem:[%s5247_s1 + $0x1a0] sm:$0xff] }
0x17b4   :  { %v2133_v52 = vsel %vm105_vm3, %v2132_v51, -inf  ;;  %4280 = vmatprep.subr.bf16.mxu1 %v4279_v48  ;;  %v4310_v54 = vpack.c.bf16 %v2485_v36, %v2484_v35 }
0x17b5   :  { %2134 = vmax.xlane.f32.xlu1 %v2133_v52 }
0x17b7   :  { %4282 = vmatpush3.bf16.msra.mxu1 %v4279_v48 }
0x17b8   :  { %4291 = vmatprep.subr.bf16.mxu1 %v4499_v2 }
0x17ba   :  { %4050 = vmatmul.mubr.msk.f32.vlgmr.msra.gmra.mrb[26].mxu1 %vm25_vm0, %v4889_v10 }
0x17bb   :  { %4095 = vmatprep.mubr.msk.f32.mxu1 %vm4500_vm2, %v4501_v5  ;;  %4293 = vmatpush3.bf16.msra.mxu1 %v4292_v19 }
0x17bc   :  { %4294 = vmatprep.subr.bf16.mxu1 %v4499_v2 }
0x17bf   :  { %4296 = vmatpush3.bf16.msra.mxu1 %v4295_v21 }
0x17c0   :  { %4297 = vmatprep.subr.bf16.mxu1 %v4499_v2 }
0x17c3   :  { %4299 = vmatpush3.bf16.msra.mxu1 %v4298_v24 }
0x17c4   :  { %4300 = vmatprep.subr.bf16.mxu1 %v4499_v2 }
0x17c7   :  { %4302 = vmatpush3.bf16.msra.mxu1 %v4301_v27 }
0x17c8   :  { %4303 = vmatprep.subr.bf16.mxu1 %v4499_v2 }
0x17cb   :  { %4305 = vmatpush3.bf16.msra.mxu1 %v4304_v31 }
0x17cc   :  { %4306 = vmatprep.subr.bf16.mxu1 %v4499_v2 }
0x17cf   :  { %4308 = vmatpush3.bf16.msra.mxu1 %v4307_v34 }
0x17d0   :  { %4309 = vmatprep.subr.bf16.mxu1 %v4499_v2 }
0x17d3   :  { %4311 = vmatpush3.bf16.msra.mxu1 %v4310_v54 }
0x17d4   :  { %4312 = vmatprep.subr.bf16.mxu1 %v4499_v2 }
0x17d7   :  { %4314 = vmatpush3.bf16.msra.mxu1 %v4313_v39 }
0x1842   :  { %v2135_v0 = vpop.xlane.xlu1 %2134 }
0x1843   :  { %vm2136_vm14 = vcmp.eq.f32.partialorder %v2132_v51, %v2135_v0 }
0x1844   :  { %v2137_v1 = vsel %vm2136_vm14, %v4576_v12, 16.0 }
0x1845   :  { %v2138_v53 = vsel %vm105_vm3, %v2137_v1, inf }
0x1846   :  { %2139 = vmin.xlane.f32.xlu1 %v2138_v53 }
0x1857   :  { %2035 = vrot.lane.b32.xlu1 %v2030_v42, %s4502_s23 }
0x1885   :  { %v2122_v59 = vpop.f32.mrb[24].mxu1 }
0x1886   :  { %v4033_v60 = vpop.f32.mrb[25].mxu1  ;;  %2127 = vrot.lane.b32.xlu1 %v2122_v59, %s4503_s7 }
0x188d   :  { %v4051_v62 = vpop.f32.mrb[26].mxu1 }
0x188e   :  { %v4972_v63 = vadd.f32 %v4051_v62, %v3649_v61  ;;  %v2298_v3 = vpop.f32.mrb[27].mxu1 }
0x188f   :  { %v4974_v6 = vadd.f32 %v3649_v61, %v2298_v3 }
0x1890   :  { %v2312_v7 = vsel %vm25_vm0, %v4972_v63, 0.0 }
0x1891   :  { %2313 = vadd.xlane.f32.xlu0 %v2312_v7  ;;  %v2309_v45 = vsel %vm25_vm0, %v4974_v6, 0.0 }
0x18d3   :  { %v2140_v11 = vpop.xlane.xlu1 %2139 }
0x18d4   :  { %vm2141_vm15 = vcmp.eq.f32.partialorder %v4576_v12, %v2140_v11 }
0x18d5   :  { %v3647_v14 = vsel %vm2141_vm15, 1.0, %v4501_v5 }
0x18d6   :  { %v4986_v4 = vadd.f32 %v3647_v14, %v2052_v50  ;;  %4039 = vmatmul.mubr.msk.f32.vlgmr.msra.gmra.mrb[16].mxu0 %vm117_vm5, %v3647_v14  ;;  %v3659_v50 = vld [vmem:[%s5248_s2 + $0x15] ss:$0 sm:$0xff] }
0x18d7   :  { %4286 = vmatpush3.bf16.msra.mxu0 %v4283_v58  ;;  %4060 = vmatprep.mubr.msk.f32.mxu0 %vm25_vm0, %v4885_v8  ;;  %v2036_v15 = vpop.permute.xlu1 %2035 }
0x18d8   :  { %2038 = vst.msk [vmem:[#allocation3] sm:$0xf] %vm284_vm4, %v2036_v15  ;;  %4288 = vmatprep.subr.bf16.mxu0 %v4287_v13 }
0x18db   :  { %4290 = vmatpush3.bf16.msra.mxu0 %v4287_v13 }
0x18dc   :  { %4315 = vmatprep.subr.bf16.mxu0 %v4499_v2 }
0x18de   :  { %4061 = vmatmul.mubr.msk.f32.vlgmr.msra.gmra.mrb[18].mxu0 %vm25_vm0, %v4889_v10 }
0x18df   :  { %4102 = vmatprep.mubr.msk.f32.mxu0 %vm4500_vm2, %v4501_v5 }
0x18f8   :  { %v2128_v12 = vpop.permute.xlu1 %2127 }
0x18f9   :  { %2130 = vst.msk [vmem:[#allocation3] sm:$0xf] %vm377_vm7, %v2128_v12 }
0x191e   :  { %v2314_v49 = vpop.xlane.xlu0 %2313 }
0x191f   :  { %v2316_v51 = vmul.f32 0.03125, %v2314_v49 }
0x1921   :  { %v2318_v56 = vsub.f32 %v4972_v63, %v2316_v51 }
0x1923   :  { %v2320_v60 = vmul.f32 %v2318_v56, %v2318_v56 }
0x1925   :  { %v2324_v61 = vsel %vm25_vm0, %v2320_v60, 0.0 }
0x19a9   :  { %v2214_v40 = vpop.f32.mrb[16].mxu0 }
0x19aa   :  { %2219 = vrot.lane.b32.xlu1 %v2214_v40, %s4504_s26  ;;  %v4040_v41 = vpop.f32.mrb[17].mxu0 }
0x19b1   :  { %v4062_v42 = vpop.f32.mrb[18].mxu0 }
0x19b2   :  { %v2422_v43 = vpop.f32.mrb[19].mxu0 }
0x19ce   :  { %2310 = vadd.xlane.f32.xlu1 %v2309_v45 }
0x1a1c   :  { %v2220_v46 = vpop.permute.xlu1 %2219 }
0x1a1d   :  { %2222 = vst.msk [vmem:[#allocation3] sm:$0xf] %vm470_vm8, %v2220_v46 }
0x1a24   :  { %v2471_v47 = vld [vmem:[#allocation3] sm:$0xf] }
0x1a25   :  { %4096 = vmatmul.mubr.f32.vlgmr.msra.gmra.mrb[28].mxu1 %v2471_v47  ;;  %v3660_v47 = vld [vmem:[%s5248_s2 + $0x1c] ss:$0 sm:$0xff] }
0x1a5b   :  { %v2311_v44 = vpop.xlane.xlu1 %2310 }
0x1a5c   :  { %v2315_v48 = vmul.f32 0.03125, %v2311_v44 }
0x1a5e   :  { %v2317_v52 = vsub.f32 %v4974_v6, %v2315_v48  ;;  %v3654_v6 = vld [vmem:[%s5248_s2 + $0x16] ss:$0 sm:$0xff]  ;;  %v3661_v48 = vld [vmem:[%s5248_s2 + $0x1d] ss:$0 sm:$0xff] }
0x1a5f   :  { %v2423_v11 = vadd.f32 %v3654_v6, %v2422_v43  ;;  %v2428_v16 = vadd.f32 %v4062_v42, %v3654_v6 }
0x1a60   :  { %v2319_v58 = vmul.f32 %v2317_v52, %v2317_v52 }
0x1a61   :  { %v2433_v18 = vsel %vm25_vm0, %v2423_v11, 0.0  ;;  %v2436_v19 = vsel %vm25_vm0, %v2428_v16, 0.0 }
0x1a62   :  { %v2321_v59 = vsel %vm25_vm0, %v2319_v58, 0.0 }
0x1af8   :  { %v2559_v0 = vpop.f32.mrb[28].mxu1 }
0x1af9   :  { %v2560_v1 = vadd.f32 %v3659_v50, %v2559_v0  ;;  %v4097_v53 = vpop.f32.mrb[29].mxu1 }
0x1afb   :  { %v2565_v57 = vsel %vm191_vm9, %v2560_v1, 0.0 }
0x1afc   :  { %2566 = vadd.xlane.f32.xlu0 %v2565_v57 }
0x1b00   :  { %2322 = vadd.xlane.f32.xlu0 %v2321_v59  ;;  %v3657_v59 = vld [vmem:[%s5248_s2 + $0x1e] ss:$0 sm:$0xff] }
0x1b04   :  { %2325 = vadd.xlane.f32.xlu0 %v2324_v61 }
0x1b89   :  { %v2567_v62 = vpop.xlane.xlu0 %2566 }
0x1b8a   :  { %v2568_v3 = vmul.f32 0.03125, %v2567_v62 }
0x1b8c   :  { %v2569_v7 = vsub.f32 %v2560_v1, %v2568_v3  ;;  %v3658_v3 = vld [vmem:[%s5248_s2 + $0x1f] ss:$0 sm:$0xff] }
0x1b8d   :  { %v2323_v55 = vpop.xlane.xlu0 %2322 }
0x1b8e   :  { %v2327_v63 = vmul.f32 0.03125, %v2323_v55  ;;  %v2570_v9 = vmul.f32 %v2569_v7, %v2569_v7 }
0x1b90   :  { %v2329_v13 = vadd.f32 1e-05, %v2327_v63  ;;  %v2571_v14 = vsel %vm191_vm9, %v2570_v9, 0.0 }
0x1b91   :  { %2572 = vadd.xlane.f32.xlu0 %v2571_v14  ;;  %v2326_v15 = vpop.xlane.xlu0 %2325 }
0x1b92   :  { %4419 = vrsqrt.f32 %v2329_v13  ;;  %v2328_v12 = vmul.f32 0.03125, %v2326_v15 }
0x1b94   :  { %v2330_v17 = vadd.f32 1e-05, %v2328_v12 }
0x1b95   :  { %2434 = vadd.xlane.f32.xlu0 %v2433_v18 }
0x1b96   :  { %4421 = vrsqrt.f32 %v2330_v17 }
0x1b99   :  { %2437 = vadd.xlane.f32.xlu0 %v2436_v19 }
0x1b9c   :  { %v4420_v20 = vpop.eup %4419 }
0x1b9d   :  { %v2333_v21 = vmul.f32 %v4420_v20, %v2317_v52 }
0x1b9f   :  { %v2339_v24 = vmul.f32 %v3652_v22, %v2333_v21 }
0x1ba0   :  { %v4422_v23 = vpop.eup %4421 }
0x1ba1   :  { %v2334_v25 = vmul.f32 %v4422_v23, %v2318_v56  ;;  %v2345_v28 = vadd.f32 %v3653_v26, %v2339_v24 }
0x1ba3   :  { %v2340_v27 = vmul.f32 %v3652_v22, %v2334_v25 }
0x1ba5   :  { %v2346_v29 = vadd.f32 %v3653_v26, %v2340_v27 }
0x1ba7   :  { %v4316_v31 = vpack.c.bf16 %v2346_v29, %v2345_v28  ;;  %v4377_v32 = vpack.i.bf16 %v2346_v29, %v2345_v28 }
0x1ba9   :  { %4318 = vmatpush3.bf16.xpose.msk.msra.mxu0 %vm4745_vm10, %v4316_v31 }
0x1baa   :  { %4319 = vmatprep.subr.bf16.mxu0 %v4499_v2 }
0x1c1e   :  { %v2573_v33 = vpop.xlane.xlu0 %2572 }
0x1c1f   :  { %v2574_v34 = vmul.f32 0.03125, %v2573_v33 }
0x1c21   :  { %v2575_v35 = vadd.f32 1e-05, %v2574_v34 }
0x1c22   :  { %v2435_v36 = vpop.xlane.xlu0 %2434 }
0x1c23   :  { %4423 = vrsqrt.f32 %v2575_v35  ;;  %v2439_v54 = vmul.f32 0.03125, %v2435_v36 }
0x1c25   :  { %v2441_v37 = vsub.f32 %v2423_v11, %v2439_v54 }
0x1c26   :  { %v2438_v38 = vpop.xlane.xlu0 %2437 }
0x1c27   :  { %v2440_v39 = vmul.f32 0.03125, %v2438_v38  ;;  %v2443_v40 = vmul.f32 %v2441_v37, %v2441_v37 }
0x1c29   :  { %v2442_v41 = vsub.f32 %v2428_v16, %v2440_v39  ;;  %v2445_v42 = vsel %vm25_vm0, %v2443_v40, 0.0 }
0x1c2a   :  { %2446 = vadd.xlane.f32.xlu0 %v2445_v42 }
0x1c2b   :  { %v2444_v43 = vmul.f32 %v2442_v41, %v2442_v41 }
0x1c2d   :  { %v4424_v45 = vpop.eup %4423  ;;  %v2448_v46 = vsel %vm25_vm0, %v2444_v43, 0.0 }
0x1c2e   :  { %v2577_v44 = vmul.f32 %v4424_v45, %v2569_v7  ;;  %2449 = vadd.xlane.f32.xlu1 %v2448_v46 }
0x1c30   :  { %v2582_v49 = vmul.f32 %v3660_v47, %v2577_v44 }
0x1c32   :  { %v2587_v50 = vadd.f32 %v3661_v48, %v2582_v49 }
0x1c34   :  { %4103 = vmatmul.mubr.msk.f32.vlgmr.msra.gmra.mrb[20].mxu0 %vm117_vm5, %v2587_v50 }
0x1c35   :  { %4109 = vmatprep.mubr.msk.f32.mxu0 %vm4500_vm2, %v4501_v5 }
0x1c3f   :  { %2763 = vrot.lane.b32.xlu1 %v2587_v50, %s4505_s11 }
0x1c40   :  { %4378 = vrot.lane.b32.xlu0 %v4377_v32, %s4505_s11 }
0x1cb7   :  { %v2447_v51 = vpop.xlane.xlu0 %2446 }
0x1cb8   :  { %v2451_v52 = vmul.f32 0.03125, %v2447_v51 }
0x1cba   :  { %v2453_v0 = vadd.f32 1e-05, %v2451_v52 }
0x1cbb   :  { %v2450_v1 = vpop.xlane.xlu1 %2449  ;;  %v4379_v32 = vpop.permute.xlu0 %4378 }
0x1cbc   :  { %4425 = vrsqrt.f32 %v2453_v0  ;;  %v2452_v53 = vmul.f32 0.03125, %v2450_v1  ;;  %v4381_v33 = vunpack.i.h.bf16 %v4379_v32  ;;  %v4380_v34 = vunpack.i.l.bf16 %v4379_v32  ;;  %v3673_v32 = vld [vmem:[%s5248_s2 + $0x21] ss:$0 sm:$0xff] }
0x1cbe   :  { %v2454_v56 = vadd.f32 1e-05, %v2452_v53  ;;  %v4323_v54 = vpack.c.bf16 %v4381_v33, %v4380_v34 }
0x1cc0   :  { %4427 = vrsqrt.f32 %v2454_v56 }
0x1cc6   :  { %v4426_v57 = vpop.eup %4425 }
0x1cc7   :  { %v2457_v58 = vmul.f32 %v4426_v57, %v2441_v37  ;;  %v2764_v37 = vpop.permute.xlu1 %2763 }
0x1cc9   :  { %v2463_v62 = vmul.f32 %v3657_v59, %v2457_v58 }
0x1cca   :  { %v4428_v60 = vpop.eup %4427 }
0x1ccb   :  { %v2458_v61 = vmul.f32 %v4428_v60, %v2442_v41  ;;  %v2469_v6 = vadd.f32 %v3658_v3, %v2463_v62 }
0x1ccd   :  { %v2464_v7 = vmul.f32 %v3657_v59, %v2458_v61 }
0x1ccf   :  { %v2470_v55 = vadd.f32 %v3658_v3, %v2464_v7 }
0x1cd1   :  { %v4382_v63 = vpack.i.bf16 %v2470_v55, %v2469_v6  ;;  %v4320_v9 = vpack.c.bf16 %v2470_v55, %v2469_v6  ;;  %v2953_v6 = vld [vmem:[%s5247_s1 + $0x1e0] sm:$0xff]  ;;  %v2954_v55 = vld [vmem:[%s5247_s1 + $0x1e8] sm:$0xff] }
0x1cd3   :  { %4383 = vrot.lane.b32.xlu1 %v4382_v63, %s4505_s11  ;;  %4321 = vmatpush3.bf16.msra.mxu0 %v4320_v9  ;;  %v4330_v63 = vpack.c.bf16 %v2954_v55, %v2953_v6  ;;  %v2955_v9 = vld [vmem:[%s5247_s1 + $0x1f0] sm:$0xff] }
0x1cd4   :  { %4322 = vmatprep.subr.bf16.mxu0 %v4499_v2 }
0x1d07   :  { %v2663_v11 = vpop.f32.mrb[20].mxu0 }
0x1d08   :  { %v2667_v13 = vmul.f32 0.25, %v2663_v11  ;;  %v4104_v14 = vpop.f32.mrb[21].mxu0  ;;  %v2956_v11 = vld [vmem:[%s5247_s1 + $0x1f8] sm:$0xff] }
0x1d0a   :  { %v2668_v15 = vsel %vm105_vm3, %v2667_v13, -inf }
0x1d0b   :  { %v2669_v12 = vrot.slane %v2668_v15, 4 }
0x1d0d   :  { %v2670_v16 = vmax.f32 %v2668_v15, %v2669_v12 }
0x1d0f   :  { %v2671_v17 = vrot.slane %v2670_v16, 2 }
0x1d11   :  { %v2672_v18 = vmax.f32 %v2670_v16, %v2671_v17  ;;  %v3670_v16 = vld [vmem:[%s5248_s2 + $0x17] ss:$0 sm:$0xff] }
0x1d13   :  { %v2673_v19 = vrot.slane %v2672_v18, 1 }
0x1d15   :  { %v2674_v20 = vmax.f32 %v2672_v18, %v2673_v19 }
0x1d17   :  { %v2675_v21 = vsub.f32 %v2667_v13, %v2674_v20  ;;  %v4333_v13 = vpack.c.bf16 %v2956_v11, %v2955_v9 }
0x1d19   :  { %v2676_v22 = vmul.f32 1.442695, %v2675_v21 }
0x1d1b   :  { %4429 = vpow2.f32 %v2676_v22 }
0x1d25   :  { %v4430_v23 = vpop.eup %4429 }
0x1d26   :  { %v2678_v24 = vsel %vm105_vm3, %v4430_v23, 0.0 }
0x1d27   :  { %v2679_v25 = vrot.slane %v2678_v24, 4 }
0x1d29   :  { %v2680_v26 = vadd.f32 %v2679_v25, %v2678_v24 }
0x1d2b   :  { %v2681_v27 = vrot.slane %v2680_v26, 2 }
0x1d2d   :  { %v2682_v28 = vadd.f32 %v2681_v27, %v2680_v26 }
0x1d2f   :  { %v2683_v29 = vrot.slane %v2682_v28, 1 }
0x1d31   :  { %v2684_v31 = vadd.f32 %v2683_v29, %v2682_v28  ;;  %v3672_v29 = vld [vmem:[%s5248_s2 + $0x20] ss:$0 sm:$0xff] }
0x1d33   :  { %4431 = vrcp.f32 %v2684_v31 }
0x1d3d   :  { %v4432_v35 = vpop.eup %4431 }
0x1d3e   :  { %v2686_v36 = vmul.f32 %v4432_v35, %v4430_v23 }
0x1d40   :  { %2688 = vst.msk [vmem:[#allocation6 + $0x8] sm:$0xf] %vm105_vm3, %v2686_v36  ;;  %4110 = vmatmul.mubr.msk.f32.vlgmr.msra.gmra.mrb[22].mxu0 %vm117_vm5, %v2686_v36 }
0x1d41   :  { %4325 = vmatpush3.bf16.xpose.msk.msra.mxu0 %vm4745_vm10, %v4323_v54  ;;  %4116 = vmatprep.mubr.msk.f32.mxu0 %vm4500_vm2, %v4501_v5 }
0x1d42   :  { %4326 = vmatprep.subr.bf16.mxu0 %v4499_v2 }
0x1d45   :  { %v4384_v38 = vpop.permute.xlu1 %4383 }
0x1d46   :  { %v4386_v39 = vunpack.i.h.bf16 %v4384_v38  ;;  %v4385_v40 = vunpack.i.l.bf16 %v4384_v38 }
0x1d48   :  { %v4327_v41 = vpack.c.bf16 %v4386_v39, %v4385_v40  ;;  %4117 = vmatmul.mubr.msk.f32.vlgmr.msra.gmra.mrb[24].mxu0 %vm117_vm5, %v2764_v37 }
0x1d49   :  { %4123 = vmatprep.mubr.msk.f32.mxu0 %vm4500_vm2, %v4501_v5 }
0x1d4a   :  { %4328 = vmatpush3.bf16.msra.mxu0 %v4327_v41 }
0x1d4b   :  { %4329 = vmatprep.subr.bf16.mxu0 %v4499_v2 }
0x1e13   :  { %v2758_v42 = vpop.f32.mrb[22].mxu0 }
0x1e14   :  { %2762 = vst.msk [vmem:[#allocation2] sm:$0xf] %vm105_vm3, %v2758_v42  ;;  %v4111_v30 = vpop.f32.mrb[23].mxu0 }
0x1e1b   :  { %v2841_v43 = vpop.f32.mrb[24].mxu0 }
0x1e1c   :  { %v2845_v45 = vmul.f32 0.25, %v2841_v43  ;;  %v4118_v46 = vpop.f32.mrb[25].mxu0 }
0x1e1e   :  { %v2846_v47 = vsel %vm105_vm3, %v2845_v45, -inf }
0x1e1f   :  { %v2847_v44 = vrot.slane %v2846_v47, 4 }
0x1e21   :  { %v2848_v48 = vmax.f32 %v2846_v47, %v2847_v44 }
0x1e23   :  { %v2849_v49 = vrot.slane %v2848_v48, 2 }
0x1e25   :  { %v2850_v50 = vmax.f32 %v2848_v48, %v2849_v49  ;;  %v3219_v49 = vld [vmem:[%s5247_s1 + $0x208] sm:$0xff] }
0x1e27   :  { %v2851_v51 = vrot.slane %v2850_v50, 1 }
0x1e29   :  { %v2852_v52 = vmax.f32 %v2850_v50, %v2851_v51  ;;  %v3220_v51 = vld [vmem:[%s5247_s1 + $0x210] sm:$0xff] }
0x1e2b   :  { %v2853_v0 = vsub.f32 %v2845_v45, %v2852_v52  ;;  %v3221_v52 = vld [vmem:[%s5247_s1 + $0x218] sm:$0xff] }
0x1e2d   :  { %v2854_v1 = vmul.f32 1.442695, %v2853_v0  ;;  %v4339_v0 = vpack.c.bf16 %v3221_v52, %v3220_v51 }
0x1e2f   :  { %4433 = vpow2.f32 %v2854_v1 }
0x1e39   :  { %v4434_v53 = vpop.eup %4433 }
0x1e3a   :  { %v2856_v56 = vsel %vm105_vm3, %v4434_v53, 0.0 }
0x1e3b   :  { %v2857_v57 = vrot.slane %v2856_v56, 4 }
0x1e3d   :  { %v2858_v58 = vadd.f32 %v2857_v57, %v2856_v56 }
0x1e3f   :  { %v2859_v59 = vrot.slane %v2858_v58, 2 }
0x1e41   :  { %v2860_v60 = vadd.f32 %v2859_v59, %v2858_v58 }
0x1e43   :  { %v2861_v61 = vrot.slane %v2860_v60, 1 }
0x1e45   :  { %v2862_v62 = vadd.f32 %v2861_v61, %v2860_v60  ;;  %v3677_v61 = vld [vmem:[%s5248_s2 + $0x22] ss:$0 sm:$0xff] }
0x1e47   :  { %4435 = vrcp.f32 %v2862_v62 }
0x1e51   :  { %v4436_v3 = vpop.eup %4435 }
0x1e52   :  { %v2864_v7 = vmul.f32 %v4436_v3, %v4434_v53  ;;  %v3678_v3 = vld [vmem:[%s5248_s2 + $0x23] ss:$0 sm:$0xff] }
0x1e54   :  { %2865 = vst.msk [vmem:[#allocation6 + $0xc] sm:$0xf] %vm105_vm3, %v2864_v7  ;;  %4124 = vmatmul.mubr.msk.f32.vlgmr.msra.gmra.mrb[26].mxu0 %vm117_vm5, %v2864_v7 }
0x1e55   :  { %4134 = vmatprep.mubr.msk.f32.mxu0 %vm4500_vm2, %v4501_v5  ;;  %4331 = vmatpush3.bf16.msra.mxu0 %v4330_v63 }
0x1e56   :  { %4332 = vmatprep.subr.bf16.mxu0 %v4499_v2 }
0x1e59   :  { %4334 = vmatpush3.bf16.msra.mxu0 %v4333_v13  ;;  %v3318_v13 = vld [vmem:[%s5247_s1 + $0x220] sm:$0xff] }
0x1f27   :  { %v2943_v5 = vpop.f32.mrb[26].mxu0 }
0x1f28   :  { %2948 = vrot.lane.b32.xlu0 %v2943_v5, %s4506_s29  ;;  %v4125_v14 = vpop.f32.mrb[27].mxu0  ;;  %v3319_v5 = vld [vmem:[%s5247_s1 + $0x228] sm:$0xff] }
0x1f29   :  { %v4343_v14 = vpack.c.bf16 %v3319_v5, %v3318_v13 }
0x1f9a   :  { %v2949_v15 = vpop.permute.xlu0 %2948 }
0x1f9b   :  { %2951 = vst.msk [vmem:[#allocation2] sm:$0xf] %vm1200_vm11, %v2949_v15  ;;  %v3679_v15 = vld [vmem:[%s5248_s2 + $0x18] ss:$0 sm:$0xff] }
0x1fa2   :  { %v2952_v12 = vld [vmem:[#allocation2] sm:$0xf] }
0x1fa3   :  { %4135 = vmatmul.mubr.msk.f32.vlgmr.msra.gmra.mrb[28].mxu0 %vm25_vm0, %v2952_v12 }
0x2076   :  { %v3031_v17 = vpop.f32.mrb[28].mxu0 }
0x2077   :  { %v3032_v18 = vadd.f32 %v3670_v16, %v3031_v17  ;;  %v4136_v19 = vpop.f32.mrb[29].mxu0 }
0x2079   :  { %v3037_v2 = vsel %vm191_vm9, %v3032_v18, 0.0 }
0x207a   :  { %3038 = vadd.xlane.f32.xlu1 %v3037_v2 }
0x2107   :  { %v3039_v20 = vpop.xlane.xlu1 %3038 }
0x2108   :  { %v3040_v21 = vmul.f32 0.03125, %v3039_v20 }
0x210a   :  { %v3041_v22 = vsub.f32 %v3032_v18, %v3040_v21 }
0x210c   :  { %v3042_v23 = vmul.f32 %v3041_v22, %v3041_v22 }
0x210e   :  { %v3043_v24 = vsel %vm191_vm9, %v3042_v23, 0.0 }
0x210f   :  { %3044 = vadd.xlane.f32.xlu0 %v3043_v24 }
0x213c   :  { %3060 = vxpose.xlu0.b32.start.end [1/1] (short) (narrow) %v4986_v4, 16 }
0x219c   :  { %v3045_v25 = vpop.xlane.xlu0 %3044 }
0x219d   :  { %v3046_v26 = vmul.f32 0.03125, %v3045_v25 }
0x219f   :  { %v3047_v27 = vadd.f32 1e-05, %v3046_v26 }
0x21a1   :  { %4437 = vrsqrt.f32 %v3047_v27 }
0x21ab   :  { %v4438_v28 = vpop.eup %4437 }
0x21ac   :  { %v3049_v31 = vmul.f32 %v4438_v28, %v3041_v22  ;;  %v3682_v28 = vld [vmem:[%s5248_s2 + $0x19] ss:$0 sm:$0xff] }
0x21ae   :  { %v3054_v33 = vmul.f32 %v3672_v29, %v3049_v31 }
0x21b0   :  { %v3059_v34 = vadd.f32 %v3673_v32, %v3054_v33 }
0x21b2   :  { %4137 = vmatprep.subr.msk.mxu1 %vm1349_vm12, %v3059_v34 }
0x21b3   :  { %4138 = vmatpush3.msk.msra.mxu1 %vm1349_vm12, %v3059_v34 }
0x21b4   :  { %4344 = vmatprep.subr.bf16.mxu1 %v4343_v14 }
0x21bc   :  { %v3076_v4 = vpop.trf.xlu0 }
0x21bd   :  { %4139 = vmatprep.mubr.msk.f32.mxu1 %vm1342_vm13, %v3076_v4 }
0x21c0   :  { %v3077_v35 = vpop.trf.xlu0 }
0x21c1   :  { %4140 = vmatmul.mubr.msk.f32.vlgmr.msra.gmra.mrb[30].mxu1 %vm1342_vm13, %v3077_v35 }
0x21c2   :  { %4346 = vmatpush3.bf16.msra.mxu1 %v4343_v14 }
0x2294   :  { %v4141_v36 = vpop.f32.mrb[30].mxu1 }
0x2295   :  { %v3167_v54 = vpop.f32.mrb[31].mxu1  ;;  %v3177_v38 = vadd.f32 %v4141_v36, %v4889_v10  ;;  %v3218_v10 = vld [vmem:[%s5247_s1 + $0x200] sm:$0xff] }
0x2296   :  { %v3176_v37 = vadd.f32 %v3167_v54, %v4885_v8  ;;  %v4335_v50 = vpack.c.bf16 %v3219_v49, %v3218_v10 }
0x2297   :  { %v3183_v40 = vsel %vm25_vm0, %v3177_v38, 0.0 }
0x2298   :  { %v3180_v39 = vsel %vm25_vm0, %v3176_v37, 0.0  ;;  %4336 = vmatprep.subr.bf16.mxu0 %v4335_v50 }
0x2299   :  { %3181 = vadd.xlane.f32.xlu1 %v3180_v39  ;;  %4338 = vmatpush3.bf16.msra.mxu0 %v4335_v50 }
0x229a   :  { %4340 = vmatprep.subr.bf16.mxu0 %v4339_v0 }
0x229d   :  { %3184 = vadd.xlane.f32.xlu1 %v3183_v40  ;;  %4342 = vmatpush3.bf16.msra.mxu0 %v4339_v0 }
0x2326   :  { %v3182_v41 = vpop.xlane.xlu1 %3181 }
0x2327   :  { %v3186_v42 = vmul.f32 0.03125, %v3182_v41 }
0x2329   :  { %v3188_v30 = vsub.f32 %v3176_v37, %v3186_v42 }
0x232a   :  { %v3185_v43 = vpop.xlane.xlu1 %3184 }
0x232b   :  { %v3187_v45 = vmul.f32 0.03125, %v3185_v43  ;;  %v3190_v46 = vmul.f32 %v3188_v30, %v3188_v30 }
0x232d   :  { %v3189_v47 = vsub.f32 %v3177_v38, %v3187_v45  ;;  %v3192_v44 = vsel %vm25_vm0, %v3190_v46, 0.0  ;;  %v3448_v46 = vld [vmem:[%s5247_s1 + $0x230] sm:$0xff] }
0x232e   :  { %3193 = vadd.xlane.f32.xlu1 %v3192_v44 }
0x232f   :  { %v3191_v48 = vmul.f32 %v3189_v47, %v3189_v47 }
0x2331   :  { %v3195_v8 = vsel %vm25_vm0, %v3191_v48, 0.0  ;;  %v3450_v48 = vld [vmem:[%s5247_s1 + $0x240] sm:$0xff] }
0x2332   :  { %3196 = vadd.xlane.f32.xlu1 %v3195_v8  ;;  %v3451_v8 = vld [vmem:[%s5247_s1 + $0x248] sm:$0xff] }
0x2333   :  { %v4351_v10 = vpack.c.bf16 %v3451_v8, %v3450_v48 }
0x23bb   :  { %v3194_v1 = vpop.xlane.xlu1 %3193 }
0x23bc   :  { %v3198_v53 = vmul.f32 0.03125, %v3194_v1 }
0x23be   :  { %v3200_v56 = vadd.f32 1e-05, %v3198_v53 }
0x23bf   :  { %v3197_v57 = vpop.xlane.xlu1 %3196 }
0x23c0   :  { %4439 = vrsqrt.f32 %v3200_v56  ;;  %v3199_v58 = vmul.f32 0.03125, %v3197_v57  ;;  %v3685_v56 = vld [vmem:[%s5248_s2 + $0x24] ss:$0 sm:$0xff] }
0x23c2   :  { %v3201_v59 = vadd.f32 1e-05, %v3199_v58  ;;  %v3686_v58 = vld [vmem:[%s5248_s2 + $0x25] ss:$0 sm:$0xff] }
0x23c4   :  { %4441 = vrsqrt.f32 %v3201_v59 }
0x23ca   :  { %v4440_v60 = vpop.eup %4439 }
0x23cb   :  { %v3204_v62 = vmul.f32 %v4440_v60, %v3188_v30 }
0x23cd   :  { %v3210_v7 = vmul.f32 %v3677_v61, %v3204_v62 }
0x23ce   :  { %v4442_v6 = vpop.eup %4441 }
0x23cf   :  { %v3205_v55 = vmul.f32 %v4442_v6, %v3189_v47  ;;  %v3216_v63 = vadd.f32 %v3678_v3, %v3210_v7  ;;  %v3449_v47 = vld [vmem:[%s5247_s1 + $0x238] sm:$0xff]  ;;  %s4507_s1 = smov [#allocation6]  }
0x23d0   :  { %v4347_v44 = vpack.c.bf16 %v3449_v47, %v3448_v46  ;;  %s3568_s10 = sshll.u32 %s4507_s1, 4  ;;  %s3569_s10 = int_to_ptr.vmem [resolvable:$true] %s3568_s10 }
0x23d1   :  { %v3211_v9 = vmul.f32 %v3677_v61, %v3205_v55  ;;  %4150 = vmatprep.mubr.msk.f32.mxu0 %vm25_vm0, %v3216_v63  ;;  %s4451_s12 = scalar_lea.vmem %s3569_s10, 256  ;;  %p4456_p1 = scmp.lt.s32.totalorder %s3569_s10, %s3569_s10 }
0x23d2   :  { %4348 = vmatprep.subr.bf16.mxu1 %v4347_v44  ;;  %p4452_p0 = scmp.ne.s32.totalorder %s3569_s10, %s4451_s12  ;;  %p4457_p2 = scmp.lt.s32.totalorder %s4451_s12, %s4451_s12 }
0x23d3   :  { %v3217_v11 = vadd.f32 %v3678_v3, %v3211_v9 }
0x23d4   :  { %p4458_p3 = por %p4457_p2, %p4456_p1 }
0x23d5   :  { %4151 = vmatmul.mubr.msk.f32.vlgmr.msra.gmra.mrb[30].mxu0 %vm25_vm0, %v3217_v11 }
0x23d6   :  { %p4459_p4 = pnand %p4458_p3, %p4452_p0 }
0x24a8   :  { %v4152_v12 = vpop.f32.mrb[30].mxu0 }
0x24a9   :  { %v3305_v16 = vadd.f32 %v4152_v12, %v3679_v15  ;;  %v3299_v17 = vpop.f32.mrb[31].mxu0 }
0x24aa   :  { %v3300_v18 = vadd.f32 %v3679_v15, %v3299_v17 }
0x24ab   :  { %v3311_v19 = vmul.f32 0.70710677, %v3305_v16  ;;  %v3309_v25 = vmul.f32 0.5, %v3305_v16 }
0x24ac   :  { %v3310_v2 = vmul.f32 0.70710677, %v3300_v18  ;;  %v3308_v23 = vmul.f32 0.5, %v3300_v18 }
0x24ad   :  { %4443 = verf.f32 %v3311_v19 }
0x24ae   :  { %4445 = verf.f32 %v3310_v2 }
0x24b7   :  { %v4444_v20 = vpop.eup %4443 }
0x24b8   :  { %v4446_v21 = vpop.eup %4445  ;;  %v3315_v22 = vadd.f32 1.0, %v4444_v20 }
0x24b9   :  { %v3314_v24 = vadd.f32 1.0, %v4446_v21 }
0x24ba   :  { %v3317_v27 = vmul.f32 %v3315_v22, %v3309_v25 }
0x24bb   :  { %v3316_v26 = vmul.f32 %v3314_v24, %v3308_v23 }
0x24bd   :  { %4157 = vmatprep.mubr.msk.f32.mxu1 %vm117_vm5, %v3316_v26 }
0x24be   :  { %4158 = vmatmul.mubr.msk.f32.vlgmr.msra.gmra.mrb[32].mxu1 %vm117_vm5, %v3317_v27 }
0x24bf   :  { %4350 = vmatpush3.bf16.msra.mxu1 %v4347_v44 }
0x24c0   :  { %4352 = vmatprep.subr.bf16.mxu1 %v4351_v10 }
0x24c3   :  { %4354 = vmatpush3.bf16.msra.mxu1 %v4351_v10 }
0x2591   :  { %v4159_v29 = vpop.f32.mrb[32].mxu1 }
0x2592   :  { %v3397_v31 = vpop.f32.mrb[33].mxu1  ;;  %v3403_v32 = vadd.f32 %v4159_v29, %v3682_v28 }
0x2593   :  { %v3398_v33 = vadd.f32 %v3682_v28, %v3397_v31 }
0x2594   :  { %v3407_v35 = vadd.f32 %v3403_v32, %v3217_v11 }
0x2595   :  { %v3406_v34 = vadd.f32 %v3398_v33, %v3216_v63 }
0x2596   :  { %v3413_v36 = vsel %vm25_vm0, %v3407_v35, 0.0 }
0x2597   :  { %v3410_v4 = vsel %vm25_vm0, %v3406_v34, 0.0 }
0x2598   :  { %3411 = vadd.xlane.f32.xlu1 %v3410_v4 }
0x259c   :  { %3414 = vadd.xlane.f32.xlu1 %v3413_v36 }
0x2625   :  { %v3412_v54 = vpop.xlane.xlu1 %3411 }
0x2626   :  { %v3416_v37 = vmul.f32 0.03125, %v3412_v54 }
0x2628   :  { %v3418_v38 = vsub.f32 %v3406_v34, %v3416_v37 }
0x2629   :  { %v3415_v39 = vpop.xlane.xlu1 %3414 }
0x262a   :  { %v3417_v40 = vmul.f32 0.03125, %v3415_v39  ;;  %v3420_v41 = vmul.f32 %v3418_v38, %v3418_v38 }
0x262c   :  { %v3419_v42 = vsub.f32 %v3407_v35, %v3417_v40  ;;  %v3422_v30 = vsel %vm25_vm0, %v3420_v41, 0.0 }
0x262d   :  { %3423 = vadd.xlane.f32.xlu1 %v3422_v30 }
0x262e   :  { %v3421_v43 = vmul.f32 %v3419_v42, %v3419_v42 }
0x2630   :  { %v3425_v45 = vsel %vm25_vm0, %v3421_v43, 0.0 }
0x2631   :  { %3426 = vadd.xlane.f32.xlu1 %v3425_v45 }
0x26ba   :  { %v3424_v49 = vpop.xlane.xlu1 %3423 }
0x26bb   :  { %v3428_v50 = vmul.f32 0.03125, %v3424_v49 }
0x26bd   :  { %v3430_v51 = vadd.f32 1e-05, %v3428_v50 }
0x26be   :  { %v3427_v52 = vpop.xlane.xlu1 %3426 }
0x26bf   :  { %4447 = vrsqrt.f32 %v3430_v51  ;;  %v3429_v0 = vmul.f32 0.03125, %v3427_v52 }
0x26c1   :  { %v3431_v1 = vadd.f32 1e-05, %v3429_v0 }
0x26c3   :  { %4449 = vrsqrt.f32 %v3431_v1 }
0x26c9   :  { %v4448_v53 = vpop.eup %4447 }
0x26ca   :  { %v3434_v57 = vmul.f32 %v4448_v53, %v3418_v38 }
0x26cc   :  { %v3440_v59 = vmul.f32 %v3685_v56, %v3434_v57 }
0x26cd   :  { %v4450_v60 = vpop.eup %4449 }
0x26ce   :  { %v3435_v61 = vmul.f32 %v4450_v60, %v3419_v42  ;;  %v3446_v62 = vadd.f32 %v3686_v58, %v3440_v59 }
0x26d0   :  { %v3441_v3 = vmul.f32 %v3685_v56, %v3435_v61  ;;  %4168 = vmatprep.mubr.msk.f32.mxu1 %vm25_vm0, %v3446_v62 }
0x26d2   :  { %v3447_v7 = vadd.f32 %v3686_v58, %v3441_v3 }
0x26d4   :  { %4169 = vmatmul.mubr.msk.f32.vlgmr.msra.gmra.mrb[34].mxu1 %vm25_vm0, %v3447_v7 }
0x26d5   :  { %4462 = shalt.err (!%p4459_p4)
}
0x26d6   :  { %s4463_s15 = scalar_lea.hbm %s5251_s5, 256 }
0x26d7   :  { %p4464_p5 = scmp.ne.s32.totalorder %s5251_s5, %s4463_s15  ;;  %p4467_p6 = scmp.lt.u32.totalorder %s4463_s15, %s5251_s5 }
0x26d9   :  { %p4469_p7 = pnand %p4467_p6, %p4464_p5 }
0x26db   :  { %4472 = shalt.err (!%p4469_p7)
}
0x26dc   :  { %s4508_s7 = smov 128   ;;  %s4509_s18 = smov 8   ;;  %v3687_v6 = vld [vmem:[%s5248_s2 + $0x26] ss:$0 sm:$0xff]  ;;  %vm3549_vm0 = vcmask 24576  }
0x26dd   :  { %3574 = dma.vmem_to_hbm [thread:$0]  %s3569_s10, 256, %s5251_s5, [#allocation7], %s4508_s7, %s4508_s7, %s4509_s18  }
0x26de   :  { %s4510_s22 = smov [#allocation4]  }
0x26df   :  { %s3557_s5 = sshll.u32 %s4510_s22, 4  ;;  %s3558_s5 = int_to_ptr.vmem [resolvable:$true] %s3557_s5 }
0x26e0   :  { %s4473_s2 = scalar_lea.vmem %s3558_s5, 16  ;;  %s4477_s4 = scalar_lea.vmem %s3558_s5, 32 }
0x26e1   :  { %p4474_p8 = scmp.ne.s32.totalorder %s3558_s5, %s4473_s2  ;;  %p4478_p9 = scmp.lt.s32.totalorder %s3558_s5, %s3558_s5 }
0x26e2   :  { %p4479_p10 = scmp.lt.s32.totalorder %s4477_s4, %s4473_s2 }
0x26e4   :  { %p4480_p11 = por %p4479_p10, %p4478_p9 }
0x26e6   :  { %p4481_p12 = pnand %p4480_p11, %p4474_p8 }
0x27a7   :  { %v4170_v55 = vpop.f32.mrb[34].mxu1 }
0x27a8   :  { %v3535_v63 = vadd.f32 %v4170_v55, %v3687_v6  ;;  %v3529_v9 = vpop.f32.mrb[35].mxu1 }
0x27a9   :  { %v3530_v11 = vadd.f32 %v3687_v6, %v3529_v9 }
0x27aa   :  { %v3539_v13 = vsel %vm1342_vm13, %v3535_v63, 0.0 }
0x27ab   :  { %v3538_v5 = vsel %vm1342_vm13, %v3530_v11, 0.0 }
0x27ac   :  { %v3540_v14 = vadd.f32 %v3539_v13, %v3538_v5 }
0x27ae   :  { %v3541_v15 = vrot.slane %v3540_v14, 4 }
0x27b0   :  { %v3542_v12 = vadd.f32 %v3541_v15, %v3540_v14 }
0x27b2   :  { %v3543_v16 = vrot.slane %v3542_v12, 2 }
0x27b4   :  { %v3544_v17 = vadd.f32 %v3543_v16, %v3542_v12 }
0x27b6   :  { %v3545_v18 = vrot.slane %v3544_v17, 1 }
0x27b8   :  { %v3546_v19 = vadd.f32 %v3545_v18, %v3544_v17 }
0x27ba   :  { %v3548_v2 = vmul.f32 0.0625, %v3546_v19 }
0x27bc   :  { %3550 = vst.msk [vmem:[#allocation4] sm:$0x1] %vm3549_vm0, %v3548_v2 }
0x27bd   :  { %4484 = shalt.err (!%p4481_p12)
}
0x27be   :  { %s4485_s25 = scalar_lea.hbm %s5249_s3, 16 }
0x27bf   :  { %p4486_p13 = scmp.ne.s32.totalorder %s5249_s3, %s4485_s25  ;;  %p4489_p0 = scmp.lt.u32.totalorder %s4485_s25, %s5249_s3 }
0x27c1   :  { %p4491_p1 = pnand %p4489_p0, %p4486_p13 }
0x27c3   :  { %4494 = shalt.err (!%p4491_p1)
}
0x27c4   :  { %3560 = dma.vmem_to_hbm [thread:$0]  %s3558_s5, 16, %s5249_s3, [#allocation5]  }
0x27c5   :  { %4495 = dma.done.wait [#allocation5], 16  }
0x27c6   :  { %4496 = vsyncadd [#allocation5], 4294967280 }
0x27c7   :  { %4497 = dma.done.wait [#allocation7], 256  }
0x27c8   :  { %4498 = vsyncadd [#allocation7], 4294967040 }
0x27c9   :  { %3583 = vsyncpa [#allocation5], 1 }
0x27ca   :  { %3584 = vsyncpa [#allocation7], 1 }

</bundles_post_ra>
